<compile_context>
chip_gen: v7x
topology: tpu7x:2x2x1
jax: 0.10.0
libtpu: 0.0.40
codegen_flags: <defaults>
</compile_context>

<pallas_src>
import functools

import jax
import jax.numpy as jnp
from jax.experimental import pallas as pl
from jax.experimental.pallas import tpu as pltpu


def _split3_bf16(x_f32):
    """Split an f32 array into three bf16 terms with hi+mid+lo == x (24 bits)."""
    hi = x_f32.astype(jnp.bfloat16)
    r0 = x_f32 - hi.astype(jnp.float32)          # exact (<= 16 significant bits)
    mid = r0.astype(jnp.bfloat16)
    r1 = r0 - mid.astype(jnp.float32)            # exact
    lo = r1.astype(jnp.bfloat16)
    return hi, mid, lo


def _rel_pos_message_kernel(src_idx_ref, dst_idx_ref, hi_ref, mid_ref, lo_ref,
                            out_ref):
    tile_e = src_idx_ref.shape[0]
    two_n = hi_ref.shape[0]
    n_nodes = two_n // 2

    src = src_idx_ref[...]                       # (tile_e, 1) int32, in [0, N)
    dst = dst_idx_ref[...] + n_nodes             # shift into second table half

    # One-hot with a 1 at `src` (picks [pos|feat]) and a 1 at `dst+N` (picks
    # [-pos|0]), so the matmul does gather + concat + subtract in one shot.
    iota = jax.lax.broadcasted_iota(jnp.int32, (tile_e, two_n), 1)
    hit = (iota == src) | (iota == dst)
    onehot = jnp.where(hit, 1.0, 0.0).astype(jnp.bfloat16)   # {0,1} exact in bf16

    # Exact-to-f32 gather on the MXU (hidden behind the output DMA).
    acc = jnp.dot(onehot, hi_ref[...], preferred_element_type=jnp.float32)
    acc = acc + jnp.dot(onehot, mid_ref[...], preferred_element_type=jnp.float32)
    acc = acc + jnp.dot(onehot, lo_ref[...], preferred_element_type=jnp.float32)

    out_ref[...] = acc.astype(out_ref.dtype)     # single full, contiguous store


@functools.partial(jax.jit, static_argnames=("tile_e",))
def relative_position_message(node_pos, node_feat, src_idx, dst_idx, *, tile_e=2048):
    """Fused RelativePositionMessage forward.

    node_pos: (N, P) float; node_feat: (N, F) float;
    src_idx, dst_idx: (E,) int node ids per edge.
    Returns agg_feat: (E, P + F) == concat([pos[src]-pos[dst], feat[src]], -1).
    """
    n_nodes, p = node_pos.shape
    n_nodes_f, f = node_feat.shape
    assert n_nodes_f == n_nodes, "node_pos / node_feat node counts differ"
    e = src_idx.shape[0]
    assert dst_idx.shape == (e,)

    out_dim = p + f
    out_dtype = jnp.result_type(node_pos.dtype, node_feat.dtype)

    # Stacked gather table (built once per call, fused under jit).
    pos_f32 = node_pos.astype(jnp.float32)
    feat_f32 = node_feat.astype(jnp.float32)
    table = jnp.concatenate(
        [jnp.concatenate([pos_f32, feat_f32], axis=1),
         jnp.concatenate([-pos_f32, jnp.zeros_like(feat_f32)], axis=1)],
        axis=0)                                   # (2N, P+F) f32
    hi, mid, lo = _split3_bf16(table)             # three bf16 (2N, P+F) tables

    # Tables stay VMEM-resident across the whole grid (constant index_map).
    table_bytes = 3 * 2 * (2 * n_nodes) * out_dim
    assert table_bytes <= 8 * 1024 * 1024, (
        "node tables too large for the VMEM-resident fused-gather path")

    # Big edge tiles amortize the ~0.35us per-grid-step overhead; clamp to the
    # (8-aligned) edge count so tiny graphs still form a single tile.
    tile_e = max(8, min(tile_e, ((e + 7) // 8) * 8))
    num_tiles = pl.cdiv(e, tile_e)
    e_pad = num_tiles * tile_e

    src_idx = src_idx.astype(jnp.int32).reshape(e, 1)
    dst_idx = dst_idx.astype(jnp.int32).reshape(e, 1)
    if e_pad != e:
        pad = ((0, e_pad - e), (0, 0))
        src_idx = jnp.pad(src_idx, pad)   # pads with node id 0 (valid row; sliced off)
        dst_idx = jnp.pad(dst_idx, pad)

    out = pl.pallas_call(
        _rel_pos_message_kernel,
        out_shape=jax.ShapeDtypeStruct((e_pad, out_dim), out_dtype),
        grid_spec=pltpu.PrefetchScalarGridSpec(
            num_scalar_prefetch=0,
            grid=(num_tiles,),
            in_specs=[
                pl.BlockSpec((tile_e, 1), lambda i: (i, 0)),             # src ids
                pl.BlockSpec((tile_e, 1), lambda i: (i, 0)),             # dst ids
                pl.BlockSpec((2 * n_nodes, out_dim), lambda i: (0, 0)),  # table hi
                pl.BlockSpec((2 * n_nodes, out_dim), lambda i: (0, 0)),  # table mid
                pl.BlockSpec((2 * n_nodes, out_dim), lambda i: (0, 0)),  # table lo
            ],
            out_specs=pl.BlockSpec((tile_e, out_dim), lambda i: (i, 0)),
        ),
        compiler_params=pltpu.CompilerParams(
            dimension_semantics=("parallel",),      # shard edge tiles across TCs
            vmem_limit_bytes=32 * 1024 * 1024,      # headroom for large tiles
        ),
    )(src_idx, dst_idx, hi, mid, lo)

    return out[:e] if e_pad != e else out


def _reference(node_pos, node_feat, src_idx, dst_idx):
    return jnp.concatenate(
        [node_pos[src_idx] - node_pos[dst_idx], node_feat[src_idx]], axis=1)


if __name__ == "__main__":
    key = jax.random.PRNGKey(0)
    k_pos, k_feat, k_src, k_dst = jax.random.split(key, 4)

    # Small synthetic graph: N nodes, E edges, pos dim 3, feature dim 32.
    N, E, POS_DIM, FEAT_DIM = 64, 4096, 3, 32
    n_neighbor = 16  # ctor arg of the module; unused in forward (API parity only)

    node_pos = jax.random.normal(k_pos, (N, POS_DIM), dtype=jnp.float32)
    node_feat = jax.random.normal(k_feat, (N, FEAT_DIM), dtype=jnp.float32)
    src_idx = jax.random.randint(k_src, (E,), 0, N, dtype=jnp.int32)
    dst_idx = jax.random.randint(k_dst, (E,), 0, N, dtype=jnp.int32)

    # tile_e=1024 at demo scale -> 4 parallel grid steps (>= 2 so both v7x TCs work).
    agg = relative_position_message(node_pos, node_feat, src_idx, dst_idx, tile_e=1024)
    agg = jax.block_until_ready(agg)

    ref = _reference(node_pos, node_feat, src_idx, dst_idx)
    assert agg.shape == (E, POS_DIM + FEAT_DIM)
    assert jnp.allclose(agg, ref, atol=1e-6, rtol=1e-6)

    # Ragged edge count + non-multiple-of-8 node count: exercises the cdiv grid,
    # index padding and output slicing (deliberately small tile to force it).
    N2, E2 = 50, 1000
    node_pos2 = jax.random.normal(k_pos, (N2, POS_DIM), dtype=jnp.float32)
    node_feat2 = jax.random.normal(k_feat, (N2, FEAT_DIM), dtype=jnp.float32)
    src2 = jax.random.randint(k_src, (E2,), 0, N2, dtype=jnp.int32)
    dst2 = jax.random.randint(k_dst, (E2,), 0, N2, dtype=jnp.int32)
    agg2 = relative_position_message(node_pos2, node_feat2, src2, dst2, tile_e=256)
    agg2 = jax.block_until_ready(agg2)
    ref2 = _reference(node_pos2, node_feat2, src2, dst2)
    assert agg2.shape == (E2, POS_DIM + FEAT_DIM)
    assert jnp.allclose(agg2, ref2, atol=1e-6, rtol=1e-6)

    print("KERNEL_OK")
</pallas_src>

<mosaic_0001>
module attributes {stable_mosaic.version = 11 : i64} {
  func.func @_rel_pos_message_kernel(%arg0: i32, %arg1: memref<1024x1xi32, #tpu.memory_space<vmem>>, %arg2: memref<1024x1xi32, #tpu.memory_space<vmem>>, %arg3: memref<128x35xbf16, #tpu.memory_space<vmem>>, %arg4: memref<128x35xbf16, #tpu.memory_space<vmem>>, %arg5: memref<128x35xbf16, #tpu.memory_space<vmem>>, %arg6: memref<1024x35xf32, #tpu.memory_space<vmem>>) attributes {dimension_semantics = [#tpu.dimension_semantics<parallel>], iteration_bounds = array<i64: 4>, scalar_prefetch = 0 : i64, scratch_operands = 0 : i64, tpu.core_type = #tpu.core_type<tc>, window_params = [{transform_indices = @transform_0, window_bounds = array<i64: 1024, 1>}, {transform_indices = @transform_1, window_bounds = array<i64: 1024, 1>}, {pipeline_mode = #tpu.pipeline_mode<synchronous>, transform_indices = @transform_2, window_bounds = array<i64: 128, 35>}, {pipeline_mode = #tpu.pipeline_mode<synchronous>, transform_indices = @transform_3, window_bounds = array<i64: 128, 35>}, {pipeline_mode = #tpu.pipeline_mode<synchronous>, transform_indices = @transform_4, window_bounds = array<i64: 128, 35>}, {transform_indices = @transform_5, window_bounds = array<i64: 1024, 35>}]} {
    %c0 = arith.constant 0 : index
    %c0_0 = arith.constant 0 : index
    %0 = vector.load %arg1[%c0, %c0_0] : memref<1024x1xi32, #tpu.memory_space<vmem>>, vector<1024x1xi32>
    %c0_1 = arith.constant 0 : index
    %c0_2 = arith.constant 0 : index
    %1 = vector.load %arg2[%c0_1, %c0_2] : memref<1024x1xi32, #tpu.memory_space<vmem>>, vector<1024x1xi32>
    %c64_i32 = arith.constant 64 : i32
    %2 = vector.broadcast %c64_i32 : i32 to vector<1024x1xi32>
    %3 = arith.addi %1, %2 : vector<1024x1xi32>
    %4 = tpu.iota {dimensions = array<i32: 1>} : vector<1024x128xi32>
    %5 = vector.broadcast %0 : vector<1024x1xi32> to vector<1024x128xi32>
    %6 = arith.cmpi eq, %4, %5 : vector<1024x128xi32>
    %7 = vector.broadcast %3 : vector<1024x1xi32> to vector<1024x128xi32>
    %8 = arith.cmpi eq, %4, %7 : vector<1024x128xi32>
    %9 = arith.ori %6, %8 : vector<1024x128xi1>
    %cst = arith.constant 1.000000e+00 : f32
    %cst_3 = arith.constant 0.000000e+00 : f32
    %10 = vector.broadcast %cst : f32 to vector<1024x128xf32>
    %11 = vector.broadcast %cst_3 : f32 to vector<1024x128xf32>
    %12 = arith.select %9, %10, %11 : vector<1024x128xi1>, vector<1024x128xf32>
    %13 = arith.truncf %12 : vector<1024x128xf32> to vector<1024x128xbf16>
    %c0_4 = arith.constant 0 : index
    %c0_5 = arith.constant 0 : index
    %14 = vector.load %arg3[%c0_4, %c0_5] : memref<128x35xbf16, #tpu.memory_space<vmem>>, vector<128x35xbf16>
    %cst_6 = arith.constant dense<0.000000e+00> : vector<1024x35xf32>
    %15 = tpu.matmul %13, %14, %cst_6 {dimension_numbers = #tpu.dot_dimension_numbers<[1], [0], [0], [1], [0, 0, 1, 1], [], []>} : vector<1024x128xbf16>, vector<128x35xbf16>, vector<1024x35xf32> -> vector<1024x35xf32>
    %c0_7 = arith.constant 0 : index
    %c0_8 = arith.constant 0 : index
    %16 = vector.load %arg4[%c0_7, %c0_8] : memref<128x35xbf16, #tpu.memory_space<vmem>>, vector<128x35xbf16>
    %cst_9 = arith.constant dense<0.000000e+00> : vector<1024x35xf32>
    %17 = tpu.matmul %13, %16, %cst_9 {dimension_numbers = #tpu.dot_dimension_numbers<[1], [0], [0], [1], [0, 0, 1, 1], [], []>} : vector<1024x128xbf16>, vector<128x35xbf16>, vector<1024x35xf32> -> vector<1024x35xf32>
    %18 = arith.addf %15, %17 : vector<1024x35xf32>
    %c0_10 = arith.constant 0 : index
    %c0_11 = arith.constant 0 : index
    %19 = vector.load %arg5[%c0_10, %c0_11] : memref<128x35xbf16, #tpu.memory_space<vmem>>, vector<128x35xbf16>
    %cst_12 = arith.constant dense<0.000000e+00> : vector<1024x35xf32>
    %20 = tpu.matmul %13, %19, %cst_12 {dimension_numbers = #tpu.dot_dimension_numbers<[1], [0], [0], [1], [0, 0, 1, 1], [], []>} : vector<1024x128xbf16>, vector<128x35xbf16>, vector<1024x35xf32> -> vector<1024x35xf32>
    %21 = arith.addf %18, %20 : vector<1024x35xf32>
    %c0_13 = arith.constant 0 : index
    %c0_14 = arith.constant 0 : index
    %22 = vector.load %arg6[%c0_13, %c0_14] : memref<1024x35xf32, #tpu.memory_space<vmem>>, vector<1024x35xf32>
    tpu.vector_store %arg6[%c0_13, %c0_14], %21 {strides = array<i32>} : memref<1024x35xf32, #tpu.memory_space<vmem>>, vector<1024x35xf32>,
    return
  }
  func.func @transform_0(%arg0: i32) -> (i32, i32) {
    %c0_i32 = arith.constant 0 : i32
    %c0_i32_0 = arith.constant 0 : i32
    return %arg0, %c0_i32 : i32, i32
  }
  func.func @transform_1(%arg0: i32) -> (i32, i32) {
    %c0_i32 = arith.constant 0 : i32
    %c0_i32_0 = arith.constant 0 : i32
    return %arg0, %c0_i32 : i32, i32
  }
  func.func @transform_2(%arg0: i32) -> (i32, i32) {
    %c0_i32 = arith.constant 0 : i32
    %c0_i32_0 = arith.constant 0 : i32
    %c0_i32_1 = arith.constant 0 : i32
    return %c0_i32, %c0_i32_0 : i32, i32
  }
  func.func @transform_3(%arg0: i32) -> (i32, i32) {
    %c0_i32 = arith.constant 0 : i32
    %c0_i32_0 = arith.constant 0 : i32
    %c0_i32_1 = arith.constant 0 : i32
    return %c0_i32, %c0_i32_0 : i32, i32
  }
  func.func @transform_4(%arg0: i32) -> (i32, i32) {
    %c0_i32 = arith.constant 0 : i32
    %c0_i32_0 = arith.constant 0 : i32
    %c0_i32_1 = arith.constant 0 : i32
    return %c0_i32, %c0_i32_0 : i32, i32
  }
  func.func @transform_5(%arg0: i32) -> (i32, i32) {
    %c0_i32 = arith.constant 0 : i32
    %c0_i32_0 = arith.constant 0 : i32
    return %arg0, %c0_i32 : i32, i32
  }
}

</mosaic_0001>

<bundles_post_ra>
// kernel: neg.1
= control target key start
LH: loop header
LB: loop body
LE: loop exit
PB: predicated region body
PF: predicated region fallthrough
CT: control target
= control target key end

     0   :  { %2 = vsyncpa [#allocation1], 0  ;;  %s44_s6 = smov [#allocation0]   ;;  %s70_s0 = inlined_call_operand.hbm [shape: f32[64,3], index: 0, kind: input, shape index: {}]   ;;  %s71_s1 = inlined_call_operand.vmem [shape: f32[64,3], index: 1, kind: output, shape index: {}]  }
   0x1   :  { %s7_s7 = sshll.u32 %s44_s6, 4  ;;  %s20_s10 = scalar_lea.hbm %s70_s0, 64  ;;  %s8_s7 = int_to_ptr.vmem [resolvable:$true] %s7_s7 }
   0x2   :  { %p21_p0 = scmp.ne.s32.totalorder %s70_s0, %s20_s10  ;;  %p24_p1 = scmp.lt.u32.totalorder %s20_s10, %s70_s0 }
   0x4   :  { %p26_p2 = pnand %p24_p1, %p21_p0 }
   0x6   :  { %29 = shalt.err (!%p26_p2)
}
   0x7   :  { %s30_s15 = scalar_lea.vmem %s8_s7, 64  ;;  %p35_p4 = scmp.lt.s32.totalorder %s8_s7, %s8_s7 }
   0x8   :  { %p31_p3 = scmp.ne.s32.totalorder %s8_s7, %s30_s15  ;;  %p36_p5 = scmp.lt.s32.totalorder %s30_s15, %s30_s15 }
   0xa   :  { %p37_p6 = por %p36_p5, %p35_p4 }
   0xc   :  { %p38_p7 = pnand %p37_p6, %p31_p3 }
   0xe   :  { %41 = shalt.err (!%p38_p7)
}
   0xf   :  { %10 = dma.hbm_to_vmem [thread:$0]  %s70_s0, 64, %s8_s7, [#allocation1]  }
  0x10   :  { %42 = dma.done.wait [#allocation1], 64  }
  0x11   :  { %43 = vsyncadd [#allocation1], 4294967232  ;;  %v12_v0 = vld [vmem:[#allocation0] sm:$0x7] }
  0x12   :  { %v15_v1 = vxor.u32 2147483648, %v12_v0 }
  0x14   :  { %17 = vst [vmem:[%s71_s1] sm:$0xf] %v15_v1 }
  0x15   :  { %18 = vsyncpa [#allocation1], 1 }

// kernel: relative_position_message.1
= control target key start
LH: loop header
LB: loop body
LE: loop exit
PB: predicated region body
PF: predicated region fallthrough
CT: control target
= control target key end

     0   :  { %s5550_s18 = smov 0   ;;  %s7954_s0 = inlined_call_operand.vmem [shape: s32[4096,1], index: 0, kind: input, shape index: {}]   ;;  %s7955_s1 = inlined_call_operand.vmem [shape: s32[4096,1], index: 1, kind: input, shape index: {}]   ;;  %s7956_s2 = inlined_call_operand.vmem [shape: bf16[128,35], index: 2, kind: input, shape index: {}]   ;;  %s7957_s3 = inlined_call_operand.vmem [shape: bf16[128,35], index: 3, kind: input, shape index: {}]   ;;  %s7958_s4 = inlined_call_operand.vmem [shape: bf16[128,35], index: 4, kind: input, shape index: {}]   ;;  %s7959_s5 = inlined_call_operand.vmem [shape: f32[4096,35], index: 5, kind: output, shape index: {}]  }
   0x1 LB: > { %s4133_s19 = sadd.s32 4294967295, %s5516_s18   ;;  %p4137_p0 = scmp.ge.s32.totalorder %s5516_s18, 1  ;;  %s5516_s18 = sphi %s5550_s18, %s15_s18  }
   0x2   : > { %p199_p1 = scmp.lt.s32.totalorder %s5516_s18, 5 }
   0x4   : > { %p200_p2 = pnand %p4137_p0, %p199_p1 }
   0x6   : > { %203 = sbr.rel (%p200_p2) target bundleno = 1006 (0x3ee), region = 40 }
   0xd   : > { %s4138_s20 = sshll.u32 %s4133_s19, 7  ;;  %v5518_v0 = vmov 0  }
   0xe   : > { %5485 = vset.pattern.permute.xlu1 %v5518_v0  ;;  %5484 = vset.pattern.permute.xlu0 %v5518_v0  ;;  %p233_p3 = scmp.lt.s32.totalorder %s4138_s20, 511 }
  0x10   : > { %s8390_s20 = smov (!%p233_p3, %s4138_s20), 511 }
  0x11   : > { %s5558_s21 = sshll.u32 %s8390_s20, 3 }
  0x12   : > { %s5564_s24 = scalar_lea.vmem %s7954_s0, %s5558_s21  ;;  %s5740_s19 = scalar_lea.vmem %s7955_s1, %s5558_s21 }
  0x13   : > { %v253_v1 = vld [vmem:[%s5564_s24 + $0x10] sm:$0xff]  ;;  %v251_v2 = vld [vmem:[%s5564_s24] sm:$0xff]  ;;  %v254_v3 = vld [vmem:[%s5564_s24 + $0x18] sm:$0xff]  ;;  %s7353_s8 = scalar_lea.vmem %s7959_s5, %s5558_s21 }
  0x14   : > { %644 = vperm.xlu1 %5485, %v253_v1   ;;  %638 = vperm.xlu0 %5484, %v251_v2   ;;  %v252_v4 = vld [vmem:[%s5564_s24 + $0x8] sm:$0xff]  ;;  %v255_v6 = vld [vmem:[%s5564_s24 + $0x20] sm:$0xff]  ;;  %v258_v7 = vld [vmem:[%s5564_s24 + $0x38] sm:$0xff] }
  0x15   : > { %v256_v5 = vld [vmem:[%s5564_s24 + $0x28] sm:$0xff]  ;;  %v257_v8 = vld [vmem:[%s5564_s24 + $0x30] sm:$0xff]  ;;  %v259_v10 = vld [vmem:[%s5564_s24 + $0x40] sm:$0xff] }
  0x16   : > { %v260_v9 = vld [vmem:[%s5564_s24 + $0x48] sm:$0xff]  ;;  %v262_v11 = vld [vmem:[%s5564_s24 + $0x58] sm:$0xff]  ;;  %v261_v12 = vld [vmem:[%s5564_s24 + $0x50] sm:$0xff] }
  0x17   : > { %v264_v13 = vld [vmem:[%s5564_s24 + $0x68] sm:$0xff]  ;;  %v263_v14 = vld [vmem:[%s5564_s24 + $0x60] sm:$0xff]  ;;  %v266_v15 = vld [vmem:[%s5564_s24 + $0x78] sm:$0xff] }
  0x18   : > { %647 = vperm.xlu1 %5485, %v254_v3   ;;  %641 = vperm.xlu0 %5484, %v252_v4   ;;  %v265_v16 = vld [vmem:[%s5564_s24 + $0x70] sm:$0xff]  ;;  %v268_v17 = vld [vmem:[%s5564_s24 + $0x88] sm:$0xff]  ;;  %v267_v18 = vld [vmem:[%s5564_s24 + $0x80] sm:$0xff] }
  0x19   : > { %v270_v19 = vld [vmem:[%s5564_s24 + $0x98] sm:$0xff]  ;;  %v269_v20 = vld [vmem:[%s5564_s24 + $0x90] sm:$0xff]  ;;  %v272_v21 = vld [vmem:[%s5564_s24 + $0xa8] sm:$0xff] }
  0x1a   : > { %v271_v22 = vld [vmem:[%s5564_s24 + $0xa0] sm:$0xff]  ;;  %v274_v23 = vld [vmem:[%s5564_s24 + $0xb8] sm:$0xff]  ;;  %v273_v24 = vld [vmem:[%s5564_s24 + $0xb0] sm:$0xff] }
  0x1b   : > { %v276_v25 = vld [vmem:[%s5564_s24 + $0xc8] sm:$0xff]  ;;  %v275_v26 = vld [vmem:[%s5564_s24 + $0xc0] sm:$0xff]  ;;  %v278_v27 = vld [vmem:[%s5564_s24 + $0xd8] sm:$0xff] }
  0x1c   : > { %653 = vperm.xlu1 %5485, %v256_v5   ;;  %650 = vperm.xlu0 %5484, %v255_v6   ;;  %v277_v28 = vld [vmem:[%s5564_s24 + $0xd0] sm:$0xff]  ;;  %v280_v29 = vld [vmem:[%s5564_s24 + $0xe8] sm:$0xff]  ;;  %v279_v30 = vld [vmem:[%s5564_s24 + $0xe0] sm:$0xff] }
  0x1d   : > { %v282_v31 = vld [vmem:[%s5564_s24 + $0xf8] sm:$0xff]  ;;  %v281_v32 = vld [vmem:[%s5564_s24 + $0xf0] sm:$0xff]  ;;  %v284_v33 = vld [vmem:[%s5564_s24 + $0x108] sm:$0xff] }
  0x1e   : > { %v283_v34 = vld [vmem:[%s5564_s24 + $0x100] sm:$0xff]  ;;  %v286_v35 = vld [vmem:[%s5564_s24 + $0x118] sm:$0xff]  ;;  %v285_v36 = vld [vmem:[%s5564_s24 + $0x110] sm:$0xff] }
  0x1f   : > { %v288_v37 = vld [vmem:[%s5564_s24 + $0x128] sm:$0xff]  ;;  %v287_v38 = vld [vmem:[%s5564_s24 + $0x120] sm:$0xff]  ;;  %v290_v39 = vld [vmem:[%s5564_s24 + $0x138] sm:$0xff] }
  0x20   : > { %659 = vperm.xlu1 %5485, %v258_v7   ;;  %656 = vperm.xlu0 %5484, %v257_v8   ;;  %v289_v40 = vld [vmem:[%s5564_s24 + $0x130] sm:$0xff]  ;;  %v292_v41 = vld [vmem:[%s5564_s24 + $0x148] sm:$0xff]  ;;  %v291_v42 = vld [vmem:[%s5564_s24 + $0x140] sm:$0xff] }
  0x21   : > { %v294_v43 = vld [vmem:[%s5564_s24 + $0x158] sm:$0xff]  ;;  %v293_v44 = vld [vmem:[%s5564_s24 + $0x150] sm:$0xff]  ;;  %v296_v45 = vld [vmem:[%s5564_s24 + $0x168] sm:$0xff] }
  0x22   : > { %v295_v46 = vld [vmem:[%s5564_s24 + $0x160] sm:$0xff]  ;;  %v298_v47 = vld [vmem:[%s5564_s24 + $0x178] sm:$0xff]  ;;  %v297_v48 = vld [vmem:[%s5564_s24 + $0x170] sm:$0xff] }
  0x23   : > { %v300_v49 = vld [vmem:[%s5564_s24 + $0x188] sm:$0xff]  ;;  %v299_v50 = vld [vmem:[%s5564_s24 + $0x180] sm:$0xff]  ;;  %v302_v51 = vld [vmem:[%s5564_s24 + $0x198] sm:$0xff] }
  0x24   : > { %665 = vperm.xlu1 %5485, %v260_v9   ;;  %662 = vperm.xlu0 %5484, %v259_v10   ;;  %v301_v52 = vld [vmem:[%s5564_s24 + $0x190] sm:$0xff]  ;;  %v304_v53 = vld [vmem:[%s5564_s24 + $0x1a8] sm:$0xff]  ;;  %v303_v54 = vld [vmem:[%s5564_s24 + $0x1a0] sm:$0xff] }
  0x25   : > { %v306_v55 = vld [vmem:[%s5564_s24 + $0x1b8] sm:$0xff]  ;;  %v305_v56 = vld [vmem:[%s5564_s24 + $0x1b0] sm:$0xff]  ;;  %v308_v57 = vld [vmem:[%s5564_s24 + $0x1c8] sm:$0xff] }
  0x26   : > { %v307_v58 = vld [vmem:[%s5564_s24 + $0x1c0] sm:$0xff]  ;;  %v310_v59 = vld [vmem:[%s5564_s24 + $0x1d8] sm:$0xff]  ;;  %v309_v60 = vld [vmem:[%s5564_s24 + $0x1d0] sm:$0xff] }
  0x27   : > { %v312_v61 = vld [vmem:[%s5564_s24 + $0x1e8] sm:$0xff]  ;;  %v311_v62 = vld [vmem:[%s5564_s24 + $0x1e0] sm:$0xff]  ;;  %v314_v63 = vld [vmem:[%s5564_s24 + $0x1f8] sm:$0xff] }
  0x28   : > { %671 = vperm.xlu1 %5485, %v262_v11   ;;  %668 = vperm.xlu0 %5484, %v261_v12   ;;  %v313_v0 = vld [vmem:[%s5564_s24 + $0x1f0] sm:$0xff]  ;;  %v316_v1 = vld [vmem:[%s5564_s24 + $0x208] sm:$0xff]  ;;  %v315_v2 = vld [vmem:[%s5564_s24 + $0x200] sm:$0xff] }
  0x29   : > { %v318_v5 = vld [vmem:[%s5564_s24 + $0x218] sm:$0xff]  ;;  %v317_v6 = vld [vmem:[%s5564_s24 + $0x210] sm:$0xff]  ;;  %v320_v9 = vld [vmem:[%s5564_s24 + $0x228] sm:$0xff] }
  0x2a   : > { %v319_v10 = vld [vmem:[%s5564_s24 + $0x220] sm:$0xff] }
  0x2c   : > { %677 = vperm.xlu1 %5485, %v264_v13   ;;  %674 = vperm.xlu0 %5484, %v263_v14   ;;  %v322_v13 = vld [vmem:[%s5564_s24 + $0x238] sm:$0xff]  ;;  %v321_v14 = vld [vmem:[%s5564_s24 + $0x230] sm:$0xff] }
  0x30   : > { %683 = vperm.xlu1 %5485, %v266_v15   ;;  %680 = vperm.xlu0 %5484, %v265_v16  }
  0x34   : > { %689 = vperm.xlu1 %5485, %v268_v17   ;;  %686 = vperm.xlu0 %5484, %v267_v18   ;;  %v324_v17 = vld [vmem:[%s5564_s24 + $0x248] sm:$0xff]  ;;  %v323_v18 = vld [vmem:[%s5564_s24 + $0x240] sm:$0xff] }
  0x38   : > { %695 = vperm.xlu1 %5485, %v270_v19   ;;  %692 = vperm.xlu0 %5484, %v269_v20  }
  0x3c   : > { %701 = vperm.xlu1 %5485, %v272_v21   ;;  %698 = vperm.xlu0 %5484, %v271_v22   ;;  %v326_v21 = vld [vmem:[%s5564_s24 + $0x258] sm:$0xff]  ;;  %v325_v22 = vld [vmem:[%s5564_s24 + $0x250] sm:$0xff] }
  0x40   : > { %707 = vperm.xlu1 %5485, %v274_v23   ;;  %704 = vperm.xlu0 %5484, %v273_v24  }
  0x44   : > { %713 = vperm.xlu1 %5485, %v276_v25   ;;  %710 = vperm.xlu0 %5484, %v275_v26   ;;  %v328_v25 = vld [vmem:[%s5564_s24 + $0x268] sm:$0xff]  ;;  %v327_v26 = vld [vmem:[%s5564_s24 + $0x260] sm:$0xff] }
  0x48   : > { %719 = vperm.xlu1 %5485, %v278_v27   ;;  %716 = vperm.xlu0 %5484, %v277_v28  }
  0x4c   : > { %725 = vperm.xlu1 %5485, %v280_v29   ;;  %722 = vperm.xlu0 %5484, %v279_v30   ;;  %v330_v29 = vld [vmem:[%s5564_s24 + $0x278] sm:$0xff]  ;;  %v329_v30 = vld [vmem:[%s5564_s24 + $0x270] sm:$0xff] }
  0x50   : > { %731 = vperm.xlu1 %5485, %v282_v31   ;;  %728 = vperm.xlu0 %5484, %v281_v32  }
  0x54   : > { %737 = vperm.xlu1 %5485, %v284_v33   ;;  %734 = vperm.xlu0 %5484, %v283_v34   ;;  %v5486_v33 = vld [vmem:[%s7957_s3] sm:$0xff]  }
  0x55   : > { %v5684_v34 = vld [vmem:[%s7956_s2] sm:$0xff]   ;;  %4770 = vmatprep.subr.bf16.mxu1 %v5486_v33 }
  0x56   : > { %4914 = vmatprep.subr.bf16.mxu0 %v5684_v34  ;;  %4771 = vmatpush3.bf16.msra.mxu1 %v5486_v33 }
  0x57   : > { %4915 = vmatpush3.bf16.msra.mxu0 %v5684_v34 }
  0x58   : > { %743 = vperm.xlu1 %5485, %v286_v35   ;;  %740 = vperm.xlu0 %5484, %v285_v36   ;;  %v332_v35 = vld [vmem:[%s5564_s24 + $0x288] sm:$0xff]  ;;  %v331_v36 = vld [vmem:[%s5564_s24 + $0x280] sm:$0xff] }
  0x5c   : > { %749 = vperm.xlu1 %5485, %v288_v37   ;;  %746 = vperm.xlu0 %5484, %v287_v38  }
  0x60   : > { %755 = vperm.xlu1 %5485, %v290_v39   ;;  %752 = vperm.xlu0 %5484, %v289_v40   ;;  %v5488_v39 = vld [vmem:[%s7957_s3 + $0x8] sm:$0xff]  }
  0x61   : > { %v5700_v40 = vld [vmem:[%s7956_s2 + $0x8] sm:$0xff]   ;;  %4772 = vmatprep.subr.bf16.mxu1 %v5488_v39 }
  0x62   : > { %4916 = vmatprep.subr.bf16.mxu0 %v5700_v40  ;;  %4773 = vmatpush3.bf16.msra.mxu1 %v5488_v39  ;;  %v5500_v39 = vld [vmem:[%s7957_s3 + $0x38] sm:$0xff]  }
  0x63   : > { %4917 = vmatpush3.bf16.msra.mxu0 %v5700_v40 }
  0x64   : > { %761 = vperm.xlu1 %5485, %v292_v41   ;;  %758 = vperm.xlu0 %5484, %v291_v42   ;;  %v334_v41 = vld [vmem:[%s5564_s24 + $0x298] sm:$0xff]  ;;  %v333_v42 = vld [vmem:[%s5564_s24 + $0x290] sm:$0xff] }
  0x68   : > { %767 = vperm.xlu1 %5485, %v294_v43   ;;  %764 = vperm.xlu0 %5484, %v293_v44  }
  0x6c   : > { %773 = vperm.xlu1 %5485, %v296_v45   ;;  %770 = vperm.xlu0 %5484, %v295_v46   ;;  %v5490_v45 = vld [vmem:[%s7957_s3 + $0x10] sm:$0xff]  }
  0x6d   : > { %v5716_v46 = vld [vmem:[%s7956_s2 + $0x10] sm:$0xff]   ;;  %4774 = vmatprep.subr.bf16.mxu1 %v5490_v45 }
  0x6e   : > { %4918 = vmatprep.subr.bf16.mxu0 %v5716_v46  ;;  %4775 = vmatpush3.bf16.msra.mxu1 %v5490_v45 }
  0x6f   : > { %4919 = vmatpush3.bf16.msra.mxu0 %v5716_v46 }
  0x70   : > { %779 = vperm.xlu1 %5485, %v298_v47   ;;  %776 = vperm.xlu0 %5484, %v297_v48   ;;  %v336_v47 = vld [vmem:[%s5564_s24 + $0x2a8] sm:$0xff]  ;;  %v335_v48 = vld [vmem:[%s5564_s24 + $0x2a0] sm:$0xff] }
  0x74   : > { %785 = vperm.xlu1 %5485, %v300_v49   ;;  %782 = vperm.xlu0 %5484, %v299_v50  }
  0x78   : > { %791 = vperm.xlu1 %5485, %v302_v51   ;;  %788 = vperm.xlu0 %5484, %v301_v52   ;;  %v5492_v51 = vld [vmem:[%s7957_s3 + $0x18] sm:$0xff]  }
  0x79   : > { %v5732_v52 = vld [vmem:[%s7956_s2 + $0x18] sm:$0xff]   ;;  %4776 = vmatprep.subr.bf16.mxu1 %v5492_v51 }
  0x7a   : > { %4920 = vmatprep.subr.bf16.mxu0 %v5732_v52  ;;  %4777 = vmatpush3.bf16.msra.mxu1 %v5492_v51  ;;  %v387_v51 = vld [vmem:[%s5740_s19 + $0x40] sm:$0xff] }
  0x7b   : > { %4921 = vmatpush3.bf16.msra.mxu0 %v5732_v52 }
  0x7c   : > { %797 = vperm.xlu1 %5485, %v304_v53   ;;  %794 = vperm.xlu0 %5484, %v303_v54   ;;  %v338_v53 = vld [vmem:[%s5564_s24 + $0x2b8] sm:$0xff]  ;;  %v337_v54 = vld [vmem:[%s5564_s24 + $0x2b0] sm:$0xff] }
  0x80   : > { %803 = vperm.xlu1 %5485, %v306_v55   ;;  %800 = vperm.xlu0 %5484, %v305_v56  }
  0x84   : > { %809 = vperm.xlu1 %5485, %v308_v57   ;;  %806 = vperm.xlu0 %5484, %v307_v58   ;;  %v5494_v57 = vld [vmem:[%s7957_s3 + $0x20] sm:$0xff]  }
  0x85   : > { %v5754_v58 = vld [vmem:[%s7956_s2 + $0x20] sm:$0xff]   ;;  %4778 = vmatprep.subr.bf16.mxu1 %v5494_v57 }
  0x86   : > { %4922 = vmatprep.subr.bf16.mxu0 %v5754_v58  ;;  %4779 = vmatpush3.bf16.msra.mxu1 %v5494_v57 }
  0x87   : > { %4923 = vmatpush3.bf16.msra.mxu0 %v5754_v58 }
  0x88   : > { %815 = vperm.xlu1 %5485, %v310_v59   ;;  %812 = vperm.xlu0 %5484, %v309_v60   ;;  %v340_v59 = vld [vmem:[%s5564_s24 + $0x2c8] sm:$0xff]  ;;  %v339_v60 = vld [vmem:[%s5564_s24 + $0x2c0] sm:$0xff] }
  0x8c   : > { %821 = vperm.xlu1 %5485, %v312_v61   ;;  %818 = vperm.xlu0 %5484, %v311_v62   ;;  %v379_v61 = vld [vmem:[%s5740_s19] sm:$0xff] }
  0x90   : > { %827 = vperm.xlu1 %5485, %v314_v63   ;;  %824 = vperm.xlu0 %5484, %v313_v0   ;;  %v507_v0 = vadd.s32 64, %v379_v61  ;;  %v389_v61 = vld [vmem:[%s5740_s19 + $0x50] sm:$0xff] }
  0x93   : > { %v5632_v3 = vpop.permute.xlu1 %644  ;;  %v5634_v4 = vpop.permute.xlu0 %638 }
  0x94   : > { %833 = vperm.xlu1 %5485, %v316_v1   ;;  %830 = vperm.xlu0 %5484, %v315_v2   ;;  %v5496_v1 = vld [vmem:[%s7957_s3 + $0x28] sm:$0xff]  }
  0x95   : > { %v5771_v2 = vld [vmem:[%s7956_s2 + $0x28] sm:$0xff]   ;;  %4780 = vmatprep.subr.bf16.mxu1 %v5496_v1 }
  0x96   : > { %4924 = vmatprep.subr.bf16.mxu0 %v5771_v2  ;;  %4781 = vmatpush3.bf16.msra.mxu1 %v5496_v1 }
  0x97   : > { %v5638_v7 = vpop.permute.xlu1 %647  ;;  %v5640_v8 = vpop.permute.xlu0 %641  ;;  %4925 = vmatpush3.bf16.msra.mxu0 %v5771_v2 }
  0x98   : > { %839 = vperm.xlu1 %5485, %v318_v5   ;;  %836 = vperm.xlu0 %5484, %v317_v6   ;;  %v341_v5 = vld [vmem:[%s5564_s24 + $0x2d0] sm:$0xff] }
  0x99   : > { %v381_v6 = vld [vmem:[%s5740_s19 + $0x10] sm:$0xff] }
  0x9b   : > { %v5644_v11 = vpop.permute.xlu1 %653  ;;  %v5646_v12 = vpop.permute.xlu0 %650 }
  0x9c   : > { %845 = vperm.xlu1 %5485, %v320_v9   ;;  %842 = vperm.xlu0 %5484, %v319_v10   ;;  %v380_v9 = vld [vmem:[%s5740_s19 + $0x8] sm:$0xff] }
  0x9f   : > { %v5650_v15 = vpop.permute.xlu1 %659  ;;  %v5652_v16 = vpop.permute.xlu0 %656 }
  0xa0   : > { %851 = vperm.xlu1 %5485, %v322_v13   ;;  %848 = vperm.xlu0 %5484, %v321_v14   ;;  %v509_v14 = vadd.s32 64, %v381_v6  ;;  %v517_v6 = vadd.s32 64, %v389_v61 }
  0xa3   : > { %v5656_v19 = vpop.permute.xlu1 %665  ;;  %v5658_v20 = vpop.permute.xlu0 %662 }
  0xa4   : > { %857 = vperm.xlu1 %5485, %v324_v17   ;;  %854 = vperm.xlu0 %5484, %v323_v18   ;;  %v508_v17 = vadd.s32 64, %v380_v9  ;;  %v5498_v18 = vld [vmem:[%s7957_s3 + $0x30] sm:$0xff]  }
  0xa5   : > { %4782 = vmatprep.subr.bf16.mxu1 %v5498_v18 }
  0xa6   : > { %4783 = vmatpush3.bf16.msra.mxu1 %v5498_v18 }
  0xa7   : > { %v5662_v23 = vpop.permute.xlu1 %671  ;;  %v5664_v24 = vpop.permute.xlu0 %668  ;;  %4784 = vmatprep.subr.bf16.mxu1 %v5500_v39 }
  0xa8   : > { %863 = vperm.xlu1 %5485, %v326_v21   ;;  %860 = vperm.xlu0 %5484, %v325_v22   ;;  %v5788_v21 = vld [vmem:[%s7956_s2 + $0x30] sm:$0xff]   ;;  %v383_v22 = vld [vmem:[%s5740_s19 + $0x20] sm:$0xff] }
  0xa9   : > { %4926 = vmatprep.subr.bf16.mxu0 %v5788_v21 }
  0xaa   : > { %4927 = vmatpush3.bf16.msra.mxu0 %v5788_v21  ;;  %4785 = vmatpush3.bf16.msra.mxu1 %v5500_v39 }
  0xab   : > { %v5668_v27 = vpop.permute.xlu1 %677  ;;  %v5670_v28 = vpop.permute.xlu0 %674  ;;  %5202 = vmatprep.subr.bf16.mxu1 %v5684_v34 }
  0xac   : > { %869 = vperm.xlu1 %5485, %v328_v25   ;;  %866 = vperm.xlu0 %5484, %v327_v26   ;;  %v382_v25 = vld [vmem:[%s5740_s19 + $0x18] sm:$0xff] }
  0xad   : > { %v510_v33 = vadd.s32 64, %v382_v25 }
  0xaf   : > { %v5674_v31 = vpop.permute.xlu1 %683  ;;  %v5676_v32 = vpop.permute.xlu0 %680 }
  0xb0   : > { %875 = vperm.xlu1 %5485, %v330_v29   ;;  %872 = vperm.xlu0 %5484, %v329_v30   ;;  %v511_v30 = vadd.s32 64, %v383_v22 }
  0xb3   : > { %v5689_v37 = vpop.permute.xlu1 %689  ;;  %v5691_v38 = vpop.permute.xlu0 %686 }
  0xb4   : > { %881 = vperm.xlu1 %5485, %v332_v35   ;;  %878 = vperm.xlu0 %5484, %v331_v36   ;;  %v385_v35 = vld [vmem:[%s5740_s19 + $0x30] sm:$0xff]  ;;  %v384_v36 = vld [vmem:[%s5740_s19 + $0x28] sm:$0xff] }
  0xb7   : > { %v5705_v43 = vpop.permute.xlu1 %695  ;;  %v5707_v44 = vpop.permute.xlu0 %692 }
  0xb8   : > { %887 = vperm.xlu1 %5485, %v334_v41   ;;  %884 = vperm.xlu0 %5484, %v333_v42   ;;  %v5806_v41 = vld [vmem:[%s7956_s2 + $0x38] sm:$0xff]  }
  0xb9   : > { %4928 = vmatprep.subr.bf16.mxu0 %v5806_v41 }
  0xba   : > { %4929 = vmatpush3.bf16.msra.mxu0 %v5806_v41 }
  0xbb   : > { %v5721_v49 = vpop.permute.xlu1 %701  ;;  %v5723_v50 = vpop.permute.xlu0 %698 }
  0xbc   : > { %893 = vperm.xlu1 %5485, %v336_v47   ;;  %890 = vperm.xlu0 %5484, %v335_v48   ;;  %v513_v47 = vadd.s32 64, %v385_v35  ;;  %v512_v48 = vadd.s32 64, %v384_v36  ;;  %v392_v35 = vld [vmem:[%s5740_s19 + $0x68] sm:$0xff] }
  0xbf   : > { %v5743_v55 = vpop.permute.xlu1 %707  ;;  %v5745_v56 = vpop.permute.xlu0 %704 }
  0xc0   : > { %899 = vperm.xlu1 %5485, %v338_v53   ;;  %896 = vperm.xlu0 %5484, %v337_v54   ;;  %v386_v53 = vld [vmem:[%s5740_s19 + $0x38] sm:$0xff] }
  0xc3   : > { %v5760_v62 = vpop.permute.xlu1 %713  ;;  %v5762_v63 = vpop.permute.xlu0 %710 }
  0xc4   : > { %905 = vperm.xlu1 %5485, %v340_v59   ;;  %902 = vperm.xlu0 %5484, %v339_v60   ;;  %v515_v59 = vadd.s32 64, %v387_v51  ;;  %v514_v60 = vadd.s32 64, %v386_v53  ;;  %v395_v51 = vld [vmem:[%s5740_s19 + $0x80] sm:$0xff]  ;;  %v394_v53 = vld [vmem:[%s5740_s19 + $0x78] sm:$0xff] }
  0xc5   : > { %v523_v61 = vadd.s32 64, %v395_v51 }
  0xc7   : > { %v5777_v10 = vpop.permute.xlu1 %719  ;;  %v5779_v13 = vpop.permute.xlu0 %716 }
  0xc8   : > { %1150 = vperm.xlu1 %5485, %v507_v0   ;;  %908 = vperm.xlu0 %5484, %v341_v5   ;;  %v388_v0 = vld [vmem:[%s5740_s19 + $0x48] sm:$0xff] }
  0xc9   : > { %v516_v9 = vadd.s32 64, %v388_v0  ;;  %v522_v0 = vadd.s32 64, %v394_v53 }
  0xcb   : > { %v5793_v26 = vpop.permute.xlu1 %725  ;;  %v5795_v29 = vpop.permute.xlu0 %722 }
  0xcc   : > { %1156 = vperm.xlu1 %5485, %v509_v14   ;;  %1153 = vperm.xlu0 %5484, %v508_v17   ;;  %v391_v14 = vld [vmem:[%s5740_s19 + $0x60] sm:$0xff]  ;;  %v390_v17 = vld [vmem:[%s5740_s19 + $0x58] sm:$0xff] }
  0xcd   : > { %v519_v25 = vadd.s32 64, %v391_v14 }
  0xcf   : > { %v5808_v42 = vpop.permute.xlu1 %731  ;;  %v5810_v45 = vpop.permute.xlu0 %728 }
  0xd0   : > { %1162 = vperm.xlu1 %5485, %v511_v30   ;;  %1159 = vperm.xlu0 %5484, %v510_v33   ;;  %v518_v30 = vadd.s32 64, %v390_v17  ;;  %v393_v33 = vld [vmem:[%s5740_s19 + $0x70] sm:$0xff] }
  0xd3   : > { %v5817_v54 = vpop.permute.xlu1 %737  ;;  %v5819_v57 = vpop.permute.xlu0 %734 }
  0xd4   : > { %1168 = vperm.xlu1 %5485, %v513_v47   ;;  %1165 = vperm.xlu0 %5484, %v512_v48   ;;  %v521_v47 = vadd.s32 64, %v393_v33  ;;  %v520_v48 = vadd.s32 64, %v392_v35  ;;  %v399_v33 = vld [vmem:[%s5740_s19 + $0xa0] sm:$0xff]  ;;  %v398_v35 = vld [vmem:[%s5740_s19 + $0x98] sm:$0xff] }
  0xd5   : > { %v527_v51 = vadd.s32 64, %v399_v33  ;;  %v526_v53 = vadd.s32 64, %v398_v35 }
  0xd7   : > { %v5823_v1 = vpop.permute.xlu1 %743  ;;  %v5825_v5 = vpop.permute.xlu0 %740 }
  0xd8   : > { %1174 = vperm.xlu1 %5485, %v515_v59   ;;  %1171 = vperm.xlu0 %5484, %v514_v60  }
  0xdb   : > { %v5829_v18 = vpop.permute.xlu1 %749  ;;  %v5831_v22 = vpop.permute.xlu0 %746 }
  0xdc   : > { %1180 = vperm.xlu1 %5485, %v517_v6   ;;  %1177 = vperm.xlu0 %5484, %v516_v9   ;;  %v397_v6 = vld [vmem:[%s5740_s19 + $0x90] sm:$0xff]  ;;  %v396_v9 = vld [vmem:[%s5740_s19 + $0x88] sm:$0xff] }
  0xdf   : > { %v5835_v36 = vpop.permute.xlu1 %755  ;;  %v5837_v39 = vpop.permute.xlu0 %752 }
  0xe0   : > { %8029 = vst [vmem:[#allocation2_spill] sm:$0xff] %v5835_v36  ;;  %1186 = vperm.xlu1 %5485, %v519_v25   ;;  %1183 = vperm.xlu0 %5484, %v518_v30   ;;  %v525_v25 = vadd.s32 64, %v397_v6  ;;  %v524_v30 = vadd.s32 64, %v396_v9 }
  0xe3   : > { %v5841_v59 = vpop.permute.xlu1 %761  ;;  %v5843_v60 = vpop.permute.xlu0 %758 }
  0xe4   : > { %8030 = vst [vmem:[#allocation3_spill] sm:$0xff] %v5841_v59  ;;  %8031 = vst [vmem:[#allocation4_spill] sm:$0xff] %v5843_v60  ;;  %1192 = vperm.xlu1 %5485, %v521_v47   ;;  %1189 = vperm.xlu0 %5484, %v520_v48   ;;  %v401_v59 = vld [vmem:[%s5740_s19 + $0xb0] sm:$0xff] }
  0xe5   : > { %v529_v6 = vadd.s32 64, %v401_v59  ;;  %v429_v60 = vld [vmem:[%s5740_s19 + $0x190] sm:$0xff] }
  0xe7   : > { %v5847_v14 = vpop.permute.xlu1 %767  ;;  %v5849_v17 = vpop.permute.xlu0 %764 }
  0xe8   : > { %8032 = vst [vmem:[#allocation5_spill] sm:$0xff] %v5847_v14  ;;  %8033 = vst [vmem:[#allocation6_spill] sm:$0xff] %v5849_v17  ;;  %1198 = vperm.xlu1 %5485, %v523_v61   ;;  %1195 = vperm.xlu0 %5484, %v522_v0   ;;  %v400_v14 = vld [vmem:[%s5740_s19 + $0xa8] sm:$0xff]  ;;  %v403_v17 = vld [vmem:[%s5740_s19 + $0xc0] sm:$0xff] }
  0xe9   : > { %v528_v9 = vadd.s32 64, %v400_v14  ;;  %v531_v33 = vadd.s32 64, %v403_v17 }
  0xeb   : > { %v5853_v47 = vpop.permute.xlu1 %773  ;;  %v5855_v48 = vpop.permute.xlu0 %770 }
  0xec   : > { %8034 = vst [vmem:[#allocation7_spill] sm:$0xff] %v5853_v47  ;;  %8035 = vst [vmem:[#allocation8_spill] sm:$0xff] %v5855_v48  ;;  %1204 = vperm.xlu1 %5485, %v525_v25   ;;  %1201 = vperm.xlu0 %5484, %v524_v30   ;;  %v402_v47 = vld [vmem:[%s5740_s19 + $0xb8] sm:$0xff]  ;;  %v405_v48 = vld [vmem:[%s5740_s19 + $0xd0] sm:$0xff] }
  0xed   : > { %v530_v35 = vadd.s32 64, %v402_v47  ;;  %v533_v14 = vadd.s32 64, %v405_v48 }
  0xef   : > { %v5859_v61 = vpop.permute.xlu1 %779  ;;  %v5861_v0 = vpop.permute.xlu0 %776 }
  0xf0   : > { %8036 = vst [vmem:[#allocation9_spill] sm:$0xff] %v5859_v61  ;;  %8037 = vst [vmem:[#allocation10_spill] sm:$0xff] %v5861_v0  ;;  %1210 = vperm.xlu1 %5485, %v527_v51   ;;  %1207 = vperm.xlu0 %5484, %v526_v53   ;;  %v404_v61 = vld [vmem:[%s5740_s19 + $0xc8] sm:$0xff]  ;;  %v407_v0 = vld [vmem:[%s5740_s19 + $0xe0] sm:$0xff] }
  0xf1   : > { %v532_v53 = vadd.s32 64, %v404_v61  ;;  %v535_v47 = vadd.s32 64, %v407_v0 }
  0xf3   : > { %v5865_v25 = vpop.permute.xlu1 %785  ;;  %v5867_v30 = vpop.permute.xlu0 %782 }
  0xf4   : > { %8038 = vst [vmem:[#allocation11_spill] sm:$0xff] %v5865_v25  ;;  %8039 = vst [vmem:[#allocation12_spill] sm:$0xff] %v5867_v30  ;;  %1216 = vperm.xlu1 %5485, %v529_v6   ;;  %1213 = vperm.xlu0 %5484, %v528_v9   ;;  %v406_v25 = vld [vmem:[%s5740_s19 + $0xd8] sm:$0xff]  ;;  %v409_v30 = vld [vmem:[%s5740_s19 + $0xf0] sm:$0xff] }
  0xf5   : > { %v534_v9 = vadd.s32 64, %v406_v25  ;;  %v537_v61 = vadd.s32 64, %v409_v30 }
  0xf7   : > { %v5871_v51 = vpop.permute.xlu1 %791  ;;  %v5873_v59 = vpop.permute.xlu0 %788 }
  0xf8   : > { %8040 = vst [vmem:[#allocation13_spill] sm:$0xff] %v5871_v51  ;;  %8041 = vst [vmem:[#allocation14_spill] sm:$0xff] %v5873_v59  ;;  %1222 = vperm.xlu1 %5485, %v531_v33   ;;  %1219 = vperm.xlu0 %5484, %v530_v35   ;;  %v408_v51 = vld [vmem:[%s5740_s19 + $0xe8] sm:$0xff]  ;;  %v411_v59 = vld [vmem:[%s5740_s19 + $0x100] sm:$0xff] }
  0xf9   : > { %v536_v35 = vadd.s32 64, %v408_v51  ;;  %v539_v25 = vadd.s32 64, %v411_v59 }
  0xfb   : > { %v5877_v6 = vpop.permute.xlu1 %797  ;;  %v5879_v17 = vpop.permute.xlu0 %794 }
  0xfc   : > { %8042 = vst [vmem:[#allocation15_spill] sm:$0xff] %v5877_v6  ;;  %8043 = vst [vmem:[#allocation16_spill] sm:$0xff] %v5879_v17  ;;  %1228 = vperm.xlu1 %5485, %v533_v14   ;;  %1225 = vperm.xlu0 %5484, %v532_v53   ;;  %v410_v6 = vld [vmem:[%s5740_s19 + $0xf8] sm:$0xff]  ;;  %v413_v17 = vld [vmem:[%s5740_s19 + $0x110] sm:$0xff] }
  0xfd   : > { %v538_v53 = vadd.s32 64, %v410_v6  ;;  %v541_v51 = vadd.s32 64, %v413_v17 }
  0xff   : > { %v5883_v33 = vpop.permute.xlu1 %803  ;;  %v5885_v48 = vpop.permute.xlu0 %800 }
 0x100   : > { %8044 = vst [vmem:[#allocation17_spill] sm:$0xff] %v5883_v33  ;;  %8045 = vst [vmem:[#allocation18_spill] sm:$0xff] %v5885_v48  ;;  %1234 = vperm.xlu1 %5485, %v535_v47   ;;  %1231 = vperm.xlu0 %5484, %v534_v9   ;;  %v412_v33 = vld [vmem:[%s5740_s19 + $0x108] sm:$0xff]  ;;  %v415_v48 = vld [vmem:[%s5740_s19 + $0x120] sm:$0xff] }
 0x101   : > { %v540_v9 = vadd.s32 64, %v412_v33  ;;  %v543_v6 = vadd.s32 64, %v415_v48 }
 0x103   : > { %v5889_v14 = vpop.permute.xlu1 %809  ;;  %v5891_v0 = vpop.permute.xlu0 %806 }
 0x104   : > { %8046 = vst [vmem:[#allocation19_spill] sm:$0xff] %v5889_v14  ;;  %8047 = vst [vmem:[#allocation20_spill] sm:$0xff] %v5891_v0  ;;  %1240 = vperm.xlu1 %5485, %v537_v61   ;;  %1237 = vperm.xlu0 %5484, %v536_v35   ;;  %v414_v14 = vld [vmem:[%s5740_s19 + $0x118] sm:$0xff]  ;;  %v417_v0 = vld [vmem:[%s5740_s19 + $0x130] sm:$0xff] }
 0x105   : > { %v542_v35 = vadd.s32 64, %v414_v14  ;;  %v545_v33 = vadd.s32 64, %v417_v0 }
 0x107   : > { %v5895_v47 = vpop.permute.xlu1 %815  ;;  %v5897_v30 = vpop.permute.xlu0 %812 }
 0x108   : > { %8048 = vst [vmem:[#allocation21_spill] sm:$0xff] %v5895_v47  ;;  %8049 = vst [vmem:[#allocation22_spill] sm:$0xff] %v5897_v30  ;;  %1246 = vperm.xlu1 %5485, %v539_v25   ;;  %1243 = vperm.xlu0 %5484, %v538_v53   ;;  %v416_v47 = vld [vmem:[%s5740_s19 + $0x128] sm:$0xff]  ;;  %v419_v30 = vld [vmem:[%s5740_s19 + $0x140] sm:$0xff] }
 0x109   : > { %v544_v53 = vadd.s32 64, %v416_v47  ;;  %v547_v14 = vadd.s32 64, %v419_v30 }
 0x10b   : > { %v5901_v61 = vpop.permute.xlu1 %821  ;;  %v5903_v59 = vpop.permute.xlu0 %818 }
 0x10c   : > { %8050 = vst [vmem:[#allocation23_spill] sm:$0xff] %v5901_v61  ;;  %8051 = vst [vmem:[#allocation24_spill] sm:$0xff] %v5903_v59  ;;  %1252 = vperm.xlu1 %5485, %v541_v51   ;;  %1249 = vperm.xlu0 %5484, %v540_v9   ;;  %v418_v61 = vld [vmem:[%s5740_s19 + $0x138] sm:$0xff]  ;;  %v421_v59 = vld [vmem:[%s5740_s19 + $0x150] sm:$0xff] }
 0x10d   : > { %v546_v9 = vadd.s32 64, %v418_v61  ;;  %v549_v47 = vadd.s32 64, %v421_v59  ;;  %v424_v59 = vld [vmem:[%s5740_s19 + $0x168] sm:$0xff] }
 0x10f   : > { %v5907_v25 = vpop.permute.xlu1 %827  ;;  %v5909_v17 = vpop.permute.xlu0 %824 }
 0x110   : > { %8052 = vst [vmem:[#allocation25_spill] sm:$0xff] %v5907_v25  ;;  %8053 = vst [vmem:[#allocation26_spill] sm:$0xff] %v5909_v17  ;;  %1258 = vperm.xlu1 %5485, %v543_v6   ;;  %1255 = vperm.xlu0 %5484, %v542_v35   ;;  %v420_v25 = vld [vmem:[%s5740_s19 + $0x148] sm:$0xff]  ;;  %v423_v35 = vld [vmem:[%s5740_s19 + $0x160] sm:$0xff] }
 0x111   : > { %v548_v6 = vadd.s32 64, %v420_v25 }
 0x113   : > { %v5913_v51 = vpop.permute.xlu1 %833  ;;  %v5915_v48 = vpop.permute.xlu0 %830 }
 0x114   : > { %8054 = vst [vmem:[#allocation27_spill] sm:$0xff] %v5913_v51  ;;  %8055 = vst [vmem:[#allocation28_spill] sm:$0xff] %v5915_v48  ;;  %1264 = vperm.xlu1 %5485, %v545_v33   ;;  %1261 = vperm.xlu0 %5484, %v544_v53   ;;  %v422_v51 = vld [vmem:[%s5740_s19 + $0x158] sm:$0xff]  ;;  %v5928_v33 = vld [vmem:[%s7958_s4] sm:$0xff]   ;;  %v551_v53 = vadd.s32 64, %v423_v35 }
 0x115   : > { %5058 = vmatprep.subr.bf16.mxu0 %v5928_v33  ;;  %v427_v48 = vld [vmem:[%s5740_s19 + $0x180] sm:$0xff] }
 0x116   : > { %v555_v35 = vadd.s32 64, %v427_v48 }
 0x117   : > { %v5919_v17 = vpop.permute.xlu1 %839  ;;  %v5921_v0 = vpop.permute.xlu0 %836 }
 0x118   : > { %8056 = vst [vmem:[#allocation29_spill] sm:$0xff] %v5919_v17  ;;  %8057 = vst [vmem:[#allocation30_spill] sm:$0xff] %v5921_v0  ;;  %1270 = vperm.xlu1 %5485, %v547_v14   ;;  %1267 = vperm.xlu0 %5484, %v546_v9   ;;  %v550_v14 = vadd.s32 64, %v422_v51  ;;  %v425_v9 = vld [vmem:[%s5740_s19 + $0x170] sm:$0xff]  ;;  %v552_v0 = vadd.s32 64, %v424_v59 }
 0x11b   : > { %v5930_v30 = vpop.permute.xlu1 %845  ;;  %v5932_v61 = vpop.permute.xlu0 %842 }
 0x11c   : > { %8058 = vst [vmem:[#allocation31_spill] sm:$0xff] %v5930_v30  ;;  %8059 = vst [vmem:[#allocation32_spill] sm:$0xff] %v5932_v61  ;;  %1276 = vperm.xlu1 %5485, %v549_v47   ;;  %1273 = vperm.xlu0 %5484, %v548_v6   ;;  %v553_v30 = vadd.s32 64, %v425_v9  ;;  %v426_v47 = vld [vmem:[%s5740_s19 + $0x178] sm:$0xff]  ;;  %v557_v9 = vadd.s32 64, %v429_v60 }
 0x11d   : > { %v554_v61 = vadd.s32 64, %v426_v47 }
 0x11f   : > { %v5937_v25 = vpop.permute.xlu1 %851  ;;  %v5939_v17 = vpop.permute.xlu0 %848 }
 0x120   : > { %8060 = vst [vmem:[#allocation33_spill] sm:$0xff] %v5937_v25  ;;  %8061 = vst [vmem:[#allocation34_spill] sm:$0xff] %v5939_v17  ;;  %1282 = vperm.xlu1 %5485, %v551_v53   ;;  %1279 = vperm.xlu0 %5484, %v550_v14   ;;  %v428_v25 = vld [vmem:[%s5740_s19 + $0x188] sm:$0xff]  ;;  %v431_v17 = vld [vmem:[%s5740_s19 + $0x1a0] sm:$0xff] }
 0x121   : > { %v556_v59 = vadd.s32 64, %v428_v25 }
 0x123   : > { %v5943_v6 = vpop.permute.xlu1 %857  ;;  %v5945_v51 = vpop.permute.xlu0 %854 }
 0x124   : > { %8062 = vst [vmem:[#allocation35_spill] sm:$0xff] %v5943_v6  ;;  %8063 = vst [vmem:[#allocation36_spill] sm:$0xff] %v5945_v51  ;;  %1288 = vperm.xlu1 %5485, %v553_v30   ;;  %1285 = vperm.xlu0 %5484, %v552_v0   ;;  %v430_v6 = vld [vmem:[%s5740_s19 + $0x198] sm:$0xff]  ;;  %v559_v0 = vadd.s32 64, %v431_v17  ;;  %v433_v51 = vld [vmem:[%s5740_s19 + $0x1b0] sm:$0xff] }
 0x125   : > { %v558_v47 = vadd.s32 64, %v430_v6 }
 0x127   : > { %v5949_v53 = vpop.permute.xlu1 %863  ;;  %v5951_v14 = vpop.permute.xlu0 %860 }
 0x128   : > { %8064 = vst [vmem:[#allocation37_spill] sm:$0xff] %v5949_v53  ;;  %8065 = vst [vmem:[#allocation38_spill] sm:$0xff] %v5951_v14  ;;  %1294 = vperm.xlu1 %5485, %v555_v35   ;;  %1291 = vperm.xlu0 %5484, %v554_v61   ;;  %v432_v53 = vld [vmem:[%s5740_s19 + $0x1a8] sm:$0xff]  ;;  %v561_v61 = vadd.s32 64, %v433_v51  ;;  %v435_v14 = vld [vmem:[%s5740_s19 + $0x1c0] sm:$0xff] }
 0x129   : > { %v560_v25 = vadd.s32 64, %v432_v53  ;;  %v563_v6 = vadd.s32 64, %v435_v14 }
 0x12b   : > { %v5955_v30 = vpop.permute.xlu1 %869  ;;  %v5957_v48 = vpop.permute.xlu0 %866 }
 0x12c   : > { %8066 = vst [vmem:[#allocation39_spill] sm:$0xff] %v5955_v30  ;;  %8067 = vst [vmem:[#allocation40_spill] sm:$0xff] %v5957_v48  ;;  %1300 = vperm.xlu1 %5485, %v557_v9   ;;  %1297 = vperm.xlu0 %5484, %v556_v59   ;;  %v434_v30 = vld [vmem:[%s5740_s19 + $0x1b8] sm:$0xff]  ;;  %v437_v48 = vld [vmem:[%s5740_s19 + $0x1d0] sm:$0xff] }
 0x12d   : > { %v562_v59 = vadd.s32 64, %v434_v30  ;;  %v565_v53 = vadd.s32 64, %v437_v48 }
 0x12f   : > { %v5961_v35 = vpop.permute.xlu1 %875  ;;  %v5963_v60 = vpop.permute.xlu0 %872 }
 0x130   : > { %8068 = vst [vmem:[#allocation41_spill] sm:$0xff] %v5961_v35  ;;  %8069 = vst [vmem:[#allocation42_spill] sm:$0xff] %v5963_v60  ;;  %1306 = vperm.xlu1 %5485, %v559_v0   ;;  %1303 = vperm.xlu0 %5484, %v558_v47   ;;  %v436_v35 = vld [vmem:[%s5740_s19 + $0x1c8] sm:$0xff]  ;;  %v439_v60 = vld [vmem:[%s5740_s19 + $0x1e0] sm:$0xff] }
 0x131   : > { %v564_v47 = vadd.s32 64, %v436_v35  ;;  %v567_v30 = vadd.s32 64, %v439_v60  ;;  %v635_v60 = vlaneseq }
 0x133   : > { %v5967_v9 = vpop.permute.xlu1 %881  ;;  %v5969_v17 = vpop.permute.xlu0 %878 }
 0x134   : > { %8070 = vst [vmem:[#allocation43_spill] sm:$0xff] %v5967_v9  ;;  %8071 = vst [vmem:[#allocation44_spill] sm:$0xff] %v5969_v17  ;;  %1312 = vperm.xlu1 %5485, %v561_v61   ;;  %1309 = vperm.xlu0 %5484, %v560_v25   ;;  %v438_v9 = vld [vmem:[%s5740_s19 + $0x1d8] sm:$0xff]  ;;  %v441_v17 = vld [vmem:[%s5740_s19 + $0x1f0] sm:$0xff] }
 0x135   : > { %v566_v25 = vadd.s32 64, %v438_v9  ;;  %v569_v35 = vadd.s32 64, %v441_v17  ;;  %v5999_v17 = vand.u32 127, %v635_v60 }
 0x137   : > { %v5973_v0 = vpop.permute.xlu1 %887  ;;  %v5975_v51 = vpop.permute.xlu0 %884  ;;  %vm1021_vm1 = vcmp.eq.s32.totalorder %v5999_v17, %v5634_v4  ;;  %vm1022_vm3 = vcmp.eq.s32.totalorder %v5999_v17, %v5640_v8  ;;  %vm1023_vm8 = vcmp.eq.s32.totalorder %v5999_v17, %v5632_v3  ;;  %v8016_v8 = vmov 1.0|1.0   ;;  %v451_v3 = vld [vmem:[%s5740_s19 + $0x240] sm:$0xff] }
 0x138   : > { %8072 = vst [vmem:[#allocation45_spill] sm:$0xff] %v5973_v0  ;;  %8073 = vst [vmem:[#allocation46_spill] sm:$0xff] %v5975_v51  ;;  %1318 = vperm.xlu1 %5485, %v563_v6   ;;  %1315 = vperm.xlu0 %5484, %v562_v59   ;;  %v440_v0 = vld [vmem:[%s5740_s19 + $0x1e8] sm:$0xff]  ;;  %v443_v59 = vld [vmem:[%s5740_s19 + $0x200] sm:$0xff]  ;;  %vm1024_vm10 = vcmp.eq.s32.totalorder %v5999_v17, %v5638_v7  ;;  %vm1025_vm15 = vcmp.eq.s32.totalorder %v5999_v17, %v5646_v12 }
 0x139   : > { %v568_v6 = vadd.s32 64, %v440_v0  ;;  %v571_v9 = vadd.s32 64, %v443_v59  ;;  %v5503_v7 = vld [vmem:[%s7958_s4 + $0x8] sm:$0xff]   ;;  %v453_v12 = vld [vmem:[%s5740_s19 + $0x250] sm:$0xff] }
 0x13b   : > { %v5979_v61 = vpop.permute.xlu1 %893  ;;  %v5981_v14 = vpop.permute.xlu0 %890 }
 0x13c   : > { %8074 = vst [vmem:[#allocation47_spill] sm:$0xff] %v5979_v61  ;;  %8075 = vst [vmem:[#allocation48_spill] sm:$0xff] %v5981_v14  ;;  %1324 = vperm.xlu1 %5485, %v565_v53   ;;  %1321 = vperm.xlu0 %5484, %v564_v47   ;;  %v442_v61 = vld [vmem:[%s5740_s19 + $0x1f8] sm:$0xff]  ;;  %v444_v14 = vld [vmem:[%s5740_s19 + $0x208] sm:$0xff] }
 0x13d   : > { %v570_v47 = vadd.s32 64, %v442_v61 }
 0x13f   : > { %v5985_v51 = vpop.permute.xlu1 %899  ;;  %v5987_v48 = vpop.permute.xlu0 %896 }
 0x140   : > { %8076 = vst [vmem:[#allocation49_spill] sm:$0xff] %v5985_v51  ;;  %8077 = vst [vmem:[#allocation50_spill] sm:$0xff] %v5987_v48  ;;  %1330 = vperm.xlu1 %5485, %v567_v30   ;;  %1327 = vperm.xlu0 %5484, %v566_v25   ;;  %v445_v51 = vld [vmem:[%s5740_s19 + $0x210] sm:$0xff]  ;;  %v572_v25 = vadd.s32 64, %v444_v14 }
 0x141   : > { %v573_v0 = vadd.s32 64, %v445_v51  ;;  %v449_v14 = vld [vmem:[%s5740_s19 + $0x230] sm:$0xff] }
 0x143   : > { %v5991_v36 = vpop.permute.xlu1 %905  ;;  %v5993_v53 = vpop.permute.xlu0 %902 }
 0x144   : > { %8078 = vst [vmem:[#allocation51_spill] sm:$0xff] %v5991_v36  ;;  %1336 = vperm.xlu1 %5485, %v569_v35   ;;  %1333 = vperm.xlu0 %5484, %v568_v6   ;;  %v447_v36 = vld [vmem:[%s5740_s19 + $0x220] sm:$0xff]  ;;  %v446_v35 = vld [vmem:[%s5740_s19 + $0x218] sm:$0xff] }
 0x145   : > { %v575_v51 = vadd.s32 64, %v447_v36  ;;  %v574_v61 = vadd.s32 64, %v446_v35  ;;  %v577_v36 = vadd.s32 64, %v449_v14 }
 0x147   : > { %v1151_v48 = vpop.permute.xlu1 %1150  ;;  %v5997_v30 = vpop.permute.xlu0 %908 }
 0x148   : > { %1342 = vperm.xlu1 %5485, %v571_v9   ;;  %1339 = vperm.xlu0 %5484, %v570_v47   ;;  %vm1533_vm0 = vcmp.eq.s32.totalorder %v5999_v17, %v1151_v48  ;;  %v448_v48 = vld [vmem:[%s5740_s19 + $0x228] sm:$0xff]  ;;  %v8173_v9 = vld [vmem:[#allocation29_spill] sm:$0xff] }
 0x149   : > { %vm1661_vm4 = vmor %vm1021_vm1, %vm1533_vm0  ;;  %v576_v47 = vadd.s32 64, %v448_v48  ;;  %vm1026_vm1 = vcmp.eq.s32.totalorder %v5999_v17, %v5644_v11  ;;  %v8181_v48 = vld [vmem:[#allocation33_spill] sm:$0xff] }
 0x14b   : > { %v1157_v6 = vpop.permute.xlu1 %1156  ;;  %v1154_v59 = vpop.permute.xlu0 %1153 }
 0x14c   : > { %vm1534_vm2 = vcmp.eq.s32.totalorder %v5999_v17, %v1154_v59  ;;  %1348 = vperm.xlu1 %5485, %v573_v0   ;;  %1345 = vperm.xlu0 %5484, %v572_v25   ;;  %vm1535_vm5 = vcmp.eq.s32.totalorder %v5999_v17, %v1157_v6  ;;  %v450_v0 = vld [vmem:[%s5740_s19 + $0x238] sm:$0xff]  ;;  %v579_v59 = vadd.s32 64, %v451_v3 }
 0x14d   : > { %vm1662_vm6 = vmor %vm1022_vm3, %vm1534_vm2  ;;  %v5505_v3 = vld [vmem:[%s7958_s4 + $0x18] sm:$0xff]  }
 0x14e   : > { %vm6012_vm7 = vmpackc.low %vm1662_vm6, %vm1661_vm4  ;;  %vm1027_vm6 = vcmp.eq.s32.totalorder %v5999_v17, %v5652_v16 }
 0x14f   : > { %v1163_v60 = vpop.permute.xlu1 %1162  ;;  %v1160_v4 = vpop.permute.xlu0 %1159  ;;  %4786 = vmatprep.mubr.msk.bf16.mxu1 %vm6012_vm7, %v8016_v8  ;;  %4930 = vmatprep.mubr.msk.bf16.mxu0 %vm6012_vm7, %v8016_v8  ;;  %vm1663_vm11 = vmor %vm1023_vm8, %vm1535_vm5 }
 0x150   : > { %vm1536_vm9 = vcmp.eq.s32.totalorder %v5999_v17, %v1160_v4  ;;  %1354 = vperm.xlu1 %5485, %v575_v51   ;;  %1351 = vperm.xlu0 %5484, %v574_v61   ;;  %vm1537_vm12 = vcmp.eq.s32.totalorder %v5999_v17, %v1163_v60  ;;  %v578_v51 = vadd.s32 64, %v450_v0  ;;  %v452_v61 = vld [vmem:[%s5740_s19 + $0x248] sm:$0xff]  ;;  %v5504_v60 = vld [vmem:[%s7958_s4 + $0x10] sm:$0xff]   ;;  %v454_v4 = vld [vmem:[%s5740_s19 + $0x258] sm:$0xff] }
 0x151   : > { %vm1664_vm13 = vmor %vm1024_vm10, %vm1536_vm9  ;;  %vm1028_vm9 = vcmp.eq.s32.totalorder %v5999_v17, %v5650_v15  ;;  %v580_v16 = vadd.s32 64, %v452_v61  ;;  %v457_v0 = vld [vmem:[%s5740_s19 + $0x270] sm:$0xff] }
 0x152   : > { %vm6030_vm14 = vmpackc.low %vm1664_vm13, %vm1663_vm11 }
 0x153   : > { %v1169_v25 = vpop.permute.xlu1 %1168  ;;  %v1166_v6 = vpop.permute.xlu0 %1165  ;;  %4787 = vmatmul.mubr.msk.bf16.vlgmr.msra.gmra.mrb[0].mxu1 %vm6030_vm14, %v8016_v8  ;;  %4931 = vmatmul.mubr.msk.bf16.vlgmr.msra.gmra.mrb[0].mxu0 %vm6030_vm14, %v8016_v8  ;;  %vm1665_vm2 = vmor %vm1025_vm15, %vm1537_vm12  ;;  %vm1029_vm15 = vcmp.eq.s32.totalorder %v5999_v17, %v5658_v20  ;;  %v582_v20 = vadd.s32 64, %v454_v4  ;;  %v5508_v4 = vld [vmem:[%s7958_s4 + $0x30] sm:$0xff]  }
 0x154   : > { %vm1538_vm0 = vcmp.eq.s32.totalorder %v5999_v17, %v1166_v6  ;;  %1360 = vperm.xlu1 %5485, %v577_v36   ;;  %1357 = vperm.xlu0 %5484, %v576_v47   ;;  %vm1539_vm3 = vcmp.eq.s32.totalorder %v5999_v17, %v1169_v25  ;;  %v456_v25 = vld [vmem:[%s5740_s19 + $0x268] sm:$0xff] }
 0x155   : > { %vm1666_vm4 = vmor %vm1026_vm1, %vm1538_vm0  ;;  %5210 = vmatpush3.bf16.msra.mxu1 %v5684_v34  ;;  %5059 = vmatpush3.bf16.msra.mxu0 %v5928_v33  ;;  %v581_v34 = vadd.s32 64, %v453_v12  ;;  %v455_v33 = vld [vmem:[%s5740_s19 + $0x260] sm:$0xff]  ;;  %vm1030_vm1 = vcmp.eq.s32.totalorder %v5999_v17, %v5656_v19  ;;  %v458_v12 = vld [vmem:[%s5740_s19 + $0x278] sm:$0xff] }
 0x156   : > { %vm6053_vm5 = vmpackc.low %vm1666_vm4, %vm1665_vm2  ;;  %5060 = vmatprep.subr.bf16.mxu0 %v5503_v7  ;;  %5203 = vmatprep.subr.bf16.mxu1 %v5700_v40 }
 0x157   : > { %v1175_v14 = vpop.permute.xlu1 %1174  ;;  %v1172_v11 = vpop.permute.xlu0 %1171  ;;  %4790 = vmatprep.mubr.msk.bf16.mxu1 %vm6053_vm5, %v8016_v8  ;;  %4934 = vmatprep.mubr.msk.bf16.mxu0 %vm6053_vm5, %v8016_v8  ;;  %vm1667_vm10 = vmor %vm1027_vm6, %vm1539_vm3 }
 0x158   : > { %vm1540_vm8 = vcmp.eq.s32.totalorder %v5999_v17, %v1172_v11  ;;  %1366 = vperm.xlu1 %5485, %v579_v59   ;;  %1363 = vperm.xlu0 %5484, %v578_v51   ;;  %vm1541_vm11 = vcmp.eq.s32.totalorder %v5999_v17, %v1175_v14  ;;  %v5506_v59 = vld [vmem:[%s7958_s4 + $0x20] sm:$0xff]   ;;  %v5507_v11 = vld [vmem:[%s7958_s4 + $0x28] sm:$0xff]  }
 0x159   : > { %vm1668_vm12 = vmor %vm1028_vm9, %vm1540_vm8  ;;  %5061 = vmatpush3.bf16.msra.mxu0 %v5503_v7  ;;  %5211 = vmatpush3.bf16.msra.mxu1 %v5700_v40  ;;  %v583_v40 = vadd.s32 64, %v455_v33  ;;  %vm1031_vm8 = vcmp.eq.s32.totalorder %v5999_v17, %v5664_v24  ;;  %v584_v24 = vadd.s32 64, %v456_v25  ;;  %v459_v51 = vld [vmem:[%s5740_s19 + $0x280] sm:$0xff]  ;;  %v464_v25 = vld [vmem:[%s5740_s19 + $0x2a8] sm:$0xff] }
 0x15a   : > { %vm6078_vm13 = vmpackc.low %vm1668_vm12, %vm1667_vm10  ;;  %5062 = vmatprep.subr.bf16.mxu0 %v5504_v60  ;;  %5204 = vmatprep.subr.bf16.mxu1 %v5716_v46  ;;  %vm1032_vm10 = vcmp.eq.s32.totalorder %v5999_v17, %v5662_v23  ;;  %v8189_v7 = vld [vmem:[#allocation37_spill] sm:$0xff] }
 0x15b   : > { %v1181_v36 = vpop.permute.xlu1 %1180  ;;  %v1178_v15 = vpop.permute.xlu0 %1177  ;;  %4791 = vmatmul.mubr.msk.bf16.gmra.mrb[4].mxu1 %vm6078_vm13, %v8016_v8  ;;  %4935 = vmatmul.mubr.msk.bf16.gmra.mrb[4].mxu0 %vm6078_vm13, %v8016_v8  ;;  %vm1669_vm2 = vmor %vm1029_vm15, %vm1541_vm11  ;;  %v8197_v33 = vld [vmem:[#allocation41_spill] sm:$0xff] }
 0x15c   : > { %vm1542_vm0 = vcmp.eq.s32.totalorder %v5999_v17, %v1178_v15  ;;  %1372 = vperm.xlu1 %5485, %v581_v34   ;;  %1369 = vperm.xlu0 %5484, %v580_v16   ;;  %vm1543_vm3 = vcmp.eq.s32.totalorder %v5999_v17, %v1181_v36  ;;  %v460_v34 = vld [vmem:[%s5740_s19 + $0x288] sm:$0xff]  ;;  %v463_v36 = vld [vmem:[%s5740_s19 + $0x2a0] sm:$0xff]  ;;  %v462_v15 = vld [vmem:[%s5740_s19 + $0x298] sm:$0xff] }
 0x15d   : > { %vm1670_vm4 = vmor %vm1030_vm1, %vm1542_vm0  ;;  %5063 = vmatpush3.bf16.msra.mxu0 %v5504_v60  ;;  %5212 = vmatpush3.bf16.msra.mxu1 %v5716_v46  ;;  %v585_v46 = vadd.s32 64, %v457_v0  ;;  %vm1033_vm1 = vcmp.eq.s32.totalorder %v5999_v17, %v5670_v28  ;;  %v586_v28 = vadd.s32 64, %v458_v12  ;;  %v461_v60 = vld [vmem:[%s5740_s19 + $0x290] sm:$0xff] }
 0x15e   : > { %vm6103_vm6 = vmpackc.low %vm1670_vm4, %vm1669_vm2  ;;  %5064 = vmatprep.subr.bf16.mxu0 %v5505_v3  ;;  %5205 = vmatprep.subr.bf16.mxu1 %v5732_v52  ;;  %v465_v0 = vld [vmem:[%s5740_s19 + $0x2b0] sm:$0xff] }
 0x15f   : > { %v1187_v6 = vpop.permute.xlu1 %1186  ;;  %v1184_v19 = vpop.permute.xlu0 %1183  ;;  %4794 = vmatprep.mubr.msk.bf16.mxu1 %vm6103_vm6, %v8016_v8  ;;  %4938 = vmatprep.mubr.msk.bf16.mxu0 %vm6103_vm6, %v8016_v8  ;;  %vm1671_vm11 = vmor %vm1031_vm8, %vm1543_vm3  ;;  %vm1034_vm3 = vcmp.eq.s32.totalorder %v5999_v17, %v5668_v27 }
 0x160   : > { %vm1544_vm9 = vcmp.eq.s32.totalorder %v5999_v17, %v1184_v19  ;;  %1378 = vperm.xlu1 %5485, %v583_v40   ;;  %1375 = vperm.xlu0 %5484, %v582_v20   ;;  %vm1545_vm12 = vcmp.eq.s32.totalorder %v5999_v17, %v1187_v6  ;;  %v8093_v40 = vmov 0  ;;  %v5509_v20 = vld [vmem:[%s7958_s4 + $0x38] sm:$0xff]   ;;  %v8095_v19 = vmov 0 }
 0x161   : > { %vm1672_vm15 = vmor %vm1032_vm10, %vm1544_vm9  ;;  %5065 = vmatpush3.bf16.msra.mxu0 %v5505_v3  ;;  %5213 = vmatpush3.bf16.msra.mxu1 %v5732_v52  ;;  %v587_v52 = vadd.s32 64, %v459_v51  ;;  %v8097_v51 = vmov 0 }
 0x162   : > { %vm6128_vm0 = vmpackc.low %vm1672_vm15, %vm1671_vm11  ;;  %5066 = vmatprep.subr.bf16.mxu0 %v5506_v59  ;;  %5206 = vmatprep.subr.bf16.mxu1 %v5754_v58  ;;  %vm1035_vm11 = vcmp.eq.s32.totalorder %v5999_v17, %v5676_v32  ;;  %vm1036_vm15 = vcmp.eq.s32.totalorder %v5999_v17, %v5674_v31  ;;  %v588_v32 = vadd.s32 64, %v460_v34  ;;  %v8101_v34 = vmov 0 }
 0x163   : > { %v1193_v61 = vpop.permute.xlu1 %1192  ;;  %v1190_v23 = vpop.permute.xlu0 %1189  ;;  %4795 = vmatmul.mubr.msk.bf16.gmra.mrb[8].mxu1 %vm6128_vm0, %v8016_v8  ;;  %4939 = vmatmul.mubr.msk.bf16.gmra.mrb[8].mxu0 %vm6128_vm0, %v8016_v8  ;;  %vm1673_vm4 = vmor %vm1033_vm1, %vm1545_vm12 }
 0x164   : > { %vm1546_vm2 = vcmp.eq.s32.totalorder %v5999_v17, %v1190_v23  ;;  %1384 = vperm.xlu1 %5485, %v585_v46   ;;  %1381 = vperm.xlu0 %5484, %v584_v24   ;;  %vm1547_vm8 = vcmp.eq.s32.totalorder %v5999_v17, %v1193_v61  ;;  %v466_v46 = vld [vmem:[%s5740_s19 + $0x2b8] sm:$0xff]  ;;  %v8099_v23 = vmov 0 }
 0x165   : > { %vm1674_vm9 = vmor %vm1034_vm3, %vm1546_vm2  ;;  %5067 = vmatpush3.bf16.msra.mxu0 %v5506_v59  ;;  %5214 = vmatpush3.bf16.msra.mxu1 %v5754_v58  ;;  %v589_v58 = vadd.s32 64, %v461_v60  ;;  %v467_v59 = vld [vmem:[%s5740_s19 + $0x2c0] sm:$0xff]  ;;  %v594_v12 = vadd.s32 64, %v466_v46 }
 0x166   : > { %vm6153_vm10 = vmpackc.low %vm1674_vm9, %vm1673_vm4  ;;  %5068 = vmatprep.subr.bf16.mxu0 %v5507_v11  ;;  %5207 = vmatprep.subr.bf16.mxu1 %v5771_v2 }
 0x167   : > { %v1199_v16 = vpop.permute.xlu1 %1198  ;;  %v1196_v27 = vpop.permute.xlu0 %1195  ;;  %4798 = vmatprep.mubr.msk.bf16.mxu1 %vm6153_vm10, %v8016_v8  ;;  %4942 = vmatprep.mubr.msk.bf16.mxu0 %vm6153_vm10, %v8016_v8  ;;  %vm1675_vm1 = vmor %vm1035_vm11, %vm1547_vm8  ;;  %vm1037_vm8 = vcmp.eq.s32.totalorder %v5999_v17, %v5691_v38  ;;  %vm1038_vm11 = vcmp.eq.s32.totalorder %v5999_v17, %v5689_v37  ;;  %v590_v38 = vadd.s32 64, %v462_v15 }
 0x168   : > { %vm1548_vm12 = vcmp.eq.s32.totalorder %v5999_v17, %v1196_v27  ;;  %1390 = vperm.xlu1 %5485, %v587_v52   ;;  %1387 = vperm.xlu0 %5484, %v586_v28   ;;  %vm1549_vm2 = vcmp.eq.s32.totalorder %v5999_v17, %v1199_v16  ;;  %v469_v28 = vld [vmem:[%s5740_s19 + $0x2d0] sm:$0xff] }
 0x169   : > { %vm1676_vm3 = vmor %vm1036_vm15, %vm1548_vm12  ;;  %5069 = vmatpush3.bf16.msra.mxu0 %v5507_v11  ;;  %5215 = vmatpush3.bf16.msra.mxu1 %v5771_v2  ;;  %v591_v2 = vadd.s32 64, %v463_v36  ;;  %v471_v36 = vld [vmem:[%s5740_s19 + $0x2e0] sm:$0xff] }
 0x16a   : > { %vm6178_vm4 = vmpackc.low %vm1676_vm3, %vm1675_vm1  ;;  %5070 = vmatprep.subr.bf16.mxu0 %v5508_v4  ;;  %5208 = vmatprep.subr.bf16.mxu1 %v5788_v21 }
 0x16b   : > { %v1205_v3 = vpop.permute.xlu1 %1204  ;;  %v8094_v40 = vsel %vm6178_vm4, 4294967295, %v8093_v40  ;;  %v1202_v31 = vpop.permute.xlu0 %1201  ;;  %4799 = vmatmul.mubr.msk.bf16.gmra.mrb[12].mxu1 %vm6178_vm4, %v8016_v8  ;;  %4943 = vmatmul.mubr.msk.bf16.gmra.mrb[12].mxu0 %vm6178_vm4, %v8016_v8  ;;  %vm1677_vm12 = vmor %vm1037_vm8, %vm1549_vm2  ;;  %vm1039_vm2 = vcmp.eq.s32.totalorder %v5999_v17, %v5707_v44  ;;  %v592_v44 = vadd.s32 64, %v464_v25  ;;  %v473_v25 = vld [vmem:[%s5740_s19 + $0x2f0] sm:$0xff] }
 0x16c   : > { %vm1550_vm9 = vcmp.eq.s32.totalorder %v5999_v17, %v1202_v31  ;;  %1396 = vperm.xlu1 %5485, %v589_v58   ;;  %1393 = vperm.xlu0 %5484, %v588_v32   ;;  %vm1551_vm15 = vcmp.eq.s32.totalorder %v5999_v17, %v1205_v3  ;;  %v343_v32 = vld [vmem:[%s5564_s24 + $0x2e0] sm:$0xff]  ;;  %v8105_v3 = vmov 0 }
 0x16d   : > { %vm1678_vm1 = vmor %vm1038_vm11, %vm1550_vm9  ;;  %5071 = vmatpush3.bf16.msra.mxu0 %v5508_v4  ;;  %5216 = vmatpush3.bf16.msra.mxu1 %v5788_v21  ;;  %vm1040_vm9 = vcmp.eq.s32.totalorder %v5999_v17, %v5705_v43  ;;  %v593_v21 = vadd.s32 64, %v465_v0  ;;  %v8103_v4 = vmov 0  ;;  %v345_v0 = vld [vmem:[%s5564_s24 + $0x2f0] sm:$0xff] }
 0x16e   : > { %vm6203_vm3 = vmpackc.low %vm1678_vm1, %vm1677_vm12  ;;  %5072 = vmatprep.subr.bf16.mxu0 %v5509_v20  ;;  %5209 = vmatprep.subr.bf16.mxu1 %v5806_v41 }
 0x16f   : > { %v1211_v6 = vpop.permute.xlu1 %1210  ;;  %v8096_v19 = vsel %vm6203_vm3, 4294967295, %v8095_v19  ;;  %v1208_v37 = vpop.permute.xlu0 %1207  ;;  %4802 = vmatprep.mubr.msk.bf16.mxu1 %vm6203_vm3, %v8016_v8  ;;  %4946 = vmatprep.mubr.msk.bf16.mxu0 %vm6203_vm3, %v8016_v8  ;;  %vm1679_vm11 = vmor %vm1039_vm2, %vm1551_vm15  ;;  %vm1041_vm15 = vcmp.eq.s32.totalorder %v5999_v17, %v5723_v50  ;;  %v468_v50 = vld [vmem:[%s5740_s19 + $0x2c8] sm:$0xff] }
 0x170   : > { %vm1552_vm8 = vcmp.eq.s32.totalorder %v5999_v17, %v1208_v37  ;;  %1402 = vperm.xlu1 %5485, %v591_v2   ;;  %1399 = vperm.xlu0 %5484, %v590_v38   ;;  %vm1553_vm12 = vcmp.eq.s32.totalorder %v5999_v17, %v1211_v6  ;;  %v596_v52 = vadd.s32 64, %v468_v50  ;;  %v8107_v2 = vmov 0 }
 0x171   : > { %vm1680_vm1 = vmor %vm1040_vm9, %vm1552_vm8  ;;  %5073 = vmatpush3.bf16.msra.mxu0 %v5509_v20  ;;  %5217 = vmatpush3.bf16.msra.mxu1 %v5806_v41  ;;  %vm1042_vm8 = vcmp.eq.s32.totalorder %v5999_v17, %v5721_v49  ;;  %v595_v41 = vadd.s32 64, %v467_v59  ;;  %v342_v49 = vld [vmem:[%s5564_s24 + $0x2d8] sm:$0xff]  ;;  %v8109_v37 = vmov 0  ;;  %v8111_v59 = vmov 0 }
 0x172   : > { %vm6225_vm3 = vmpackc.low %vm1680_vm1, %vm1679_vm11 }
 0x173   : > { %v1217_v24 = vpop.permute.xlu1 %1216  ;;  %v8098_v51 = vsel %vm6225_vm3, 4294967295, %v8097_v51  ;;  %v1214_v43 = vpop.permute.xlu0 %1213  ;;  %4803 = vmatmul.mubr.msk.bf16.gmra.mrb[16].mxu1 %vm6225_vm3, %v8016_v8  ;;  %4947 = vmatmul.mubr.msk.bf16.gmra.mrb[16].mxu0 %vm6225_vm3, %v8016_v8  ;;  %vm1681_vm9 = vmor %vm1041_vm15, %vm1553_vm12  ;;  %vm1043_vm12 = vcmp.eq.s32.totalorder %v5999_v17, %v5745_v56  ;;  %v470_v56 = vld [vmem:[%s5740_s19 + $0x2d8] sm:$0xff] }
 0x174   : > { %vm1554_vm2 = vcmp.eq.s32.totalorder %v5999_v17, %v1214_v43  ;;  %1408 = vperm.xlu1 %5485, %v593_v21   ;;  %1405 = vperm.xlu0 %5484, %v592_v44   ;;  %vm1555_vm11 = vcmp.eq.s32.totalorder %v5999_v17, %v1217_v24  ;;  %v347_v24 = vld [vmem:[%s5564_s24 + $0x300] sm:$0xff] }
 0x175   : > { %vm1682_vm1 = vmor %vm1042_vm8, %vm1554_vm2  ;;  %vm1044_vm2 = vcmp.eq.s32.totalorder %v5999_v17, %v5743_v55  ;;  %v598_v55 = vadd.s32 64, %v470_v56  ;;  %v475_v43 = vld [vmem:[%s5740_s19 + $0x300] sm:$0xff]  ;;  %v349_v56 = vld [vmem:[%s5564_s24 + $0x310] sm:$0xff] }
 0x176   : > { %vm6242_vm4 = vmpackc.low %vm1682_vm1, %vm1681_vm9 }
 0x177   : > { %v1223_v61 = vpop.permute.xlu1 %1222  ;;  %v8100_v23 = vsel %vm6242_vm4, 4294967295, %v8099_v23  ;;  %v1220_v11 = vpop.permute.xlu0 %1219  ;;  %4806 = vmatprep.mubr.msk.bf16.mxu1 %vm6242_vm4, %v8016_v8  ;;  %4950 = vmatprep.mubr.msk.bf16.mxu0 %vm6242_vm4, %v8016_v8  ;;  %vm1683_vm8 = vmor %vm1043_vm12, %vm1555_vm11  ;;  %vm1045_vm4 = vcmp.eq.s32.totalorder %v5999_v17, %v5762_v63  ;;  %vm1046_vm12 = vcmp.eq.s32.totalorder %v5999_v17, %v5760_v62  ;;  %v597_v63 = vadd.s32 64, %v469_v28  ;;  %v344_v62 = vld [vmem:[%s5564_s24 + $0x2e8] sm:$0xff]  ;;  %v477_v28 = vld [vmem:[%s5740_s19 + $0x310] sm:$0xff] }
 0x178   : > { %vm1556_vm15 = vcmp.eq.s32.totalorder %v5999_v17, %v1220_v11  ;;  %1414 = vperm.xlu1 %5485, %v595_v41   ;;  %1411 = vperm.xlu0 %5484, %v594_v12   ;;  %vm1557_vm9 = vcmp.eq.s32.totalorder %v5999_v17, %v1223_v61  ;;  %v8113_v12 = vmov 0  ;;  %v8115_v11 = vmov 0 }
 0x179   : > { %vm1684_vm1 = vmor %vm1044_vm2, %vm1556_vm15 }
 0x17a   : > { %vm6261_vm3 = vmpackc.low %vm1684_vm1, %vm1683_vm8 }
 0x17b   : > { %v1229_v60 = vpop.permute.xlu1 %1228  ;;  %v8102_v34 = vsel %vm6261_vm3, 4294967295, %v8101_v34  ;;  %v1226_v16 = vpop.permute.xlu0 %1225  ;;  %4807 = vmatmul.mubr.msk.bf16.gmra.mrb[20].mxu1 %vm6261_vm3, %v8016_v8  ;;  %4951 = vmatmul.mubr.msk.bf16.gmra.mrb[20].mxu0 %vm6261_vm3, %v8016_v8  ;;  %vm1685_vm15 = vmor %vm1045_vm4, %vm1557_vm9  ;;  %vm1047_vm4 = vcmp.eq.s32.totalorder %v5999_v17, %v5779_v13  ;;  %v472_v13 = vld [vmem:[%s5740_s19 + $0x2e8] sm:$0xff] }
 0x17c   : > { %vm1558_vm11 = vcmp.eq.s32.totalorder %v5999_v17, %v1226_v16  ;;  %911 = vperm.xlu1 %5485, %v342_v49   ;;  %1417 = vperm.xlu0 %5484, %v596_v52   ;;  %vm1559_vm2 = vcmp.eq.s32.totalorder %v5999_v17, %v1229_v60  ;;  %v350_v52 = vld [vmem:[%s5564_s24 + $0x318] sm:$0xff]  ;;  %v8118_v16 = vmov 0 }
 0x17d   : > { %vm1686_vm8 = vmor %vm1046_vm12, %vm1558_vm11  ;;  %vm1048_vm11 = vcmp.eq.s32.totalorder %v5999_v17, %v5777_v10  ;;  %v600_v10 = vadd.s32 64, %v472_v13  ;;  %v8122_v13 = vmov 0 }
 0x17e   : > { %vm6277_vm1 = vmpackc.low %vm1686_vm8, %vm1685_vm15 }
 0x17f   : > { %v1235_v27 = vpop.permute.xlu1 %1234  ;;  %v8104_v4 = vsel %vm6277_vm1, 4294967295, %v8103_v4  ;;  %v1232_v58 = vpop.permute.xlu0 %1231  ;;  %4810 = vmatprep.mubr.msk.bf16.mxu1 %vm6277_vm1, %v8016_v8  ;;  %4954 = vmatprep.mubr.msk.bf16.mxu0 %vm6277_vm1, %v8016_v8  ;;  %vm1687_vm12 = vmor %vm1047_vm4, %vm1559_vm2  ;;  %vm1049_vm1 = vcmp.eq.s32.totalorder %v5999_v17, %v5795_v29  ;;  %vm1050_vm4 = vcmp.eq.s32.totalorder %v5999_v17, %v5793_v26  ;;  %v599_v29 = vadd.s32 64, %v471_v36  ;;  %v346_v26 = vld [vmem:[%s5564_s24 + $0x2f8] sm:$0xff] }
 0x180   : > { %vm1560_vm9 = vcmp.eq.s32.totalorder %v5999_v17, %v1232_v58  ;;  %1423 = vperm.xlu1 %5485, %v598_v55   ;;  %1420 = vperm.xlu0 %5484, %v597_v63   ;;  %vm1561_vm15 = vcmp.eq.s32.totalorder %v5999_v17, %v1235_v27  ;;  %v8120_v63 = vld [vmem:[#allocation4_spill] sm:$0xff]  ;;  %v8121_v27 = vld [vmem:[#allocation3_spill] sm:$0xff] }
 0x181   : > { %vm1688_vm8 = vmor %vm1048_vm11, %vm1560_vm9 }
 0x182   : > { %vm6297_vm3 = vmpackc.low %vm1688_vm8, %vm1687_vm12 }
 0x183   : > { %v1241_v15 = vpop.permute.xlu1 %1240  ;;  %v8106_v3 = vsel %vm6297_vm3, 4294967295, %v8105_v3  ;;  %v1238_v31 = vpop.permute.xlu0 %1237  ;;  %4811 = vmatmul.mubr.msk.bf16.gmra.mrb[24].mxu1 %vm6297_vm3, %v8016_v8  ;;  %4955 = vmatmul.mubr.msk.bf16.gmra.mrb[24].mxu0 %vm6297_vm3, %v8016_v8  ;;  %vm1689_vm9 = vmor %vm1049_vm1, %vm1561_vm15  ;;  %vm1051_vm1 = vcmp.eq.s32.totalorder %v5999_v17, %v5810_v45  ;;  %v474_v45 = vld [vmem:[%s5740_s19 + $0x2f8] sm:$0xff] }
 0x184   : > { %vm1562_vm2 = vcmp.eq.s32.totalorder %v5999_v17, %v1238_v31  ;;  %917 = vperm.xlu1 %5485, %v344_v62   ;;  %914 = vperm.xlu0 %5484, %v343_v32   ;;  %vm1563_vm11 = vcmp.eq.s32.totalorder %v5999_v17, %v1241_v15  ;;  %v605_v62 = vadd.s32 64, %v477_v28  ;;  %v8124_v15 = vld [vmem:[#allocation6_spill] sm:$0xff]  ;;  %v8125_v31 = vld [vmem:[#allocation5_spill] sm:$0xff]  ;;  %v8138_v28 = vmov 0 }
 0x185   : > { %vm1690_vm12 = vmor %vm1050_vm4, %vm1562_vm2  ;;  %vm1052_vm2 = vcmp.eq.s32.totalorder %v5999_v17, %v5808_v42  ;;  %v602_v42 = vadd.s32 64, %v474_v45 }
 0x186   : > { %vm6313_vm8 = vmpackc.low %vm1690_vm12, %vm1689_vm9 }
 0x187   : > { %v1247_v20 = vpop.permute.xlu1 %1246  ;;  %v8108_v2 = vsel %vm6313_vm8, 4294967295, %v8107_v2  ;;  %v1244_v38 = vpop.permute.xlu0 %1243  ;;  %4814 = vmatprep.mubr.msk.bf16.mxu1 %vm6313_vm8, %v8016_v8  ;;  %4958 = vmatprep.mubr.msk.bf16.mxu0 %vm6313_vm8, %v8016_v8  ;;  %vm1691_vm4 = vmor %vm1051_vm1, %vm1563_vm11  ;;  %vm1053_vm8 = vcmp.eq.s32.totalorder %v5999_v17, %v5819_v57  ;;  %vm1054_vm1 = vcmp.eq.s32.totalorder %v5999_v17, %v5817_v54  ;;  %v601_v57 = vadd.s32 64, %v473_v25  ;;  %v348_v54 = vld [vmem:[%s5564_s24 + $0x308] sm:$0xff]  ;;  %v8128_v25 = vld [vmem:[#allocation8_spill] sm:$0xff] }
 0x188   : > { %vm1564_vm15 = vcmp.eq.s32.totalorder %v5999_v17, %v1244_v38  ;;  %1429 = vperm.xlu1 %5485, %v600_v10   ;;  %1426 = vperm.xlu0 %5484, %v599_v29   ;;  %vm1565_vm9 = vcmp.eq.s32.totalorder %v5999_v17, %v1247_v20  ;;  %v352_v10 = vld [vmem:[%s5564_s24 + $0x328] sm:$0xff]  ;;  %v351_v29 = vld [vmem:[%s5564_s24 + $0x320] sm:$0xff] }
 0x189   : > { %vm1692_vm12 = vmor %vm1052_vm2, %vm1564_vm15  ;;  %v480_v20 = vld [vmem:[%s5740_s19 + $0x328] sm:$0xff]  ;;  %v479_v38 = vld [vmem:[%s5740_s19 + $0x320] sm:$0xff] }
 0x18a   : > { %vm6333_vm3 = vmpackc.low %vm1692_vm12, %vm1691_vm4 }
 0x18b   : > { %v1253_v6 = vpop.permute.xlu1 %1252  ;;  %v8110_v37 = vsel %vm6333_vm3, 4294967295, %v8109_v37  ;;  %v1250_v21 = vpop.permute.xlu0 %1249  ;;  %4815 = vmatmul.mubr.msk.bf16.gmra.mrb[28].mxu1 %vm6333_vm3, %v8016_v8  ;;  %4959 = vmatmul.mubr.msk.bf16.gmra.mrb[28].mxu0 %vm6333_vm3, %v8016_v8  ;;  %vm1693_vm15 = vmor %vm1053_vm8, %vm1565_vm9  ;;  %vm1055_vm8 = vcmp.eq.s32.totalorder %v5999_v17, %v5825_v5  ;;  %v476_v5 = vld [vmem:[%s5740_s19 + $0x308] sm:$0xff] }
 0x18c   : > { %vm1566_vm11 = vcmp.eq.s32.totalorder %v5999_v17, %v1250_v21  ;;  %923 = vperm.xlu1 %5485, %v346_v26   ;;  %920 = vperm.xlu0 %5484, %v345_v0   ;;  %vm1567_vm2 = vcmp.eq.s32.totalorder %v5999_v17, %v1253_v6  ;;  %v8126_v0 = vmov 0  ;;  %v8129_v6 = vld [vmem:[#allocation7_spill] sm:$0xff]  ;;  %v608_v21 = vadd.s32 64, %v480_v20 }
 0x18d   : > { %vm1694_vm4 = vmor %vm1054_vm1, %vm1566_vm11  ;;  %vm1056_vm11 = vcmp.eq.s32.totalorder %v5999_v17, %v5823_v1  ;;  %v604_v1 = vadd.s32 64, %v476_v5  ;;  %v354_v5 = vld [vmem:[%s5564_s24 + $0x338] sm:$0xff] }
 0x18e   : > { %vm6349_vm12 = vmpackc.low %vm1694_vm4, %vm1693_vm15 }
 0x18f   : > { %v1259_v44 = vpop.permute.xlu1 %1258  ;;  %v8112_v59 = vsel %vm6349_vm12, 4294967295, %v8111_v59  ;;  %v1256_v46 = vpop.permute.xlu0 %1255  ;;  %4818 = vmatprep.mubr.msk.bf16.mxu1 %vm6349_vm12, %v8016_v8  ;;  %4962 = vmatprep.mubr.msk.bf16.mxu0 %vm6349_vm12, %v8016_v8  ;;  %vm1695_vm1 = vmor %vm1055_vm8, %vm1567_vm2  ;;  %vm1057_vm12 = vcmp.eq.s32.totalorder %v5999_v17, %v5831_v22  ;;  %vm1058_vm8 = vcmp.eq.s32.totalorder %v5999_v17, %v5829_v18  ;;  %v603_v22 = vadd.s32 64, %v475_v43  ;;  %v8117_v18 = vld [vmem:[#allocation2_spill] sm:$0xff]  ;;  %v353_v43 = vld [vmem:[%s5564_s24 + $0x330] sm:$0xff] }
 0x190   : > { %vm1568_vm9 = vcmp.eq.s32.totalorder %v5999_v17, %v1256_v46  ;;  %1435 = vperm.xlu1 %5485, %v602_v42   ;;  %1432 = vperm.xlu0 %5484, %v601_v57   ;;  %vm1569_vm15 = vcmp.eq.s32.totalorder %v5999_v17, %v1259_v44  ;;  %v607_v42 = vadd.s32 64, %v479_v38  ;;  %v8130_v44 = vmov 0 }
 0x191   : > { %vm1696_vm4 = vmor %vm1056_vm11, %vm1568_vm9 }
 0x192   : > { %vm6369_vm3 = vmpackc.low %vm1696_vm4, %vm1695_vm1 }
 0x193   : > { %v1265_v41 = vpop.permute.xlu1 %1264  ;;  %v8114_v12 = vsel %vm6369_vm3, 4294967295, %v8113_v12  ;;  %v1262_v50 = vpop.permute.xlu0 %1261  ;;  %4819 = vmatmul.mubr.msk.bf16.gmra.mrb[32].mxu1 %vm6369_vm3, %v8016_v8  ;;  %4963 = vmatmul.mubr.msk.bf16.gmra.mrb[32].mxu0 %vm6369_vm3, %v8016_v8  ;;  %vm1697_vm9 = vmor %vm1057_vm12, %vm1569_vm15  ;;  %vm1059_vm12 = vcmp.eq.s32.totalorder %v5999_v17, %v5837_v39  ;;  %v478_v39 = vld [vmem:[%s5740_s19 + $0x318] sm:$0xff] }
 0x194   : > { %vm1570_vm2 = vcmp.eq.s32.totalorder %v5999_v17, %v1262_v50  ;;  %929 = vperm.xlu1 %5485, %v348_v54   ;;  %926 = vperm.xlu0 %5484, %v347_v24   ;;  %vm1571_vm11 = vcmp.eq.s32.totalorder %v5999_v17, %v1265_v41  ;;  %v606_v58 = vadd.s32 64, %v478_v39  ;;  %v8132_v54 = vld [vmem:[#allocation10_spill] sm:$0xff]  ;;  %v8133_v24 = vld [vmem:[#allocation9_spill] sm:$0xff]  ;;  %v481_v50 = vld [vmem:[%s5740_s19 + $0x330] sm:$0xff] }
 0x195   : > { %vm1698_vm1 = vmor %vm1058_vm8, %vm1570_vm2  ;;  %vm1060_vm2 = vcmp.eq.s32.totalorder %v5999_v17, %v8117_v18  ;;  %v482_v41 = vld [vmem:[%s5740_s19 + $0x338] sm:$0xff]  ;;  %v8137_v18 = vld [vmem:[#allocation11_spill] sm:$0xff] }
 0x196   : > { %vm6385_vm4 = vmpackc.low %vm1698_vm1, %vm1697_vm9 }
 0x197   : > { %v1271_v61 = vpop.permute.xlu1 %1270  ;;  %v8116_v11 = vsel %vm6385_vm4, 4294967295, %v8115_v11  ;;  %v1268_v49 = vpop.permute.xlu0 %1267  ;;  %4822 = vmatprep.mubr.msk.bf16.mxu1 %vm6385_vm4, %v8016_v8  ;;  %4966 = vmatprep.mubr.msk.bf16.mxu0 %vm6385_vm4, %v8016_v8  ;;  %vm1699_vm8 = vmor %vm1059_vm12, %vm1571_vm11  ;;  %vm1061_vm4 = vcmp.eq.s32.totalorder %v5999_v17, %v8120_v63  ;;  %vm1062_vm12 = vcmp.eq.s32.totalorder %v5999_v17, %v8121_v27  ;;  %v8141_v63 = vld [vmem:[#allocation13_spill] sm:$0xff]  ;;  %v356_v27 = vld [vmem:[%s5564_s24 + $0x348] sm:$0xff] }
 0x198   : > { %vm1572_vm15 = vcmp.eq.s32.totalorder %v5999_v17, %v1268_v49  ;;  %1441 = vperm.xlu1 %5485, %v604_v1   ;;  %1438 = vperm.xlu0 %5484, %v603_v22   ;;  %vm1573_vm9 = vcmp.eq.s32.totalorder %v5999_v17, %v1271_v61  ;;  %v8134_v22 = vmov 0  ;;  %v8136_v49 = vld [vmem:[#allocation12_spill] sm:$0xff] }
 0x199   : > { %vm1700_vm1 = vmor %vm1060_vm2, %vm1572_vm15 }
 0x19a   : > { %vm6405_vm3 = vmpackc.low %vm1700_vm1, %vm1699_vm8 }
 0x19b   : > { %v1277_v60 = vpop.permute.xlu1 %1276  ;;  %v8119_v16 = vsel %vm6405_vm3, 4294967295, %v8118_v16  ;;  %v1274_v55 = vpop.permute.xlu0 %1273  ;;  %4823 = vmatmul.mubr.msk.bf16.gmra.mrb[36].mxu1 %vm6405_vm3, %v8016_v8  ;;  %4967 = vmatmul.mubr.msk.bf16.gmra.mrb[36].mxu0 %vm6405_vm3, %v8016_v8  ;;  %vm1701_vm15 = vmor %vm1061_vm4, %vm1573_vm9  ;;  %vm1063_vm4 = vcmp.eq.s32.totalorder %v5999_v17, %v8124_v15  ;;  %v8142_v15 = vmov 0 }
 0x19c   : > { %vm1574_vm11 = vcmp.eq.s32.totalorder %v5999_v17, %v1274_v55  ;;  %935 = vperm.xlu1 %5485, %v350_v52   ;;  %932 = vperm.xlu0 %5484, %v349_v56   ;;  %vm1575_vm2 = vcmp.eq.s32.totalorder %v5999_v17, %v1277_v60  ;;  %v610_v52 = vadd.s32 64, %v482_v41  ;;  %v609_v56 = vadd.s32 64, %v481_v50  ;;  %v8140_v55 = vld [vmem:[#allocation14_spill] sm:$0xff]  ;;  %v8152_v41 = vld [vmem:[#allocation20_spill] sm:$0xff]  ;;  %v8153_v50 = vld [vmem:[#allocation19_spill] sm:$0xff] }
 0x19d   : > { %vm1702_vm8 = vmor %vm1062_vm12, %vm1574_vm11  ;;  %vm1064_vm11 = vcmp.eq.s32.totalorder %v5999_v17, %v8125_v31 }
 0x19e   : > { %vm6421_vm1 = vmpackc.low %vm1702_vm8, %vm1701_vm15 }
 0x19f   : > { %v1283_v32 = vpop.permute.xlu1 %1282  ;;  %v8123_v13 = vsel %vm6421_vm1, 4294967295, %v8122_v13  ;;  %v1280_v36 = vpop.permute.xlu0 %1279  ;;  %4826 = vmatprep.mubr.msk.bf16.mxu1 %vm6421_vm1, %v8016_v8  ;;  %4970 = vmatprep.mubr.msk.bf16.mxu0 %vm6421_vm1, %v8016_v8  ;;  %vm1703_vm12 = vmor %vm1063_vm4, %vm1575_vm2  ;;  %vm1065_vm1 = vcmp.eq.s32.totalorder %v5999_v17, %v8128_v25  ;;  %vm1066_vm4 = vcmp.eq.s32.totalorder %v5999_v17, %v8129_v6  ;;  %v8148_v6 = vld [vmem:[#allocation18_spill] sm:$0xff] }
 0x1a0   : > { %vm1576_vm9 = vcmp.eq.s32.totalorder %v5999_v17, %v1280_v36  ;;  %1447 = vperm.xlu1 %5485, %v606_v58   ;;  %1444 = vperm.xlu0 %5484, %v605_v62   ;;  %vm1577_vm15 = vcmp.eq.s32.totalorder %v5999_v17, %v1283_v32  ;;  %v355_v58 = vld [vmem:[%s5564_s24 + $0x340] sm:$0xff]  ;;  %v484_v62 = vld [vmem:[%s5740_s19 + $0x348] sm:$0xff] }
 0x1a1   : > { %vm1704_vm8 = vmor %vm1064_vm11, %vm1576_vm9  ;;  %v483_v32 = vld [vmem:[%s5740_s19 + $0x340] sm:$0xff]  ;;  %v612_v20 = vadd.s32 64, %v484_v62  ;;  %v8158_v62 = vmov 0 }
 0x1a2   : > { %vm6441_vm3 = vmpackc.low %vm1704_vm8, %vm1703_vm12  ;;  %v611_v38 = vadd.s32 64, %v483_v32 }
 0x1a3   : > { %v1289_v26 = vpop.permute.xlu1 %1288  ;;  %v8127_v0 = vsel %vm6441_vm3, 4294967295, %v8126_v0  ;;  %v1286_v45 = vpop.permute.xlu0 %1285  ;;  %4827 = vmatmul.mubr.msk.bf16.gmra.mrb[40].mxu1 %vm6441_vm3, %v8016_v8  ;;  %4971 = vmatmul.mubr.msk.bf16.gmra.mrb[40].mxu0 %vm6441_vm3, %v8016_v8  ;;  %vm1705_vm9 = vmor %vm1065_vm1, %vm1577_vm15  ;;  %vm1067_vm1 = vcmp.eq.s32.totalorder %v5999_v17, %v8132_v54  ;;  %v485_v54 = vld [vmem:[%s5740_s19 + $0x350] sm:$0xff] }
 0x1a4   : > { %vm1578_vm2 = vcmp.eq.s32.totalorder %v5999_v17, %v1286_v45  ;;  %941 = vperm.xlu1 %5485, %v352_v10   ;;  %938 = vperm.xlu0 %5484, %v351_v29   ;;  %vm1579_vm11 = vcmp.eq.s32.totalorder %v5999_v17, %v1289_v26  ;;  %v8144_v10 = vld [vmem:[#allocation16_spill] sm:$0xff]  ;;  %v8145_v29 = vld [vmem:[#allocation15_spill] sm:$0xff]  ;;  %v8146_v45 = vmov 0 }
 0x1a5   : > { %vm1706_vm12 = vmor %vm1066_vm4, %vm1578_vm2  ;;  %vm1068_vm2 = vcmp.eq.s32.totalorder %v5999_v17, %v8133_v24 }
 0x1a6   : > { %vm6457_vm8 = vmpackc.low %vm1706_vm12, %vm1705_vm9 }
 0x1a7   : > { %v1295_v57 = vpop.permute.xlu1 %1294  ;;  %v8131_v44 = vsel %vm6457_vm8, 4294967295, %v8130_v44  ;;  %v1292_v46 = vpop.permute.xlu0 %1291  ;;  %4830 = vmatprep.mubr.msk.bf16.mxu1 %vm6457_vm8, %v8016_v8  ;;  %4974 = vmatprep.mubr.msk.bf16.mxu0 %vm6457_vm8, %v8016_v8  ;;  %vm1707_vm4 = vmor %vm1067_vm1, %vm1579_vm11  ;;  %vm1069_vm8 = vcmp.eq.s32.totalorder %v5999_v17, %v8136_v49  ;;  %vm1070_vm1 = vcmp.eq.s32.totalorder %v5999_v17, %v8137_v18  ;;  %v8154_v18 = vmov 0 }
 0x1a8   : > { %vm1580_vm15 = vcmp.eq.s32.totalorder %v5999_v17, %v1292_v46  ;;  %1453 = vperm.xlu1 %5485, %v608_v21   ;;  %1450 = vperm.xlu0 %5484, %v607_v42   ;;  %vm1581_vm9 = vcmp.eq.s32.totalorder %v5999_v17, %v1295_v57  ;;  %v8149_v21 = vld [vmem:[#allocation17_spill] sm:$0xff]  ;;  %v357_v57 = vld [vmem:[%s5564_s24 + $0x350] sm:$0xff] }
 0x1a9   : > { %vm1708_vm12 = vmor %vm1068_vm2, %vm1580_vm15  ;;  %v358_v42 = vld [vmem:[%s5564_s24 + $0x358] sm:$0xff] }
 0x1aa   : > { %vm6477_vm3 = vmpackc.low %vm1708_vm12, %vm1707_vm4  ;;  %v486_v46 = vld [vmem:[%s5740_s19 + $0x358] sm:$0xff] }
 0x1ab   : > { %v1301_v1 = vpop.permute.xlu1 %1300  ;;  %v8135_v22 = vsel %vm6477_vm3, 4294967295, %v8134_v22  ;;  %v1298_v61 = vpop.permute.xlu0 %1297  ;;  %4831 = vmatmul.mubr.msk.bf16.gmra.mrb[44].mxu1 %vm6477_vm3, %v8016_v8  ;;  %4975 = vmatmul.mubr.msk.bf16.gmra.mrb[44].mxu0 %vm6477_vm3, %v8016_v8  ;;  %vm1709_vm15 = vmor %vm1069_vm8, %vm1581_vm9  ;;  %vm1071_vm8 = vcmp.eq.s32.totalorder %v5999_v17, %v8140_v55  ;;  %v359_v55 = vld [vmem:[%s5564_s24 + $0x360] sm:$0xff] }
 0x1ac   : > { %vm1582_vm11 = vcmp.eq.s32.totalorder %v5999_v17, %v1298_v61  ;;  %947 = vperm.xlu1 %5485, %v354_v5   ;;  %944 = vperm.xlu0 %5484, %v353_v43   ;;  %vm1583_vm2 = vcmp.eq.s32.totalorder %v5999_v17, %v1301_v1  ;;  %v8150_v5 = vmov 0  ;;  %v614_v1 = vadd.s32 64, %v486_v46  ;;  %v489_v46 = vld [vmem:[%s5740_s19 + $0x370] sm:$0xff] }
 0x1ad   : > { %vm1710_vm4 = vmor %vm1070_vm1, %vm1582_vm11  ;;  %vm1072_vm11 = vcmp.eq.s32.totalorder %v5999_v17, %v8141_v63  ;;  %v613_v61 = vadd.s32 64, %v485_v54  ;;  %v488_v63 = vld [vmem:[%s5740_s19 + $0x368] sm:$0xff] }
 0x1ae   : > { %vm6493_vm12 = vmpackc.low %vm1710_vm4, %vm1709_vm15 }
 0x1af   : > { %v1307_v39 = vpop.permute.xlu1 %1306  ;;  %v8139_v28 = vsel %vm6493_vm12, 4294967295, %v8138_v28  ;;  %v1304_v60 = vpop.permute.xlu0 %1303  ;;  %4834 = vmatprep.mubr.msk.bf16.mxu1 %vm6493_vm12, %v8016_v8  ;;  %4978 = vmatprep.mubr.msk.bf16.mxu0 %vm6493_vm12, %v8016_v8  ;;  %vm1711_vm1 = vmor %vm1071_vm8, %vm1583_vm2  ;;  %vm1073_vm12 = vcmp.eq.s32.totalorder %v5999_v17, %v8144_v10  ;;  %vm1074_vm8 = vcmp.eq.s32.totalorder %v5999_v17, %v8145_v29  ;;  %v616_v10 = vadd.s32 64, %v488_v63  ;;  %v363_v63 = vld [vmem:[%s5564_s24 + $0x380] sm:$0xff] }
 0x1b0   : > { %vm1584_vm9 = vcmp.eq.s32.totalorder %v5999_v17, %v1304_v60  ;;  %1459 = vperm.xlu1 %5485, %v610_v52   ;;  %1456 = vperm.xlu0 %5484, %v609_v56   ;;  %vm1585_vm15 = vcmp.eq.s32.totalorder %v5999_v17, %v1307_v39  ;;  %v8156_v56 = vld [vmem:[#allocation22_spill] sm:$0xff]  ;;  %v8157_v39 = vld [vmem:[#allocation21_spill] sm:$0xff]  ;;  %v360_v60 = vld [vmem:[%s5564_s24 + $0x368] sm:$0xff] }
 0x1b1   : > { %vm1712_vm4 = vmor %vm1072_vm11, %vm1584_vm9 }
 0x1b2   : > { %vm6513_vm3 = vmpackc.low %vm1712_vm4, %vm1711_vm1 }
 0x1b3   : > { %v1313_v36 = vpop.permute.xlu1 %1312  ;;  %v8143_v15 = vsel %vm6513_vm3, 4294967295, %v8142_v15  ;;  %v1310_v31 = vpop.permute.xlu0 %1309  ;;  %4835 = vmatmul.mubr.msk.bf16.gmra.mrb[48].mxu1 %vm6513_vm3, %v8016_v8  ;;  %4979 = vmatmul.mubr.msk.bf16.gmra.mrb[48].mxu0 %vm6513_vm3, %v8016_v8  ;;  %vm1713_vm9 = vmor %vm1073_vm12, %vm1585_vm15  ;;  %vm1075_vm12 = vcmp.eq.s32.totalorder %v5999_v17, %v8148_v6  ;;  %v8165_v6 = vld [vmem:[#allocation25_spill] sm:$0xff] }
 0x1b4   : > { %vm1586_vm2 = vcmp.eq.s32.totalorder %v5999_v17, %v1310_v31  ;;  %953 = vperm.xlu1 %5485, %v356_v27   ;;  %950 = vperm.xlu0 %5484, %v355_v58   ;;  %vm1587_vm11 = vcmp.eq.s32.totalorder %v5999_v17, %v1313_v36  ;;  %v487_v27 = vld [vmem:[%s5740_s19 + $0x360] sm:$0xff]  ;;  %v8160_v36 = vld [vmem:[#allocation24_spill] sm:$0xff]  ;;  %v8161_v31 = vld [vmem:[#allocation23_spill] sm:$0xff] }
 0x1b5   : > { %vm1714_vm1 = vmor %vm1074_vm8, %vm1586_vm2  ;;  %vm1076_vm2 = vcmp.eq.s32.totalorder %v5999_v17, %v8149_v21  ;;  %v615_v29 = vadd.s32 64, %v487_v27  ;;  %v362_v21 = vld [vmem:[%s5564_s24 + $0x378] sm:$0xff]  ;;  %v491_v27 = vld [vmem:[%s5740_s19 + $0x380] sm:$0xff] }
 0x1b6   : > { %vm6529_vm4 = vmpackc.low %vm1714_vm1, %vm1713_vm9  ;;  %v619_v35 = vadd.s32 64, %v491_v27  ;;  %v495_v27 = vld [vmem:[%s5740_s19 + $0x3a0] sm:$0xff] }
 0x1b7   : > { %v1319_v26 = vpop.permute.xlu1 %1318  ;;  %v8147_v45 = vsel %vm6529_vm4, 4294967295, %v8146_v45  ;;  %v1316_v25 = vpop.permute.xlu0 %1315  ;;  %4838 = vmatprep.mubr.msk.bf16.mxu1 %vm6529_vm4, %v8016_v8  ;;  %4982 = vmatprep.mubr.msk.bf16.mxu0 %vm6529_vm4, %v8016_v8  ;;  %vm1715_vm8 = vmor %vm1075_vm12, %vm1587_vm11  ;;  %vm1077_vm4 = vcmp.eq.s32.totalorder %v5999_v17, %v8152_v41  ;;  %vm1078_vm12 = vcmp.eq.s32.totalorder %v5999_v17, %v8153_v50  ;;  %v8168_v41 = vld [vmem:[#allocation28_spill] sm:$0xff]  ;;  %v8169_v50 = vld [vmem:[#allocation27_spill] sm:$0xff]  ;;  %v623_v14 = vadd.s32 64, %v495_v27 }
 0x1b8   : > { %vm1588_vm15 = vcmp.eq.s32.totalorder %v5999_v17, %v1316_v25  ;;  %1465 = vperm.xlu1 %5485, %v612_v20   ;;  %1462 = vperm.xlu0 %5484, %v611_v38   ;;  %vm1589_vm9 = vcmp.eq.s32.totalorder %v5999_v17, %v1319_v26  ;;  %v8162_v38 = vmov 0  ;;  %v8164_v25 = vld [vmem:[#allocation26_spill] sm:$0xff] }
 0x1b9   : > { %vm1716_vm1 = vmor %vm1076_vm2, %vm1588_vm15  ;;  %v499_v27 = vld [vmem:[%s5740_s19 + $0x3c0] sm:$0xff] }
 0x1ba   : > { %vm6549_vm3 = vmpackc.low %vm1716_vm1, %vm1715_vm8 }
 0x1bb   : > { %v1325_v24 = vpop.permute.xlu1 %1324  ;;  %v8151_v5 = vsel %vm6549_vm3, 4294967295, %v8150_v5  ;;  %v1322_v43 = vpop.permute.xlu0 %1321  ;;  %4839 = vmatmul.mubr.msk.bf16.gmra.mrb[52].mxu1 %vm6549_vm3, %v8016_v8  ;;  %4983 = vmatmul.mubr.msk.bf16.gmra.mrb[52].mxu0 %vm6549_vm3, %v8016_v8  ;;  %vm1717_vm15 = vmor %vm1077_vm4, %vm1589_vm9  ;;  %vm1079_vm4 = vcmp.eq.s32.totalorder %v5999_v17, %v8156_v56 }
 0x1bc   : > { %vm1590_vm11 = vcmp.eq.s32.totalorder %v5999_v17, %v1322_v43  ;;  %959 = vperm.xlu1 %5485, %v358_v42   ;;  %956 = vperm.xlu0 %5484, %v357_v57   ;;  %vm1591_vm2 = vcmp.eq.s32.totalorder %v5999_v17, %v1325_v24  ;;  %v361_v42 = vld [vmem:[%s5564_s24 + $0x370] sm:$0xff]  ;;  %v490_v57 = vld [vmem:[%s5740_s19 + $0x378] sm:$0xff] }
 0x1bd   : > { %vm1718_vm8 = vmor %vm1078_vm12, %vm1590_vm11  ;;  %vm1080_vm11 = vcmp.eq.s32.totalorder %v5999_v17, %v8157_v39  ;;  %v8172_v39 = vld [vmem:[#allocation30_spill] sm:$0xff] }
 0x1be   : > { %vm6565_vm1 = vmpackc.low %vm1718_vm8, %vm1717_vm15 }
 0x1bf   : > { %v1331_v49 = vpop.permute.xlu1 %1330  ;;  %v8155_v18 = vsel %vm6565_vm1, 4294967295, %v8154_v18  ;;  %v1328_v52 = vpop.permute.xlu0 %1327  ;;  %4842 = vmatprep.mubr.msk.bf16.mxu1 %vm6565_vm1, %v8016_v8  ;;  %4986 = vmatprep.mubr.msk.bf16.mxu0 %vm6565_vm1, %v8016_v8  ;;  %vm1719_vm12 = vmor %vm1079_vm4, %vm1591_vm2  ;;  %vm1081_vm1 = vcmp.eq.s32.totalorder %v5999_v17, %v8160_v36  ;;  %vm1082_vm4 = vcmp.eq.s32.totalorder %v5999_v17, %v8161_v31  ;;  %v8176_v31 = vld [vmem:[#allocation32_spill] sm:$0xff] }
 0x1c0   : > { %vm1592_vm9 = vcmp.eq.s32.totalorder %v5999_v17, %v1328_v52  ;;  %1471 = vperm.xlu1 %5485, %v614_v1   ;;  %1468 = vperm.xlu0 %5484, %v613_v61   ;;  %vm1593_vm15 = vcmp.eq.s32.totalorder %v5999_v17, %v1331_v49  ;;  %v618_v1 = vadd.s32 64, %v490_v57  ;;  %v617_v61 = vadd.s32 64, %v489_v46  ;;  %v365_v57 = vld [vmem:[%s5564_s24 + $0x390] sm:$0xff] }
 0x1c1   : > { %vm1720_vm8 = vmor %vm1080_vm11, %vm1592_vm9  ;;  %v493_v46 = vld [vmem:[%s5740_s19 + $0x390] sm:$0xff] }
 0x1c2   : > { %vm6585_vm3 = vmpackc.low %vm1720_vm8, %vm1719_vm12  ;;  %v621_v47 = vadd.s32 64, %v493_v46  ;;  %v497_v46 = vld [vmem:[%s5740_s19 + $0x3b0] sm:$0xff] }
 0x1c3   : > { %v1337_v58 = vpop.permute.xlu1 %1336  ;;  %v8159_v62 = vsel %vm6585_vm3, 4294967295, %v8158_v62  ;;  %v1334_v32 = vpop.permute.xlu0 %1333  ;;  %4843 = vmatmul.mubr.msk.bf16.gmra.mrb[56].mxu1 %vm6585_vm3, %v8016_v8  ;;  %4987 = vmatmul.mubr.msk.bf16.gmra.mrb[56].mxu0 %vm6585_vm3, %v8016_v8  ;;  %vm1721_vm9 = vmor %vm1081_vm1, %vm1593_vm15  ;;  %vm1083_vm1 = vcmp.eq.s32.totalorder %v5999_v17, %v8164_v25 }
 0x1c4   : > { %vm1594_vm2 = vcmp.eq.s32.totalorder %v5999_v17, %v1334_v32  ;;  %965 = vperm.xlu1 %5485, %v360_v60   ;;  %962 = vperm.xlu0 %5484, %v359_v55   ;;  %vm1595_vm11 = vcmp.eq.s32.totalorder %v5999_v17, %v1337_v58  ;;  %v364_v60 = vld [vmem:[%s5564_s24 + $0x388] sm:$0xff] }
 0x1c5   : > { %vm1722_vm12 = vmor %vm1082_vm4, %vm1594_vm2  ;;  %vm1084_vm2 = vcmp.eq.s32.totalorder %v5999_v17, %v8165_v6  ;;  %v492_v55 = vld [vmem:[%s5740_s19 + $0x388] sm:$0xff]  ;;  %v8180_v6 = vld [vmem:[#allocation34_spill] sm:$0xff] }
 0x1c6   : > { %vm6601_vm8 = vmpackc.low %vm1722_vm12, %vm1721_vm9 }
 0x1c7   : > { %v1343_v20 = vpop.permute.xlu1 %1342  ;;  %v8163_v38 = vsel %vm6601_vm8, 4294967295, %v8162_v38  ;;  %v1340_v26 = vpop.permute.xlu0 %1339  ;;  %4846 = vmatprep.mubr.msk.bf16.mxu1 %vm6601_vm8, %v8016_v8  ;;  %4990 = vmatprep.mubr.msk.bf16.mxu0 %vm6601_vm8, %v8016_v8  ;;  %vm1723_vm4 = vmor %vm1083_vm1, %vm1595_vm11  ;;  %vm1085_vm8 = vcmp.eq.s32.totalorder %v5999_v17, %v8168_v41  ;;  %vm1086_vm1 = vcmp.eq.s32.totalorder %v5999_v17, %v8169_v50  ;;  %v8184_v50 = vld [vmem:[#allocation36_spill] sm:$0xff] }
 0x1c8   : > { %vm1596_vm15 = vcmp.eq.s32.totalorder %v5999_v17, %v1340_v26  ;;  %1477 = vperm.xlu1 %5485, %v616_v10   ;;  %1474 = vperm.xlu0 %5484, %v615_v29   ;;  %vm1597_vm9 = vcmp.eq.s32.totalorder %v5999_v17, %v1343_v20  ;;  %v620_v10 = vadd.s32 64, %v492_v55  ;;  %v8177_v29 = vld [vmem:[#allocation31_spill] sm:$0xff] }
 0x1c9   : > { %vm1724_vm12 = vmor %vm1084_vm2, %vm1596_vm15  ;;  %v496_v55 = vld [vmem:[%s5740_s19 + $0x3a8] sm:$0xff] }
 0x1ca   : > { %vm6621_vm3 = vmpackc.low %vm1724_vm12, %vm1723_vm4 }
 0x1cb   : > { %v1349_v54 = vpop.permute.xlu1 %1348  ;;  %v1346_v43 = vpop.permute.xlu0 %1345  ;;  %4847 = vmatmul.mubr.msk.bf16.gmra.mrb[60].mxu1 %vm6621_vm3, %v8016_v8  ;;  %4991 = vmatmul.mubr.msk.bf16.gmra.mrb[60].mxu0 %vm6621_vm3, %v8016_v8  ;;  %vm1725_vm15 = vmor %vm1085_vm8, %vm1597_vm9  ;;  %vm1087_vm8 = vcmp.eq.s32.totalorder %v5999_v17, %v8172_v39 }
 0x1cc   : > { %vm1598_vm11 = vcmp.eq.s32.totalorder %v5999_v17, %v1346_v43  ;;  %971 = vperm.xlu1 %5485, %v362_v21   ;;  %968 = vperm.xlu0 %5484, %v361_v42   ;;  %vm1599_vm4 = vcmp.eq.s32.totalorder %v5999_v17, %v1349_v54  ;;  %v366_v21 = vld [vmem:[%s5564_s24 + $0x398] sm:$0xff] }
 0x1cd   : > { %vm1726_vm2 = vmor %vm1086_vm1, %vm1598_vm11  ;;  %5074 = vmatprep.mubr.msk.bf16.mxu0 %vm6012_vm7, %v8016_v8  ;;  %vm1088_vm7 = vcmp.eq.s32.totalorder %v5999_v17, %v8173_v9  ;;  %v494_v42 = vld [vmem:[%s5740_s19 + $0x398] sm:$0xff]  ;;  %v8188_v9 = vld [vmem:[#allocation38_spill] sm:$0xff] }
 0x1ce   : > { %vm6640_vm12 = vmpackc.low %vm1726_vm2, %vm1725_vm15 }
 0x1cf   : > { %v1355_v52 = vpop.permute.xlu1 %1354  ;;  %4850 = vmatprep.mubr.msk.bf16.mxu1 %vm6640_vm12, %v8016_v8  ;;  %v1352_v56 = vpop.permute.xlu0 %1351  ;;  %vm1727_vm11 = vmor %vm1087_vm8, %vm1599_vm4  ;;  %vm1089_vm4 = vcmp.eq.s32.totalorder %v5999_v17, %v8176_v31 }
 0x1d0   : > { %vm1600_vm9 = vcmp.eq.s32.totalorder %v5999_v17, %v1352_v56  ;;  %1483 = vperm.xlu1 %5485, %v618_v1   ;;  %1480 = vperm.xlu0 %5484, %v617_v61   ;;  %vm1601_vm1 = vcmp.eq.s32.totalorder %v5999_v17, %v1355_v52  ;;  %v622_v1 = vadd.s32 64, %v494_v42  ;;  %v8185_v61 = vld [vmem:[#allocation35_spill] sm:$0xff]  ;;  %v8186_v52 = vmov 0  ;;  %v498_v42 = vld [vmem:[%s5740_s19 + $0x3b8] sm:$0xff] }
 0x1d1   : > { %vm1728_vm15 = vmor %vm1088_vm7, %vm1600_vm9  ;;  %vm1090_vm9 = vcmp.eq.s32.totalorder %v5999_v17, %v8177_v29  ;;  %v624_v29 = vadd.s32 64, %v496_v55  ;;  %v500_v55 = vld [vmem:[%s5740_s19 + $0x3c8] sm:$0xff] }
 0x1d2   : > { %vm6657_vm2 = vmpackc.low %vm1728_vm15, %vm1727_vm11 }
 0x1d3   : > { %v1361_v32 = vpop.permute.xlu1 %1360  ;;  %5075 = vmatmul.mubr.msk.bf16.vlgmr.msra.gmra.mrb[0].mxu0 %vm6030_vm14, %v8016_v8  ;;  %v1358_v36 = vpop.permute.xlu0 %1357  ;;  %4851 = vmatmul.mubr.msk.bf16.gmra.mrb[64].mxu1 %vm6657_vm2, %v8016_v8  ;;  %vm1729_vm7 = vmor %vm1089_vm4, %vm1601_vm1  ;;  %vm1091_vm1 = vcmp.eq.s32.totalorder %v5999_v17, %v8180_v6  ;;  %vm1092_vm4 = vcmp.eq.s32.totalorder %v5999_v17, %v8181_v48  ;;  %v8196_v48 = vld [vmem:[#allocation42_spill] sm:$0xff] }
 0x1d4   : > { %vm1602_vm8 = vcmp.eq.s32.totalorder %v5999_v17, %v1358_v36  ;;  %977 = vperm.xlu1 %5485, %v364_v60   ;;  %974 = vperm.xlu0 %5484, %v363_v63   ;;  %vm1603_vm14 = vcmp.eq.s32.totalorder %v5999_v17, %v1361_v32  ;;  %v368_v60 = vld [vmem:[%s5564_s24 + $0x3a8] sm:$0xff]  ;;  %v367_v63 = vld [vmem:[%s5564_s24 + $0x3a0] sm:$0xff]  ;;  %v8190_v32 = vmov 0 }
 0x1d5   : > { %5078 = vmatprep.mubr.msk.bf16.mxu0 %vm6053_vm5, %v8016_v8  ;;  %vm1730_vm11 = vmor %vm1090_vm9, %vm1602_vm8 }
 0x1d6   : > { %vm6676_vm15 = vmpackc.low %vm1730_vm11, %vm1729_vm7 }
 0x1d7   : > { %v1367_v26 = vpop.permute.xlu1 %1366  ;;  %v1364_v25 = vpop.permute.xlu0 %1363  ;;  %4854 = vmatprep.mubr.msk.bf16.mxu1 %vm6676_vm15, %v8016_v8  ;;  %vm1731_vm8 = vmor %vm1091_vm1, %vm1603_vm14  ;;  %vm1093_vm14 = vcmp.eq.s32.totalorder %v5999_v17, %v8184_v50 }
 0x1d8   : > { %vm1604_vm5 = vcmp.eq.s32.totalorder %v5999_v17, %v1364_v25  ;;  %1489 = vperm.xlu1 %5485, %v620_v10   ;;  %1486 = vperm.xlu0 %5484, %v619_v35   ;;  %vm1605_vm9 = vcmp.eq.s32.totalorder %v5999_v17, %v1367_v26  ;;  %v8192_v10 = vld [vmem:[#allocation40_spill] sm:$0xff]  ;;  %v8193_v35 = vld [vmem:[#allocation39_spill] sm:$0xff]  ;;  %v8194_v26 = vmov 0 }
 0x1d9   : > { %vm1732_vm7 = vmor %vm1092_vm4, %vm1604_vm5  ;;  %vm1094_vm5 = vcmp.eq.s32.totalorder %v5999_v17, %v8185_v61  ;;  %v626_v61 = vadd.s32 64, %v498_v42  ;;  %v502_v42 = vld [vmem:[%s5740_s19 + $0x3d8] sm:$0xff] }
 0x1da   : > { %vm6693_vm11 = vmpackc.low %vm1732_vm7, %vm1731_vm8 }
 0x1db   : > { %v1373_v43 = vpop.permute.xlu1 %1372  ;;  %5079 = vmatmul.mubr.msk.bf16.gmra.mrb[4].mxu0 %vm6078_vm13, %v8016_v8  ;;  %v1370_v41 = vpop.permute.xlu0 %1369  ;;  %4855 = vmatmul.mubr.msk.bf16.gmra.mrb[68].mxu1 %vm6693_vm11, %v8016_v8  ;;  %vm1733_vm4 = vmor %vm1093_vm14, %vm1605_vm9  ;;  %vm1095_vm9 = vcmp.eq.s32.totalorder %v5999_v17, %v8188_v9  ;;  %vm1096_vm14 = vcmp.eq.s32.totalorder %v5999_v17, %v8189_v7  ;;  %v8206_v7 = vld [vmem:[#allocation46_spill] sm:$0xff] }
 0x1dc   : > { %vm1606_vm1 = vcmp.eq.s32.totalorder %v5999_v17, %v1370_v41  ;;  %983 = vperm.xlu1 %5485, %v366_v21   ;;  %980 = vperm.xlu0 %5484, %v365_v57   ;;  %vm1607_vm13 = vcmp.eq.s32.totalorder %v5999_v17, %v1373_v43  ;;  %v370_v21 = vld [vmem:[%s5564_s24 + $0x3b8] sm:$0xff]  ;;  %v369_v57 = vld [vmem:[%s5564_s24 + $0x3b0] sm:$0xff]  ;;  %v8198_v43 = vmov 0 }
 0x1dd   : > { %5082 = vmatprep.mubr.msk.bf16.mxu0 %vm6103_vm6, %v8016_v8  ;;  %vm1734_vm8 = vmor %vm1094_vm5, %vm1606_vm1 }
 0x1de   : > { %vm6712_vm7 = vmpackc.low %vm1734_vm8, %vm1733_vm4 }
 0x1df   : > { %v8187_v52 = vsel %vm6712_vm7, 4294967295, %v8186_v52  ;;  %v1379_v56 = vpop.permute.xlu1 %1378  ;;  %v1376_v39 = vpop.permute.xlu0 %1375  ;;  %4858 = vmatprep.mubr.msk.bf16.mxu1 %vm6712_vm7, %v8016_v8  ;;  %vm1735_vm1 = vmor %vm1095_vm9, %vm1607_vm13  ;;  %vm1097_vm13 = vcmp.eq.s32.totalorder %v5999_v17, %v8192_v10 }
 0x1e0   : > { %vm1608_vm6 = vcmp.eq.s32.totalorder %v5999_v17, %v1376_v39  ;;  %1495 = vperm.xlu1 %5485, %v622_v1   ;;  %1492 = vperm.xlu0 %5484, %v621_v47   ;;  %vm1609_vm5 = vcmp.eq.s32.totalorder %v5999_v17, %v1379_v56  ;;  %v8201_v1 = vld [vmem:[#allocation44_spill] sm:$0xff]  ;;  %v8202_v47 = vld [vmem:[#allocation43_spill] sm:$0xff]  ;;  %v8204_v56 = vmov 0 }
 0x1e1   : > { %vm1736_vm4 = vmor %vm1096_vm14, %vm1608_vm6  ;;  %vm1098_vm6 = vcmp.eq.s32.totalorder %v5999_v17, %v8193_v35  ;;  %v628_v35 = vadd.s32 64, %v500_v55 }
 0x1e2   : > { %vm6729_vm8 = vmpackc.low %vm1736_vm4, %vm1735_vm1 }
 0x1e3   : > { %v8191_v32 = vsel %vm6729_vm8, 4294967295, %v8190_v32  ;;  %v1385_v36 = vpop.permute.xlu1 %1384  ;;  %5083 = vmatmul.mubr.msk.bf16.gmra.mrb[8].mxu0 %vm6128_vm0, %v8016_v8  ;;  %v1382_v31 = vpop.permute.xlu0 %1381  ;;  %4859 = vmatmul.mubr.msk.bf16.gmra.mrb[72].mxu1 %vm6729_vm8, %v8016_v8  ;;  %vm1737_vm14 = vmor %vm1097_vm13, %vm1609_vm5  ;;  %vm1099_vm5 = vcmp.eq.s32.totalorder %v5999_v17, %v8196_v48  ;;  %vm1100_vm13 = vcmp.eq.s32.totalorder %v5999_v17, %v8197_v33  ;;  %v8216_v33 = vld [vmem:[#allocation50_spill] sm:$0xff] }
 0x1e4   : > { %vm1610_vm9 = vcmp.eq.s32.totalorder %v5999_v17, %v1382_v31  ;;  %989 = vperm.xlu1 %5485, %v368_v60   ;;  %986 = vperm.xlu0 %5484, %v367_v63   ;;  %vm1611_vm0 = vcmp.eq.s32.totalorder %v5999_v17, %v1385_v36  ;;  %v372_v60 = vld [vmem:[%s5564_s24 + $0x3c8] sm:$0xff]  ;;  %v371_v63 = vld [vmem:[%s5564_s24 + $0x3c0] sm:$0xff]  ;;  %v8208_v36 = vmov 0 }
 0x1e5   : > { %5086 = vmatprep.mubr.msk.bf16.mxu0 %vm6153_vm10, %v8016_v8  ;;  %vm1738_vm1 = vmor %vm1098_vm6, %vm1610_vm9 }
 0x1e6   : > { %vm6748_vm4 = vmpackc.low %vm1738_vm1, %vm1737_vm14 }
 0x1e7   : > { %v8195_v26 = vsel %vm6748_vm4, 4294967295, %v8194_v26  ;;  %v1391_v25 = vpop.permute.xlu1 %1390  ;;  %v1388_v6 = vpop.permute.xlu0 %1387  ;;  %4862 = vmatprep.mubr.msk.bf16.mxu1 %vm6748_vm4, %v8016_v8  ;;  %vm1739_vm9 = vmor %vm1099_vm5, %vm1611_vm0  ;;  %vm8200_vm4 = vnez %v8094_v40  ;;  %vm1101_vm0 = vcmp.eq.s32.totalorder %v5999_v17, %v8201_v1  ;;  %v625_v40 = vadd.s32 64, %v497_v46  ;;  %v501_v46 = vld [vmem:[%s5740_s19 + $0x3d0] sm:$0xff] }
 0x1e8   : > { %vm1612_vm10 = vcmp.eq.s32.totalorder %v5999_v17, %v1388_v6  ;;  %1501 = vperm.xlu1 %5485, %v624_v29   ;;  %1498 = vperm.xlu0 %5484, %v623_v14   ;;  %vm1613_vm6 = vcmp.eq.s32.totalorder %v5999_v17, %v1391_v25  ;;  %v8211_v29 = vld [vmem:[#allocation48_spill] sm:$0xff]  ;;  %v8212_v14 = vld [vmem:[#allocation47_spill] sm:$0xff]  ;;  %v8214_v25 = vmov 0 }
 0x1e9   : > { %vm1740_vm14 = vmor %vm1100_vm13, %vm1612_vm10  ;;  %vm1102_vm10 = vcmp.eq.s32.totalorder %v5999_v17, %v8202_v47  ;;  %v8223_v47 = vmov 0 }
 0x1ea   : > { %vm6765_vm1 = vmpackc.low %vm1740_vm14, %vm1739_vm9 }
 0x1eb   : > { %v8199_v43 = vsel %vm6765_vm1, 4294967295, %v8198_v43  ;;  %v1397_v41 = vpop.permute.xlu1 %1396  ;;  %5087 = vmatmul.mubr.msk.bf16.gmra.mrb[12].mxu0 %vm8200_vm4, %v8016_v8  ;;  %v1394_v50 = vpop.permute.xlu0 %1393  ;;  %4863 = vmatmul.mubr.msk.bf16.gmra.mrb[76].mxu1 %vm6765_vm1, %v8016_v8  ;;  %vm1741_vm13 = vmor %vm1101_vm0, %vm1613_vm6  ;;  %vm8203_vm4 = vnez %v8096_v19  ;;  %vm1103_vm6 = vcmp.eq.s32.totalorder %v5999_v17, %v8206_v7  ;;  %v8207_v19 = vld [vmem:[#allocation45_spill] sm:$0xff]  ;;  %v375_v7 = vld [vmem:[%s5564_s24 + $0x3e0] sm:$0xff] }
 0x1ec   : > { %vm1614_vm5 = vcmp.eq.s32.totalorder %v5999_v17, %v1394_v50  ;;  %995 = vperm.xlu1 %5485, %v370_v21   ;;  %992 = vperm.xlu0 %5484, %v369_v57   ;;  %vm1615_vm9 = vcmp.eq.s32.totalorder %v5999_v17, %v1397_v41  ;;  %v374_v21 = vld [vmem:[%s5564_s24 + $0x3d8] sm:$0xff]  ;;  %v373_v57 = vld [vmem:[%s5564_s24 + $0x3d0] sm:$0xff]  ;;  %v8218_v41 = vmov 0 }
 0x1ed   : > { %5090 = vmatprep.mubr.msk.bf16.mxu0 %vm8203_vm4, %v8016_v8  ;;  %vm1742_vm14 = vmor %vm1102_vm10, %vm1614_vm5  ;;  %vm1104_vm5 = vcmp.eq.s32.totalorder %v5999_v17, %v8207_v19  ;;  %v503_v19 = vld [vmem:[%s5740_s19 + $0x3e0] sm:$0xff] }
 0x1ee   : > { %vm6784_vm1 = vmpackc.low %vm1742_vm14, %vm1741_vm13 }
 0x1ef   : > { %v8205_v56 = vsel %vm6784_vm1, 4294967295, %v8204_v56  ;;  %v1403_v39 = vpop.permute.xlu1 %1402  ;;  %v1400_v9 = vpop.permute.xlu0 %1399  ;;  %4866 = vmatprep.mubr.msk.bf16.mxu1 %vm6784_vm1, %v8016_v8  ;;  %vm1743_vm10 = vmor %vm1103_vm6, %vm1615_vm9  ;;  %vm8210_vm1 = vnez %v8098_v51  ;;  %vm1105_vm9 = vcmp.eq.s32.totalorder %v5999_v17, %v8211_v29  ;;  %v627_v51 = vadd.s32 64, %v499_v27  ;;  %v506_v29 = vld [vmem:[%s5740_s19 + $0x3f8] sm:$0xff] }
 0x1f0   : > { %vm1616_vm0 = vcmp.eq.s32.totalorder %v5999_v17, %v1400_v9  ;;  %1507 = vperm.xlu1 %5485, %v626_v61   ;;  %1504 = vperm.xlu0 %5484, %v625_v40   ;;  %vm1617_vm13 = vcmp.eq.s32.totalorder %v5999_v17, %v1403_v39  ;;  %v8221_v61 = vld [vmem:[#allocation51_spill] sm:$0xff]  ;;  %v631_v27 = vadd.s32 64, %v503_v19 }
 0x1f1   : > { %vm1744_vm4 = vmor %vm1104_vm5, %vm1616_vm0  ;;  %vm1106_vm0 = vcmp.eq.s32.totalorder %v5999_v17, %v8212_v14  ;;  %v504_v9 = vld [vmem:[%s5740_s19 + $0x3e8] sm:$0xff]  ;;  %v8229_v14 = vmov 0 }
 0x1f2   : > { %vm6801_vm14 = vmpackc.low %vm1744_vm4, %vm1743_vm10 }
 0x1f3   : > { %v8209_v36 = vsel %vm6801_vm14, 4294967295, %v8208_v36  ;;  %v1409_v31 = vpop.permute.xlu1 %1408  ;;  %5091 = vmatmul.mubr.msk.bf16.gmra.mrb[16].mxu0 %vm8210_vm1, %v8016_v8  ;;  %v1406_v10 = vpop.permute.xlu0 %1405  ;;  %4867 = vmatmul.mubr.msk.bf16.gmra.mrb[80].mxu1 %vm6801_vm14, %v8016_v8  ;;  %vm1745_vm5 = vmor %vm1105_vm9, %vm1617_vm13  ;;  %vm8213_vm1 = vnez %v8100_v23  ;;  %vm1107_vm13 = vcmp.eq.s32.totalorder %v5999_v17, %v8216_v33  ;;  %v8217_v23 = vld [vmem:[#allocation49_spill] sm:$0xff] }
 0x1f4   : > { %vm1618_vm6 = vcmp.eq.s32.totalorder %v5999_v17, %v1406_v10  ;;  %1001 = vperm.xlu1 %5485, %v372_v60   ;;  %998 = vperm.xlu0 %5484, %v371_v63   ;;  %vm1619_vm10 = vcmp.eq.s32.totalorder %v5999_v17, %v1409_v31  ;;  %v8225_v60 = vmov 0  ;;  %v378_v10 = vld [vmem:[%s5564_s24 + $0x3f8] sm:$0xff] }
 0x1f5   : > { %5094 = vmatprep.mubr.msk.bf16.mxu0 %vm8213_vm1, %v8016_v8  ;;  %vm1746_vm4 = vmor %vm1106_vm0, %vm1618_vm6  ;;  %vm1108_vm6 = vcmp.eq.s32.totalorder %v5999_v17, %v8217_v23 }
 0x1f6   : > { %vm6820_vm14 = vmpackc.low %vm1746_vm4, %vm1745_vm5  ;;  %vm1109_vm4 = vcmp.eq.s32.totalorder %v5999_v17, %v5993_v53  ;;  %v630_v53 = vadd.s32 64, %v502_v42 }
 0x1f7   : > { %v8215_v25 = vsel %vm6820_vm14, 4294967295, %v8214_v25  ;;  %v1415_v6 = vpop.permute.xlu1 %1414  ;;  %v1412_v48 = vpop.permute.xlu0 %1411  ;;  %4870 = vmatprep.mubr.msk.bf16.mxu1 %vm6820_vm14, %v8016_v8  ;;  %vm1747_vm0 = vmor %vm1107_vm13, %vm1619_vm10  ;;  %vm8220_vm14 = vnez %v8102_v34  ;;  %vm1110_vm10 = vcmp.eq.s32.totalorder %v5999_v17, %v8221_v61  ;;  %v629_v34 = vadd.s32 64, %v501_v46 }
 0x1f8   : > { %vm1620_vm9 = vcmp.eq.s32.totalorder %v5999_v17, %v1412_v48  ;;  %1513 = vperm.xlu1 %5485, %v628_v35   ;;  %vm1621_vm5 = vcmp.eq.s32.totalorder %v5999_v17, %v1415_v6  ;;  %1510 = vperm.xlu0 %5484, %v627_v51   ;;  %v505_v35 = vld [vmem:[%s5740_s19 + $0x3f0] sm:$0xff]  ;;  %v634_v48 = vadd.s32 64, %v506_v29 }
 0x1f9   : > { %vm1748_vm1 = vmor %vm1108_vm6, %vm1620_vm9  ;;  %v633_v33 = vadd.s32 64, %v505_v35 }
 0x1fa   : > { %vm6839_vm8 = vmpackc.low %vm1748_vm1, %vm1747_vm0 }
 0x1fb   : > { %v8219_v41 = vsel %vm6839_vm8, 4294967295, %v8218_v41  ;;  %v912_v50 = vpop.permute.xlu1 %911  ;;  %5095 = vmatmul.mubr.msk.bf16.gmra.mrb[20].mxu0 %vm8220_vm14, %v8016_v8  ;;  %v1418_v1 = vpop.permute.xlu0 %1417  ;;  %vm1749_vm13 = vmor %vm1109_vm4, %vm1621_vm5  ;;  %4871 = vmatmul.mubr.msk.bf16.gmra.mrb[84].mxu1 %vm6839_vm8, %v8016_v8  ;;  %vm8222_vm14 = vnez %v8104_v4  ;;  %v376_v4 = vld [vmem:[%s5564_s24 + $0x3e8] sm:$0xff] }
 0x1fc   : > { %vm1622_vm9 = vcmp.eq.s32.totalorder %v5999_v17, %v1418_v1  ;;  %1007 = vperm.xlu1 %5485, %v374_v21   ;;  %1004 = vperm.xlu0 %5484, %v373_v57   ;;  %vm1112_vm5 = vcmp.eq.s32.totalorder %v5999_v17, %v912_v50 }
 0x1fd   : > { %vm1750_vm6 = vmor %vm1110_vm10, %vm1622_vm9  ;;  %5098 = vmatprep.mubr.msk.bf16.mxu0 %vm8222_vm14, %v8016_v8  ;;  %vm1111_vm10 = vcmp.eq.s32.totalorder %v5999_v17, %v5997_v30  ;;  %vm8227_vm14 = vnez %v8106_v3  ;;  %v632_v30 = vadd.s32 64, %v504_v9 }
 0x1fe   : > { %vm6855_vm0 = vmpackc.low %vm1750_vm6, %vm1749_vm13 }
 0x1ff   : > { %v8224_v47 = vsel %vm6855_vm0, 4294967295, %v8223_v47  ;;  %v1424_v40 = vpop.permute.xlu1 %1423  ;;  %4874 = vmatprep.mubr.msk.bf16.mxu1 %vm6855_vm0, %v8016_v8  ;;  %v1421_v39 = vpop.permute.xlu0 %1420  ;;  %vm8237_vm0 = vnez %v8116_v11 }
 0x200   : > { %vm1624_vm1 = vcmp.eq.s32.totalorder %v5999_v17, %v1424_v40  ;;  %vm1623_vm4 = vcmp.eq.s32.totalorder %v5999_v17, %v1421_v39  ;;  %1519 = vperm.xlu1 %5485, %v630_v53   ;;  %1516 = vperm.xlu0 %5484, %v629_v34  }
 0x201   : > { %vm1752_vm13 = vmor %vm1112_vm5, %vm1624_vm1  ;;  %vm8228_vm5 = vnez %v8108_v2  ;;  %v377_v2 = vld [vmem:[%s5564_s24 + $0x3f0] sm:$0xff] }
 0x202   : > { %vm1751_vm9 = vmor %vm1111_vm10, %vm1623_vm4 }
 0x203   : > { %vm6871_vm6 = vmpackc.low %vm1752_vm13, %vm1751_vm9  ;;  %v918_v55 = vpop.permute.xlu1 %917  ;;  %5099 = vmatmul.mubr.msk.bf16.gmra.mrb[24].mxu0 %vm8227_vm14, %v8016_v8  ;;  %v915_v63 = vpop.permute.xlu0 %914 }
 0x204   : > { %v8226_v60 = vsel %vm6871_vm6, 4294967295, %v8225_v60  ;;  %4875 = vmatmul.mubr.msk.bf16.gmra.mrb[88].mxu1 %vm6871_vm6, %v8016_v8  ;;  %1013 = vperm.xlu1 %5485, %v376_v4   ;;  %vm1114_vm1 = vcmp.eq.s32.totalorder %v5999_v17, %v918_v55  ;;  %vm1113_vm13 = vcmp.eq.s32.totalorder %v5999_v17, %v915_v63  ;;  %vm8231_vm6 = vnez %v8110_v37 }
 0x205   : > { %1010 = vperm.xlu0 %5484, %v375_v7   ;;  %5102 = vmatprep.mubr.msk.bf16.mxu0 %vm8228_vm5, %v8016_v8  ;;  %v8233_v37 = vmov 0 }
 0x207   : > { %v1430_v31 = vpop.permute.xlu1 %1429  ;;  %v1427_v3 = vpop.permute.xlu0 %1426 }
 0x208   : > { %vm1626_vm4 = vcmp.eq.s32.totalorder %v5999_v17, %v1430_v31  ;;  %vm1625_vm10 = vcmp.eq.s32.totalorder %v5999_v17, %v1427_v3  ;;  %1525 = vperm.xlu1 %5485, %v632_v30  }
 0x209   : > { %vm1754_vm9 = vmor %vm1114_vm1, %vm1626_vm4  ;;  %1522 = vperm.xlu0 %5484, %v631_v27   ;;  %vm8232_vm1 = vnez %v8112_v59 }
 0x20a   : > { %vm1753_vm14 = vmor %vm1113_vm13, %vm1625_vm10 }
 0x20b   : > { %vm6892_vm5 = vmpackc.low %vm1754_vm9, %vm1753_vm14  ;;  %v924_v51 = vpop.permute.xlu1 %923  ;;  %5103 = vmatmul.mubr.msk.bf16.gmra.mrb[28].mxu0 %vm8231_vm6, %v8016_v8  ;;  %v921_v6 = vpop.permute.xlu0 %920 }
 0x20c   : > { %v8230_v14 = vsel %vm6892_vm5, 4294967295, %v8229_v14  ;;  %4878 = vmatprep.mubr.msk.bf16.mxu1 %vm6892_vm5, %v8016_v8  ;;  %1019 = vperm.xlu1 %5485, %v378_v10   ;;  %vm1116_vm4 = vcmp.eq.s32.totalorder %v5999_v17, %v924_v51  ;;  %vm1115_vm13 = vcmp.eq.s32.totalorder %v5999_v17, %v921_v6 }
 0x20d   : > { %5106 = vmatprep.mubr.msk.bf16.mxu0 %vm8232_vm1, %v8016_v8  ;;  %1016 = vperm.xlu0 %5484, %v377_v2   ;;  %vm8236_vm1 = vnez %v8114_v12  ;;  %v8238_v12 = vmov 0 }
 0x20f   : > { %v1436_v23 = vpop.permute.xlu1 %1435  ;;  %v1433_v21 = vpop.permute.xlu0 %1432 }
 0x210   : > { %vm1628_vm10 = vcmp.eq.s32.totalorder %v5999_v17, %v1436_v23  ;;  %vm1627_vm6 = vcmp.eq.s32.totalorder %v5999_v17, %v1433_v21  ;;  %1531 = vperm.xlu1 %5485, %v634_v48  }
 0x211   : > { %vm1756_vm9 = vmor %vm1116_vm4, %vm1628_vm10  ;;  %1528 = vperm.xlu0 %5484, %v633_v33  }
 0x212   : > { %vm1755_vm14 = vmor %vm1115_vm13, %vm1627_vm6 }
 0x213   : > { %vm6909_vm5 = vmpackc.low %vm1756_vm9, %vm1755_vm14  ;;  %v930_v59 = vpop.permute.xlu1 %929  ;;  %5107 = vmatmul.mubr.msk.bf16.gmra.mrb[32].mxu0 %vm8236_vm1, %v8016_v8  ;;  %v927_v42 = vpop.permute.xlu0 %926 }
 0x214   : > { %v8234_v37 = vsel %vm6909_vm5, 4294967295, %v8233_v37  ;;  %4879 = vmatmul.mubr.msk.bf16.gmra.mrb[92].mxu1 %vm6909_vm5, %v8016_v8  ;;  %5110 = vmatprep.mubr.msk.bf16.mxu0 %vm8237_vm0, %v8016_v8  ;;  %vm1118_vm4 = vcmp.eq.s32.totalorder %v5999_v17, %v930_v59  ;;  %vm1117_vm13 = vcmp.eq.s32.totalorder %v5999_v17, %v927_v42  ;;  %vm8240_vm0 = vnez %v8119_v16 }
 0x215   : > { %8235 = vst [vmem:[#allocation2_spill] sm:$0xff] %v8234_v37  ;;  %vm8241_vm5 = vnez %v8123_v13 }
 0x217   : > { %v1442_v57 = vpop.permute.xlu1 %1441  ;;  %v1439_v46 = vpop.permute.xlu0 %1438 }
 0x218   : > { %vm1630_vm10 = vcmp.eq.s32.totalorder %v5999_v17, %v1442_v57  ;;  %vm1629_vm6 = vcmp.eq.s32.totalorder %v5999_v17, %v1439_v46 }
 0x219   : > { %vm1758_vm9 = vmor %vm1118_vm4, %vm1630_vm10 }
 0x21a   : > { %vm1757_vm14 = vmor %vm1117_vm13, %vm1629_vm6 }
 0x21b   : > { %vm6926_vm1 = vmpackc.low %vm1758_vm9, %vm1757_vm14  ;;  %v936_v50 = vpop.permute.xlu1 %935  ;;  %5111 = vmatmul.mubr.msk.bf16.gmra.mrb[36].mxu0 %vm8240_vm0, %v8016_v8  ;;  %v933_v11 = vpop.permute.xlu0 %932 }
 0x21c   : > { %v8239_v12 = vsel %vm6926_vm1, 4294967295, %v8238_v12  ;;  %4882 = vmatprep.mubr.msk.bf16.mxu1 %vm6926_vm1, %v8016_v8  ;;  %5114 = vmatprep.mubr.msk.bf16.mxu0 %vm8241_vm5, %v8016_v8  ;;  %vm1120_vm4 = vcmp.eq.s32.totalorder %v5999_v17, %v936_v50  ;;  %vm1119_vm13 = vcmp.eq.s32.totalorder %v5999_v17, %v933_v11  ;;  %vm8244_vm5 = vnez %v8127_v0 }
 0x21d   : > { %vm8245_vm1 = vnez %v8131_v44  ;;  %v8246_v44 = vmov 0 }
 0x21f   : > { %v1448_v1 = vpop.permute.xlu1 %1447  ;;  %v1445_v61 = vpop.permute.xlu0 %1444 }
 0x220   : > { %vm1632_vm10 = vcmp.eq.s32.totalorder %v5999_v17, %v1448_v1  ;;  %vm1631_vm6 = vcmp.eq.s32.totalorder %v5999_v17, %v1445_v61 }
 0x221   : > { %vm1760_vm9 = vmor %vm1120_vm4, %vm1632_vm10 }
 0x222   : > { %vm1759_vm14 = vmor %vm1119_vm13, %vm1631_vm6 }
 0x223   : > { %vm6943_vm0 = vmpackc.low %vm1760_vm9, %vm1759_vm14  ;;  %v942_v53 = vpop.permute.xlu1 %941  ;;  %5115 = vmatmul.mubr.msk.bf16.gmra.mrb[40].mxu0 %vm8244_vm5, %v8016_v8  ;;  %v939_v13 = vpop.permute.xlu0 %938  ;;  %vm8248_vm5 = vnez %v8135_v22 }
 0x224   : > { %4883 = vmatmul.mubr.msk.bf16.gmra.mrb[96].mxu1 %vm6943_vm0, %v8016_v8  ;;  %5118 = vmatprep.mubr.msk.bf16.mxu0 %vm8245_vm1, %v8016_v8  ;;  %vm1122_vm4 = vcmp.eq.s32.totalorder %v5999_v17, %v942_v53  ;;  %vm1121_vm6 = vcmp.eq.s32.totalorder %v5999_v17, %v939_v13 }
 0x226   : > { %v6956_v34 = vpop.f32.mrb[0].mxu1 }
 0x227   : > { %v1454_v40 = vpop.permute.xlu1 %1453  ;;  %v6958_v39 = vpop.f32.mrb[1].mxu1 }
 0x228   : > { %vm1634_vm10 = vcmp.eq.s32.totalorder %v5999_v17, %v1454_v40  ;;  %v1451_v0 = vpop.permute.xlu0 %1450  ;;  %v6962_v4 = vpop.f32.mrb[2].mxu1 }
 0x229   : > { %vm1762_vm13 = vmor %vm1122_vm4, %vm1634_vm10  ;;  %vm1633_vm9 = vcmp.eq.s32.totalorder %v5999_v17, %v1451_v0  ;;  %v6966_v9 = vpop.f32.mrb[3].mxu1  ;;  %vm8249_vm4 = vnez %v8139_v28  ;;  %v8250_v28 = vmov 0 }
 0x22a   : > { %vm1761_vm1 = vmor %vm1121_vm6, %vm1633_vm9 }
 0x22b   : > { %vm6968_vm14 = vmpackc.low %vm1762_vm13, %vm1761_vm1  ;;  %v948_v7 = vpop.permute.xlu1 %947  ;;  %5119 = vmatmul.mubr.msk.bf16.gmra.mrb[44].mxu0 %vm8248_vm5, %v8016_v8 }
 0x22c   : > { %v8247_v44 = vsel %vm6968_vm14, 4294967295, %v8246_v44  ;;  %4886 = vmatprep.mubr.msk.bf16.mxu1 %vm6968_vm14, %v8016_v8  ;;  %v945_v19 = vpop.permute.xlu0 %944  ;;  %5122 = vmatprep.mubr.msk.bf16.mxu0 %vm8249_vm4, %v8016_v8  ;;  %vm1124_vm10 = vcmp.eq.s32.totalorder %v5999_v17, %v948_v7  ;;  %vm8252_vm14 = vnez %v8143_v15 }
 0x22d   : > { %vm1123_vm13 = vcmp.eq.s32.totalorder %v5999_v17, %v945_v19 }
 0x22e   : > { %v6981_v55 = vpop.f32.mrb[4].mxu1 }
 0x22f   : > { %v1460_v63 = vpop.permute.xlu1 %1459  ;;  %v6983_v30 = vpop.f32.mrb[5].mxu1 }
 0x230   : > { %vm1636_vm6 = vcmp.eq.s32.totalorder %v5999_v17, %v1460_v63  ;;  %v1457_v22 = vpop.permute.xlu0 %1456  ;;  %v6987_v27 = vpop.f32.mrb[6].mxu1 }
 0x231   : > { %vm1764_vm9 = vmor %vm1124_vm10, %vm1636_vm6  ;;  %vm1635_vm1 = vcmp.eq.s32.totalorder %v5999_v17, %v1457_v22  ;;  %v6991_v31 = vpop.f32.mrb[7].mxu1  ;;  %vm8253_vm10 = vnez %v8147_v45  ;;  %v8254_v45 = vmov 0 }
 0x232   : > { %vm1763_vm5 = vmor %vm1123_vm13, %vm1635_vm1 }
 0x233   : > { %vm6993_vm4 = vmpackc.low %vm1764_vm9, %vm1763_vm5  ;;  %v954_v3 = vpop.permute.xlu1 %953  ;;  %5123 = vmatmul.mubr.msk.bf16.gmra.mrb[48].mxu0 %vm8252_vm14, %v8016_v8 }
 0x234   : > { %v8251_v28 = vsel %vm6993_vm4, 4294967295, %v8250_v28  ;;  %4887 = vmatmul.mubr.msk.bf16.gmra.mrb[100].mxu1 %vm6993_vm4, %v8016_v8  ;;  %v951_v10 = vpop.permute.xlu0 %950  ;;  %5126 = vmatprep.mubr.msk.bf16.mxu0 %vm8253_vm10, %v8016_v8  ;;  %vm1126_vm6 = vcmp.eq.s32.totalorder %v5999_v17, %v954_v3  ;;  %vm8256_vm4 = vnez %v8151_v5 }
 0x235   : > { %vm1125_vm14 = vcmp.eq.s32.totalorder %v5999_v17, %v951_v10  ;;  %v8264_v10 = vmov 0 }
 0x236   : > { %v7006_v29 = vpop.f32.mrb[8].mxu1 }
 0x237   : > { %v1466_v2 = vpop.permute.xlu1 %1465  ;;  %v7008_v35 = vpop.f32.mrb[9].mxu1 }
 0x238   : > { %vm1638_vm13 = vcmp.eq.s32.totalorder %v5999_v17, %v1466_v2  ;;  %v1463_v15 = vpop.permute.xlu0 %1462  ;;  %v7012_v51 = vpop.f32.mrb[10].mxu1 }
 0x239   : > { %vm1766_vm9 = vmor %vm1126_vm6, %vm1638_vm13  ;;  %vm1637_vm1 = vcmp.eq.s32.totalorder %v5999_v17, %v1463_v15  ;;  %v7016_v6 = vpop.f32.mrb[11].mxu1  ;;  %vm8257_vm6 = vnez %v8155_v18 }
 0x23a   : > { %vm1765_vm5 = vmor %vm1125_vm14, %vm1637_vm1 }
 0x23b   : > { %vm7018_vm10 = vmpackc.low %vm1766_vm9, %vm1765_vm5  ;;  %v960_v48 = vpop.permute.xlu1 %959  ;;  %5127 = vmatmul.mubr.msk.bf16.gmra.mrb[52].mxu0 %vm8256_vm4, %v8016_v8 }
 0x23c   : > { %v8255_v45 = vsel %vm7018_vm10, 4294967295, %v8254_v45  ;;  %4890 = vmatprep.mubr.msk.bf16.mxu1 %vm7018_vm10, %v8016_v8  ;;  %v957_v33 = vpop.permute.xlu0 %956  ;;  %5130 = vmatprep.mubr.msk.bf16.mxu0 %vm8257_vm6, %v8016_v8  ;;  %vm1128_vm13 = vcmp.eq.s32.totalorder %v5999_v17, %v960_v48  ;;  %vm8260_vm10 = vnez %v8159_v62 }
 0x23d   : > { %vm1127_vm4 = vcmp.eq.s32.totalorder %v5999_v17, %v957_v33 }
 0x23e   : > { %v7031_v23 = vpop.f32.mrb[12].mxu1 }
 0x23f   : > { %v1472_v21 = vpop.permute.xlu1 %1471  ;;  %v7033_v59 = vpop.f32.mrb[13].mxu1 }
 0x240   : > { %vm1640_vm14 = vcmp.eq.s32.totalorder %v5999_v17, %v1472_v21  ;;  %v1469_v5 = vpop.permute.xlu0 %1468  ;;  %v7037_v42 = vpop.f32.mrb[14].mxu1 }
 0x241   : > { %vm1768_vm9 = vmor %vm1128_vm13, %vm1640_vm14  ;;  %vm1639_vm1 = vcmp.eq.s32.totalorder %v5999_v17, %v1469_v5  ;;  %v7041_v57 = vpop.f32.mrb[15].mxu1  ;;  %vm8261_vm13 = vnez %v8163_v38 }
 0x242   : > { %vm1767_vm5 = vmor %vm1127_vm4, %vm1639_vm1 }
 0x243   : > { %vm7043_vm6 = vmpackc.low %vm1768_vm9, %vm1767_vm5  ;;  %v966_v46 = vpop.permute.xlu1 %965  ;;  %5131 = vmatmul.mubr.msk.bf16.gmra.mrb[56].mxu0 %vm8260_vm10, %v8016_v8 }
 0x244   : > { %4891 = vmatmul.mubr.msk.bf16.gmra.mrb[104].mxu1 %vm7043_vm6, %v8016_v8  ;;  %v963_v50 = vpop.permute.xlu0 %962  ;;  %5134 = vmatprep.mubr.msk.bf16.mxu0 %vm8261_vm13, %v8016_v8  ;;  %vm1130_vm14 = vcmp.eq.s32.totalorder %v5999_v17, %v966_v46 }
 0x245   : > { %vm1129_vm10 = vcmp.eq.s32.totalorder %v5999_v17, %v963_v50 }
 0x246   : > { %v7056_v11 = vpop.f32.mrb[16].mxu1 }
 0x247   : > { %v1478_v1 = vpop.permute.xlu1 %1477  ;;  %v7058_v61 = vpop.f32.mrb[17].mxu1 }
 0x248   : > { %vm1642_vm4 = vcmp.eq.s32.totalorder %v5999_v17, %v1478_v1  ;;  %v1475_v62 = vpop.permute.xlu0 %1474  ;;  %v7062_v53 = vpop.f32.mrb[18].mxu1  ;;  %v8270_v1 = vmov 0 }
 0x249   : > { %vm1770_vm9 = vmor %vm1130_vm14, %vm1642_vm4  ;;  %vm1641_vm1 = vcmp.eq.s32.totalorder %v5999_v17, %v1475_v62  ;;  %v7066_v13 = vpop.f32.mrb[19].mxu1 }
 0x24a   : > { %vm1769_vm5 = vmor %vm1129_vm10, %vm1641_vm1 }
 0x24b   : > { %vm7068_vm13 = vmpackc.low %vm1770_vm9, %vm1769_vm5  ;;  %v972_v40 = vpop.permute.xlu1 %971  ;;  %5135 = vmatmul.mubr.msk.bf16.gmra.mrb[60].mxu0 %vm6621_vm3, %v8016_v8 }
 0x24c   : > { %4894 = vmatprep.mubr.msk.bf16.mxu1 %vm7068_vm13, %v8016_v8  ;;  %v969_v0 = vpop.permute.xlu0 %968  ;;  %5138 = vmatprep.mubr.msk.bf16.mxu0 %vm6640_vm12, %v8016_v8  ;;  %vm1132_vm14 = vcmp.eq.s32.totalorder %v5999_v17, %v972_v40 }
 0x24d   : > { %vm1131_vm3 = vcmp.eq.s32.totalorder %v5999_v17, %v969_v0 }
 0x24e   : > { %v7081_v7 = vpop.f32.mrb[20].mxu1 }
 0x24f   : > { %v1484_v19 = vpop.permute.xlu1 %1483  ;;  %v7083_v63 = vpop.f32.mrb[21].mxu1 }
 0x250   : > { %vm1644_vm4 = vcmp.eq.s32.totalorder %v5999_v17, %v1484_v19  ;;  %v1481_v24 = vpop.permute.xlu0 %1480  ;;  %v7087_v22 = vpop.f32.mrb[22].mxu1 }
 0x251   : > { %vm1772_vm10 = vmor %vm1132_vm14, %vm1644_vm4  ;;  %vm1643_vm9 = vcmp.eq.s32.totalorder %v5999_v17, %v1481_v24  ;;  %v7091_v3 = vpop.f32.mrb[23].mxu1 }
 0x252   : > { %vm1771_vm1 = vmor %vm1131_vm3, %vm1643_vm9 }
 0x253   : > { %vm7093_vm5 = vmpackc.low %vm1772_vm10, %vm1771_vm1  ;;  %v978_v2 = vpop.permute.xlu1 %977  ;;  %5139 = vmatmul.mubr.msk.bf16.gmra.mrb[64].mxu0 %vm6657_vm2, %v8016_v8 }
 0x254   : > { %v8265_v10 = vsel %vm7093_vm5, 4294967295, %v8264_v10  ;;  %4895 = vmatmul.mubr.msk.bf16.gmra.mrb[108].mxu1 %vm7093_vm5, %v8016_v8  ;;  %v975_v15 = vpop.permute.xlu0 %974  ;;  %5142 = vmatprep.mubr.msk.bf16.mxu0 %vm6676_vm15, %v8016_v8  ;;  %vm1134_vm14 = vcmp.eq.s32.totalorder %v5999_v17, %v978_v2 }
 0x255   : > { %vm1133_vm3 = vcmp.eq.s32.totalorder %v5999_v17, %v975_v15 }
 0x256   : > { %v7106_v48 = vpop.f32.mrb[24].mxu1 }
 0x257   : > { %8266 = vst [vmem:[#allocation4_spill] sm:$0xff] %v7106_v48  ;;  %v1490_v33 = vpop.permute.xlu1 %1489  ;;  %v7108_v21 = vpop.f32.mrb[25].mxu1 }
 0x258   : > { %8267 = vst [vmem:[#allocation3_spill] sm:$0xff] %v7108_v21  ;;  %vm1646_vm4 = vcmp.eq.s32.totalorder %v5999_v17, %v1490_v33  ;;  %v1487_v5 = vpop.permute.xlu0 %1486  ;;  %v7112_v46 = vpop.f32.mrb[26].mxu1 }
 0x259   : > { %8268 = vst [vmem:[#allocation6_spill] sm:$0xff] %v7112_v46  ;;  %vm1774_vm10 = vmor %vm1134_vm14, %vm1646_vm4  ;;  %vm1645_vm9 = vcmp.eq.s32.totalorder %v5999_v17, %v1487_v5  ;;  %v7116_v50 = vpop.f32.mrb[27].mxu1  ;;  %v8276_v5 = vmov 0 }
 0x25a   : > { %8269 = vst [vmem:[#allocation5_spill] sm:$0xff] %v7116_v50  ;;  %vm1773_vm1 = vmor %vm1133_vm3, %vm1645_vm9 }
 0x25b   : > { %vm7118_vm5 = vmpackc.low %vm1774_vm10, %vm1773_vm1  ;;  %v984_v62 = vpop.permute.xlu1 %983  ;;  %5143 = vmatmul.mubr.msk.bf16.gmra.mrb[68].mxu0 %vm6693_vm11, %v8016_v8 }
 0x25c   : > { %v8271_v1 = vsel %vm7118_vm5, 4294967295, %v8270_v1  ;;  %4898 = vmatprep.mubr.msk.bf16.mxu1 %vm7118_vm5, %v8016_v8  ;;  %v981_v40 = vpop.permute.xlu0 %980  ;;  %5146 = vmatprep.mubr.msk.bf16.mxu0 %vm6712_vm7, %v8016_v8  ;;  %vm1136_vm14 = vcmp.eq.s32.totalorder %v5999_v17, %v984_v62  ;;  %vm8279_vm7 = vnez %v8191_v32 }
 0x25d   : > { %vm1135_vm3 = vcmp.eq.s32.totalorder %v5999_v17, %v981_v40 }
 0x25e   : > { %v7131_v0 = vpop.f32.mrb[28].mxu1 }
 0x25f   : > { %8272 = vst [vmem:[#allocation8_spill] sm:$0xff] %v7131_v0  ;;  %v1496_v19 = vpop.permute.xlu1 %1495  ;;  %v7133_v24 = vpop.f32.mrb[29].mxu1 }
 0x260   : > { %8273 = vst [vmem:[#allocation7_spill] sm:$0xff] %v7133_v24  ;;  %vm1648_vm4 = vcmp.eq.s32.totalorder %v5999_v17, %v1496_v19  ;;  %v1493_v2 = vpop.permute.xlu0 %1492  ;;  %v7137_v15 = vpop.f32.mrb[30].mxu1  ;;  %v8278_v24 = vmov 1.0|1.0  }
 0x261   : > { %8274 = vst [vmem:[#allocation10_spill] sm:$0xff] %v7137_v15  ;;  %vm1776_vm10 = vmor %vm1136_vm14, %vm1648_vm4  ;;  %vm1647_vm9 = vcmp.eq.s32.totalorder %v5999_v17, %v1493_v2  ;;  %v7141_v33 = vpop.f32.mrb[31].mxu1  ;;  %vm8280_vm14 = vnez %v8195_v26 }
 0x262   : > { %8275 = vst [vmem:[#allocation9_spill] sm:$0xff] %v7141_v33  ;;  %vm1775_vm1 = vmor %vm1135_vm3, %vm1647_vm9 }
 0x263   : > { %vm7143_vm5 = vmpackc.low %vm1776_vm10, %vm1775_vm1  ;;  %v990_v8 = vpop.permute.xlu1 %989  ;;  %5147 = vmatmul.mubr.msk.bf16.gmra.mrb[72].mxu0 %vm8279_vm7, %v8278_v24  ;;  %vm8287_vm7 = vnez %v8199_v43 }
 0x264   : > { %v8277_v5 = vsel %vm7143_vm5, 4294967295, %v8276_v5  ;;  %4899 = vmatmul.mubr.msk.bf16.gmra.mrb[112].mxu1 %vm7143_vm5, %v8278_v24  ;;  %v987_v62 = vpop.permute.xlu0 %986  ;;  %5150 = vmatprep.mubr.msk.bf16.mxu0 %vm8280_vm14, %v8278_v24  ;;  %vm1138_vm4 = vcmp.eq.s32.totalorder %v5999_v17, %v990_v8 }
 0x265   : > { %vm1137_vm10 = vcmp.eq.s32.totalorder %v5999_v17, %v987_v62 }
 0x266   : > { %v7156_v40 = vpop.f32.mrb[32].mxu1 }
 0x267   : > { %8281 = vst [vmem:[#allocation12_spill] sm:$0xff] %v7156_v40  ;;  %v1502_v19 = vpop.permute.xlu1 %1501  ;;  %v7158_v2 = vpop.f32.mrb[33].mxu1  ;;  %v8285_v40 = vmov 0 }
 0x268   : > { %8282 = vst [vmem:[#allocation11_spill] sm:$0xff] %v7158_v2  ;;  %vm1650_vm3 = vcmp.eq.s32.totalorder %v5999_v17, %v1502_v19  ;;  %v1499_v33 = vpop.permute.xlu0 %1498  ;;  %v7162_v15 = vpop.f32.mrb[34].mxu1 }
 0x269   : > { %8283 = vst [vmem:[#allocation14_spill] sm:$0xff] %v7162_v15  ;;  %vm1778_vm9 = vmor %vm1138_vm4, %vm1650_vm3  ;;  %vm1649_vm1 = vcmp.eq.s32.totalorder %v5999_v17, %v1499_v33  ;;  %v7166_v0 = vpop.f32.mrb[35].mxu1  ;;  %vm8288_vm4 = vnez %v8205_v56  ;;  %v8359_v16 = vld [vmem:[#allocation9_spill] sm:$0xff] }
 0x26a   : > { %8284 = vst [vmem:[#allocation13_spill] sm:$0xff] %v7166_v0  ;;  %vm1777_vm5 = vmor %vm1137_vm10, %vm1649_vm1 }
 0x26b   : > { %vm7168_vm14 = vmpackc.low %vm1778_vm9, %vm1777_vm5  ;;  %v996_v2 = vpop.permute.xlu1 %995  ;;  %5151 = vmatmul.mubr.msk.bf16.gmra.mrb[76].mxu0 %vm8287_vm7, %v8278_v24  ;;  %vm8295_vm7 = vnez %v8209_v36 }
 0x26c   : > { %v8286_v40 = vsel %vm7168_vm14, 4294967295, %v8285_v40  ;;  %4902 = vmatprep.mubr.msk.bf16.mxu1 %vm7168_vm14, %v8278_v24  ;;  %v993_v8 = vpop.permute.xlu0 %992  ;;  %5154 = vmatprep.mubr.msk.bf16.mxu0 %vm8288_vm4, %v8278_v24  ;;  %vm1140_vm5 = vcmp.eq.s32.totalorder %v5999_v17, %v996_v2 }
 0x26d   : > { %vm1139_vm10 = vcmp.eq.s32.totalorder %v5999_v17, %v993_v8 }
 0x26e   : > { %v7181_v33 = vpop.f32.mrb[36].mxu1 }
 0x26f   : > { %8289 = vst [vmem:[#allocation16_spill] sm:$0xff] %v7181_v33  ;;  %v1508_v62 = vpop.permute.xlu1 %1507  ;;  %v7183_v19 = vpop.f32.mrb[37].mxu1 }
 0x270   : > { %8290 = vst [vmem:[#allocation15_spill] sm:$0xff] %v7183_v19  ;;  %vm1652_vm3 = vcmp.eq.s32.totalorder %v5999_v17, %v1508_v62  ;;  %v1505_v0 = vpop.permute.xlu0 %1504  ;;  %v7187_v15 = vpop.f32.mrb[38].mxu1 }
 0x271   : > { %8291 = vst [vmem:[#allocation18_spill] sm:$0xff] %v7187_v15  ;;  %vm1780_vm9 = vmor %vm1140_vm5, %vm1652_vm3  ;;  %vm1651_vm1 = vcmp.eq.s32.totalorder %v5999_v17, %v1505_v0  ;;  %v7191_v50 = vpop.f32.mrb[39].mxu1  ;;  %vm8296_vm5 = vnez %v8215_v25 }
 0x272   : > { %8292 = vst [vmem:[#allocation17_spill] sm:$0xff] %v7191_v50  ;;  %vm1779_vm4 = vmor %vm1139_vm10, %vm1651_vm1 }
 0x273   : > { %vm7193_vm14 = vmpackc.low %vm1780_vm9, %vm1779_vm4  ;;  %v1002_v19 = vpop.permute.xlu1 %1001  ;;  %5155 = vmatmul.mubr.msk.bf16.gmra.mrb[80].mxu0 %vm8295_vm7, %v8278_v24 }
 0x274   : > { %4903 = vmatmul.mubr.msk.bf16.gmra.mrb[116].mxu1 %vm7193_vm14, %v8278_v24  ;;  %v999_v2 = vpop.permute.xlu0 %998  ;;  %5158 = vmatprep.mubr.msk.bf16.mxu0 %vm8296_vm5, %v8278_v24  ;;  %vm1142_vm4 = vcmp.eq.s32.totalorder %v5999_v17, %v1002_v19 }
 0x275   : > { %vm1141_vm10 = vcmp.eq.s32.totalorder %v5999_v17, %v999_v2 }
 0x276   : > { %v7206_v0 = vpop.f32.mrb[40].mxu1 }
 0x277   : > { %8297 = vst [vmem:[#allocation20_spill] sm:$0xff] %v7206_v0  ;;  %v1514_v8 = vpop.permute.xlu1 %1513  ;;  %v7208_v62 = vpop.f32.mrb[41].mxu1  ;;  %v8301_v0 = vmov 0 }
 0x278   : > { %8298 = vst [vmem:[#allocation19_spill] sm:$0xff] %v7208_v62  ;;  %vm1654_vm3 = vcmp.eq.s32.totalorder %v5999_v17, %v1514_v8  ;;  %v1511_v50 = vpop.permute.xlu0 %1510  ;;  %v7212_v15 = vpop.f32.mrb[42].mxu1 }
 0x279   : > { %8299 = vst [vmem:[#allocation22_spill] sm:$0xff] %v7212_v15  ;;  %vm1782_vm9 = vmor %vm1142_vm4, %vm1654_vm3  ;;  %vm1653_vm1 = vcmp.eq.s32.totalorder %v5999_v17, %v1511_v50  ;;  %v7216_v46 = vpop.f32.mrb[43].mxu1  ;;  %vm8303_vm4 = vnez %v8224_v47  ;;  %v8367_v18 = vld [vmem:[#allocation17_spill] sm:$0xff] }
 0x27a   : > { %8300 = vst [vmem:[#allocation21_spill] sm:$0xff] %v7216_v46  ;;  %vm1781_vm5 = vmor %vm1141_vm10, %vm1653_vm1 }
 0x27b   : > { %vm7218_vm7 = vmpackc.low %vm1782_vm9, %vm1781_vm5  ;;  %v1008_v62 = vpop.permute.xlu1 %1007  ;;  %5159 = vmatmul.mubr.msk.bf16.gmra.mrb[84].mxu0 %vm6839_vm8, %v8278_v24 }
 0x27c   : > { %v8302_v0 = vsel %vm7218_vm7, 4294967295, %v8301_v0  ;;  %4906 = vmatprep.mubr.msk.bf16.mxu1 %vm7218_vm7, %v8278_v24  ;;  %v1005_v19 = vpop.permute.xlu0 %1004  ;;  %5162 = vmatprep.mubr.msk.bf16.mxu0 %vm8303_vm4, %v8278_v24  ;;  %vm1144_vm5 = vcmp.eq.s32.totalorder %v5999_v17, %v1008_v62  ;;  %vm8310_vm7 = vnez %v8226_v60 }
 0x27d   : > { %vm1143_vm10 = vcmp.eq.s32.totalorder %v5999_v17, %v1005_v19 }
 0x27e   : > { %v7231_v50 = vpop.f32.mrb[44].mxu1 }
 0x27f   : > { %8304 = vst [vmem:[#allocation24_spill] sm:$0xff] %v7231_v50  ;;  %v1520_v2 = vpop.permute.xlu1 %1519  ;;  %v7233_v8 = vpop.f32.mrb[45].mxu1  ;;  %v8308_v50 = vmov 0 }
 0x280   : > { %8305 = vst [vmem:[#allocation23_spill] sm:$0xff] %v7233_v8  ;;  %vm1656_vm3 = vcmp.eq.s32.totalorder %v5999_v17, %v1520_v2  ;;  %v1517_v46 = vpop.permute.xlu0 %1516  ;;  %v7237_v15 = vpop.f32.mrb[46].mxu1 }
 0x281   : > { %8306 = vst [vmem:[#allocation26_spill] sm:$0xff] %v7237_v15  ;;  %vm1784_vm9 = vmor %vm1144_vm5, %vm1656_vm3  ;;  %vm1655_vm1 = vcmp.eq.s32.totalorder %v5999_v17, %v1517_v46  ;;  %v7241_v21 = vpop.f32.mrb[47].mxu1  ;;  %vm8311_vm5 = vnez %v8230_v14 }
 0x282   : > { %8307 = vst [vmem:[#allocation25_spill] sm:$0xff] %v7241_v21  ;;  %vm1783_vm4 = vmor %vm1143_vm10, %vm1655_vm1 }
 0x283   : > { %vm7243_vm8 = vmpackc.low %vm1784_vm9, %vm1783_vm4  ;;  %v1014_v8 = vpop.permute.xlu1 %1013  ;;  %5163 = vmatmul.mubr.msk.bf16.gmra.mrb[88].mxu0 %vm8310_vm7, %v8278_v24 }
 0x284   : > { %v8309_v50 = vsel %vm7243_vm8, 4294967295, %v8308_v50  ;;  %4907 = vmatmul.mubr.msk.bf16.gmra.mrb[120].mxu1 %vm7243_vm8, %v8278_v24  ;;  %v1011_v62 = vpop.permute.xlu0 %1010  ;;  %5166 = vmatprep.mubr.msk.bf16.mxu0 %vm8311_vm5, %v8278_v24  ;;  %vm1146_vm4 = vcmp.eq.s32.totalorder %v5999_v17, %v1014_v8  ;;  %vm8318_vm8 = vnez %v8234_v37 }
 0x285   : > { %vm1145_vm10 = vcmp.eq.s32.totalorder %v5999_v17, %v1011_v62 }
 0x286   : > { %v7256_v46 = vpop.f32.mrb[48].mxu1 }
 0x287   : > { %8312 = vst [vmem:[#allocation28_spill] sm:$0xff] %v7256_v46  ;;  %v1526_v19 = vpop.permute.xlu1 %1525  ;;  %v7258_v2 = vpop.f32.mrb[49].mxu1 }
 0x288   : > { %8313 = vst [vmem:[#allocation27_spill] sm:$0xff] %v7258_v2  ;;  %vm1658_vm3 = vcmp.eq.s32.totalorder %v5999_v17, %v1526_v19  ;;  %v1523_v21 = vpop.permute.xlu0 %1522  ;;  %v7262_v15 = vpop.f32.mrb[50].mxu1 }
 0x289   : > { %8314 = vst [vmem:[#allocation30_spill] sm:$0xff] %v7262_v15  ;;  %vm1786_vm9 = vmor %vm1146_vm4, %vm1658_vm3  ;;  %vm1657_vm1 = vcmp.eq.s32.totalorder %v5999_v17, %v1523_v21  ;;  %v7266_v48 = vpop.f32.mrb[51].mxu1  ;;  %vm8319_vm4 = vnez %v8239_v12 }
 0x28a   : > { %8315 = vst [vmem:[#allocation29_spill] sm:$0xff] %v7266_v48  ;;  %vm1785_vm5 = vmor %vm1145_vm10, %vm1657_vm1 }
 0x28b   : > { %vm7268_vm7 = vmpackc.low %vm1786_vm9, %vm1785_vm5  ;;  %v1020_v2 = vpop.permute.xlu1 %1019  ;;  %5167 = vmatmul.mubr.msk.bf16.gmra.mrb[92].mxu0 %vm8318_vm8, %v8278_v24 }
 0x28c   : > { %4910 = vmatprep.mubr.msk.bf16.mxu1 %vm7268_vm7, %v8278_v24  ;;  %v1017_v8 = vpop.permute.xlu0 %1016  ;;  %5170 = vmatprep.mubr.msk.bf16.mxu0 %vm8319_vm4, %v8278_v24  ;;  %vm1148_vm5 = vcmp.eq.s32.totalorder %v5999_v17, %v1020_v2 }
 0x28d   : > { %vm1147_vm10 = vcmp.eq.s32.totalorder %v5999_v17, %v1017_v8 }
 0x28e   : > { %v7281_v21 = vpop.f32.mrb[52].mxu1 }
 0x28f   : > { %8320 = vst [vmem:[#allocation32_spill] sm:$0xff] %v7281_v21  ;;  %v1532_v62 = vpop.permute.xlu1 %1531  ;;  %v7283_v19 = vpop.f32.mrb[53].mxu1 }
 0x290   : > { %vm1660_vm3 = vcmp.eq.s32.totalorder %v5999_v17, %v1532_v62  ;;  %v1529_v48 = vpop.permute.xlu0 %1528  ;;  %v7287_v15 = vpop.f32.mrb[54].mxu1 }
 0x291   : > { %vm1788_vm9 = vmor %vm1148_vm5, %vm1660_vm3  ;;  %vm1659_vm1 = vcmp.eq.s32.totalorder %v5999_v17, %v1529_v48  ;;  %v7291_v37 = vpop.f32.mrb[55].mxu1  ;;  %vm8323_vm5 = vnez %v8247_v44  ;;  %vm8334_vm3 = vnez %v8191_v32  ;;  %v8381_v33 = vld [vmem:[#allocation29_spill] sm:$0xff] }
 0x292   : > { %vm1787_vm4 = vmor %vm1147_vm10, %vm1659_vm1  ;;  %vm8335_vm10 = vnez %v8271_v1  ;;  %vm8337_vm1 = vnez %v8277_v5  ;;  %v8376_v5 = vld [vmem:[#allocation25_spill] sm:$0xff] }
 0x293   : > { %vm7293_vm8 = vmpackc.low %vm1788_vm9, %vm1787_vm4  ;;  %5171 = vmatmul.mubr.msk.bf16.gmra.mrb[96].mxu0 %vm6943_vm0, %v8278_v24  ;;  %vm8326_vm4 = vnez %v8251_v28  ;;  %vm8336_vm9 = vnez %v8195_v26  ;;  %v8363_v28 = vld [vmem:[#allocation13_spill] sm:$0xff] }
 0x294   : > { %4911 = vmatmul.mubr.msk.bf16.gmra.mrb[124].mxu1 %vm7293_vm8, %v8278_v24  ;;  %5174 = vmatprep.mubr.msk.bf16.mxu0 %vm8323_vm5, %v8278_v24 }
 0x295   : > { %4994 = vmatprep.mubr.msk.bf16.mxu1 %vm6640_vm12, %v8278_v24  ;;  %vm8327_vm12 = vnez %v8255_v45 }
 0x296   : > { %v7309_v17 = vpop.f32.mrb[56].mxu1 }
 0x297   : > { %v7311_v48 = vpop.f32.mrb[57].mxu1 }
 0x298   : > { %v7313_v2 = vpop.f32.mrb[58].mxu1 }
 0x299   : > { %8324 = vst [vmem:[#allocation31_spill] sm:$0xff] %v7313_v2  ;;  %v7315_v8 = vpop.f32.mrb[59].mxu1 }
 0x29a   : > { %8325 = vst [vmem:[#allocation34_spill] sm:$0xff] %v7315_v8 }
 0x29b   : > { %5175 = vmatmul.mubr.msk.bf16.gmra.mrb[100].mxu0 %vm8326_vm4, %v8278_v24 }
 0x29c   : > { %4995 = vmatmul.mubr.msk.bf16.vlgmr.msra.gmra.mrb[64].mxu1 %vm6657_vm2, %v8278_v24  ;;  %5178 = vmatprep.mubr.msk.bf16.mxu0 %vm8327_vm12, %v8278_v24  ;;  %vm8332_vm2 = vnez %v8187_v52 }
 0x29d   : > { %4998 = vmatprep.mubr.msk.bf16.mxu1 %vm6676_vm15, %v8278_v24  ;;  %vm3936_vm15 = vcmask 285696  }
 0x29e   : > { %v7329_v49 = vpop.f32.mrb[60].mxu1 }
 0x29f   : > { %8328 = vst [vmem:[#allocation33_spill] sm:$0xff] %v7329_v49  ;;  %v7331_v62 = vpop.f32.mrb[61].mxu1 }
 0x2a0   : > { %8329 = vst [vmem:[#allocation36_spill] sm:$0xff] %v7331_v62  ;;  %v7333_v8 = vpop.f32.mrb[62].mxu1 }
 0x2a1   : > { %8330 = vst [vmem:[#allocation35_spill] sm:$0xff] %v7333_v8  ;;  %v7335_v2 = vpop.f32.mrb[63].mxu1  ;;  %v8384_v21 = vld [vmem:[#allocation34_spill] sm:$0xff] }
 0x2a2   : > { %8331 = vst [vmem:[#allocation38_spill] sm:$0xff] %v7335_v2 }
 0x2a3   : > { %5179 = vmatmul.mubr.msk.bf16.gmra.mrb[104].mxu0 %vm7043_vm6, %v8278_v24 }
 0x2a4   : > { %4999 = vmatmul.mubr.msk.bf16.gmra.mrb[68].mxu1 %vm6693_vm11, %v8278_v24  ;;  %5182 = vmatprep.mubr.msk.bf16.mxu0 %vm7068_vm13, %v8278_v24  ;;  %vm8333_vm11 = vnez %v8265_v10  ;;  %v8371_v10 = vld [vmem:[#allocation21_spill] sm:$0xff] }
 0x2a5   : > { %5002 = vmatprep.mubr.msk.bf16.mxu1 %vm8332_vm2, %v8278_v24  ;;  %vm8338_vm2 = vnez %v8199_v43 }
 0x2a6   : > { %v5076_v58 = vpop.f32.mrb[0].mxu0 }
 0x2a7   : > { %v5218_v20 = vadd.f32 %v5076_v58, %v6956_v34  ;;  %v3297_v54 = vpop.f32.mrb[1].mxu0 }
 0x2a8   : > { %v5219_v2 = vadd.f32 %v3297_v54, %v6958_v39  ;;  %v5077_v8 = vpop.f32.mrb[2].mxu0 }
 0x2a9   : > { %3939 = vst.msk [vmem:[%s7353_s8 + $0x10] sm:$0xff] %vm3936_vm15, %v5218_v20  ;;  %v5220_v52 = vadd.f32 %v5077_v8, %v6962_v4  ;;  %v3300_v62 = vpop.f32.mrb[3].mxu0 }
 0x2aa   : > { %3937 = vst.msk [vmem:[%s7353_s8] sm:$0xff] %vm3936_vm15, %v5219_v2  ;;  %v5221_v49 = vadd.f32 %v3300_v62, %v6966_v9 }
 0x2ab   : > { %3940 = vst.msk [vmem:[%s7353_s8 + $0x18] sm:$0xff] %vm3936_vm15, %v5220_v52  ;;  %5183 = vmatmul.mubr.msk.bf16.gmra.mrb[108].mxu0 %vm8333_vm11, %v8278_v24 }
 0x2ac   : > { %3938 = vst.msk [vmem:[%s7353_s8 + $0x8] sm:$0xff] %vm3936_vm15, %v5221_v49  ;;  %5003 = vmatmul.mubr.msk.bf16.gmra.mrb[72].mxu1 %vm8334_vm3, %v8278_v24  ;;  %5186 = vmatprep.mubr.msk.bf16.mxu0 %vm8335_vm10, %v8278_v24  ;;  %vm8339_vm3 = vnez %v8286_v40 }
 0x2ad   : > { %5006 = vmatprep.mubr.msk.bf16.mxu1 %vm8336_vm9, %v8278_v24  ;;  %vm8340_vm9 = vnez %v8205_v56 }
 0x2ae   : > { %v5080_v34 = vpop.f32.mrb[4].mxu0 }
 0x2af   : > { %v5222_v39 = vadd.f32 %v5080_v34, %v6981_v55  ;;  %v3313_v4 = vpop.f32.mrb[5].mxu0 }
 0x2b0   : > { %v5223_v9 = vadd.f32 %v3313_v4, %v6983_v30  ;;  %v5081_v2 = vpop.f32.mrb[6].mxu0 }
 0x2b1   : > { %3943 = vst.msk [vmem:[%s7353_s8 + $0x30] sm:$0xff] %vm3936_vm15, %v5222_v39  ;;  %v5224_v32 = vadd.f32 %v5081_v2, %v6987_v27  ;;  %v3316_v8 = vpop.f32.mrb[7].mxu0  ;;  %v8353_v2 = vld [vmem:[#allocation3_spill] sm:$0xff] }
 0x2b2   : > { %3941 = vst.msk [vmem:[%s7353_s8 + $0x20] sm:$0xff] %vm3936_vm15, %v5223_v9  ;;  %v5225_v49 = vadd.f32 %v3316_v8, %v6991_v31  ;;  %v8354_v8 = vld [vmem:[#allocation6_spill] sm:$0xff] }
 0x2b3   : > { %3944 = vst.msk [vmem:[%s7353_s8 + $0x38] sm:$0xff] %vm3936_vm15, %v5224_v32  ;;  %5187 = vmatmul.mubr.msk.bf16.gmra.mrb[112].mxu0 %vm8337_vm1, %v8278_v24 }
 0x2b4   : > { %3942 = vst.msk [vmem:[%s7353_s8 + $0x28] sm:$0xff] %vm3936_vm15, %v5225_v49  ;;  %5007 = vmatmul.mubr.msk.bf16.gmra.mrb[76].mxu1 %vm8338_vm2, %v8278_v24  ;;  %5190 = vmatprep.mubr.msk.bf16.mxu0 %vm8339_vm3, %v8278_v24  ;;  %vm8341_vm2 = vnez %v8209_v36  ;;  %vm8343_vm3 = vnez %v8215_v25 }
 0x2b5   : > { %5010 = vmatprep.mubr.msk.bf16.mxu1 %vm8340_vm9, %v8278_v24  ;;  %vm8342_vm9 = vnez %v8302_v0 }
 0x2b6   : > { %v5084_v26 = vpop.f32.mrb[8].mxu0 }
 0x2b7   : > { %v5226_v55 = vadd.f32 %v5084_v26, %v7006_v29  ;;  %v3329_v30 = vpop.f32.mrb[9].mxu0 }
 0x2b8   : > { %v5227_v27 = vadd.f32 %v3329_v30, %v7008_v35  ;;  %v5085_v31 = vpop.f32.mrb[10].mxu0 }
 0x2b9   : > { %3947 = vst.msk [vmem:[%s7353_s8 + $0x50] sm:$0xff] %vm3936_vm15, %v5226_v55  ;;  %v5228_v43 = vadd.f32 %v5085_v31, %v7012_v51  ;;  %v3332_v62 = vpop.f32.mrb[11].mxu0  ;;  %v8355_v55 = vld [vmem:[#allocation5_spill] sm:$0xff] }
 0x2ba   : > { %3945 = vst.msk [vmem:[%s7353_s8 + $0x40] sm:$0xff] %vm3936_vm15, %v5227_v27  ;;  %v5229_v58 = vadd.f32 %v3332_v62, %v7016_v6  ;;  %v8356_v27 = vld [vmem:[#allocation8_spill] sm:$0xff]  ;;  %v8357_v62 = vld [vmem:[#allocation7_spill] sm:$0xff] }
 0x2bb   : > { %3948 = vst.msk [vmem:[%s7353_s8 + $0x58] sm:$0xff] %vm3936_vm15, %v5228_v43  ;;  %5191 = vmatmul.mubr.msk.bf16.gmra.mrb[116].mxu0 %vm7193_vm14, %v8278_v24 }
 0x2bc   : > { %3946 = vst.msk [vmem:[%s7353_s8 + $0x48] sm:$0xff] %vm3936_vm15, %v5229_v58  ;;  %5011 = vmatmul.mubr.msk.bf16.gmra.mrb[80].mxu1 %vm8341_vm2, %v8278_v24  ;;  %5194 = vmatprep.mubr.msk.bf16.mxu0 %vm8342_vm9, %v8278_v24  ;;  %vm8345_vm2 = vnez %v8219_v41  ;;  %vm8346_vm9 = vnez %v8224_v47 }
 0x2bd   : > { %5014 = vmatprep.mubr.msk.bf16.mxu1 %vm8343_vm3, %v8278_v24  ;;  %vm8344_vm3 = vnez %v8309_v50 }
 0x2be   : > { %v5088_v56 = vpop.f32.mrb[12].mxu0 }
 0x2bf   : > { %v5230_v29 = vadd.f32 %v5088_v56, %v7031_v23  ;;  %v3345_v35 = vpop.f32.mrb[13].mxu0 }
 0x2c0   : > { %v5231_v51 = vadd.f32 %v3345_v35, %v7033_v59  ;;  %v5089_v6 = vpop.f32.mrb[14].mxu0 }
 0x2c1   : > { %3951 = vst.msk [vmem:[%s7353_s8 + $0x70] sm:$0xff] %vm3936_vm15, %v5230_v29  ;;  %v5232_v36 = vadd.f32 %v5089_v6, %v7037_v42  ;;  %v3348_v20 = vpop.f32.mrb[15].mxu0  ;;  %v8358_v29 = vld [vmem:[#allocation10_spill] sm:$0xff] }
 0x2c2   : > { %3949 = vst.msk [vmem:[%s7353_s8 + $0x60] sm:$0xff] %vm3936_vm15, %v5231_v51  ;;  %v5233_v54 = vadd.f32 %v3348_v20, %v7041_v57 }
 0x2c3   : > { %3952 = vst.msk [vmem:[%s7353_s8 + $0x78] sm:$0xff] %vm3936_vm15, %v5232_v36  ;;  %5195 = vmatmul.mubr.msk.bf16.gmra.mrb[120].mxu0 %vm8344_vm3, %v8278_v24  ;;  %v8360_v36 = vld [vmem:[#allocation12_spill] sm:$0xff] }
 0x2c4   : > { %3950 = vst.msk [vmem:[%s7353_s8 + $0x68] sm:$0xff] %vm3936_vm15, %v5233_v54  ;;  %5015 = vmatmul.mubr.msk.bf16.gmra.mrb[84].mxu1 %vm8345_vm2, %v8278_v24  ;;  %5198 = vmatprep.mubr.msk.bf16.mxu0 %vm7268_vm7, %v8278_v24  ;;  %vm8348_vm2 = vnez %v8230_v14  ;;  %v8349_v14 = vld [vmem:[#allocation2_spill] sm:$0xff] }
 0x2c5   : > { %5018 = vmatprep.mubr.msk.bf16.mxu1 %vm8346_vm9, %v8278_v24  ;;  %vm8347_vm9 = vnez %v8226_v60 }
 0x2c6   : > { %v5092_v25 = vpop.f32.mrb[16].mxu0 }
 0x2c7   : > { %v5234_v23 = vadd.f32 %v5092_v25, %v7056_v11  ;;  %v3361_v59 = vpop.f32.mrb[17].mxu0  ;;  %v8361_v25 = vld [vmem:[#allocation11_spill] sm:$0xff] }
 0x2c8   : > { %v5235_v42 = vadd.f32 %v3361_v59, %v7058_v61  ;;  %v5093_v57 = vpop.f32.mrb[18].mxu0 }
 0x2c9   : > { %3955 = vst.msk [vmem:[%s7353_s8 + $0x90] sm:$0xff] %vm3936_vm15, %v5234_v23  ;;  %v5236_v41 = vadd.f32 %v5093_v57, %v7062_v53  ;;  %v3364_v52 = vpop.f32.mrb[19].mxu0 }
 0x2ca   : > { %3953 = vst.msk [vmem:[%s7353_s8 + $0x80] sm:$0xff] %vm3936_vm15, %v5235_v42  ;;  %v5237_v34 = vadd.f32 %v3364_v52, %v7066_v13  ;;  %v8362_v42 = vld [vmem:[#allocation14_spill] sm:$0xff] }
 0x2cb   : > { %3956 = vst.msk [vmem:[%s7353_s8 + $0x98] sm:$0xff] %vm3936_vm15, %v5236_v41  ;;  %5199 = vmatmul.mubr.msk.bf16.gmra.mrb[124].mxu0 %vm7293_vm8, %v8278_v24 }
 0x2cc   : > { %3954 = vst.msk [vmem:[%s7353_s8 + $0x88] sm:$0xff] %vm3936_vm15, %v5237_v34  ;;  %5019 = vmatmul.mubr.msk.bf16.gmra.mrb[88].mxu1 %vm8347_vm9, %v8278_v24  ;;  %vm8350_vm9 = vnez %v8349_v14  ;;  %v8364_v34 = vld [vmem:[#allocation16_spill] sm:$0xff] }
 0x2cd   : > { %5022 = vmatprep.mubr.msk.bf16.mxu1 %vm8348_vm2, %v8278_v24  ;;  %vm8351_vm2 = vnez %v8239_v12 }
 0x2ce   : > { %v5096_v47 = vpop.f32.mrb[20].mxu0 }
 0x2cf   : > { %v5238_v11 = vadd.f32 %v5096_v47, %v7081_v7  ;;  %v3377_v61 = vpop.f32.mrb[21].mxu0 }
 0x2d0   : > { %v5239_v53 = vadd.f32 %v3377_v61, %v7083_v63  ;;  %v5097_v13 = vpop.f32.mrb[22].mxu0  ;;  %v8352_v63 = vld [vmem:[#allocation4_spill] sm:$0xff]  ;;  %v8365_v61 = vld [vmem:[#allocation15_spill] sm:$0xff] }
 0x2d1   : > { %3959 = vst.msk [vmem:[%s7353_s8 + $0xb0] sm:$0xff] %vm3936_vm15, %v5238_v11  ;;  %v5240_v39 = vadd.f32 %v5097_v13, %v7087_v22  ;;  %v3380_v4 = vpop.f32.mrb[23].mxu0 }
 0x2d2   : > { %3957 = vst.msk [vmem:[%s7353_s8 + $0xa0] sm:$0xff] %vm3936_vm15, %v5239_v53  ;;  %v5241_v60 = vadd.f32 %v3380_v4, %v7091_v3 }
 0x2d3   : > { %3960 = vst.msk [vmem:[%s7353_s8 + $0xb8] sm:$0xff] %vm3936_vm15, %v5240_v39  ;;  %v8366_v39 = vld [vmem:[#allocation18_spill] sm:$0xff] }
 0x2d4   : > { %3958 = vst.msk [vmem:[%s7353_s8 + $0xa8] sm:$0xff] %vm3936_vm15, %v5241_v60  ;;  %5023 = vmatmul.mubr.msk.bf16.gmra.mrb[92].mxu1 %vm8350_vm9, %v8278_v24 }
 0x2d5   : > { %5026 = vmatprep.mubr.msk.bf16.mxu1 %vm8351_vm2, %v8278_v24 }
 0x2d6   : > { %v5100_v7 = vpop.f32.mrb[24].mxu0 }
 0x2d7   : > { %v5242_v22 = vadd.f32 %v5100_v7, %v8352_v63  ;;  %v3393_v9 = vpop.f32.mrb[25].mxu0  ;;  %v8368_v7 = vld [vmem:[#allocation20_spill] sm:$0xff] }
 0x2d8   : > { %v5243_v32 = vadd.f32 %v3393_v9, %v8353_v2  ;;  %v5101_v3 = vpop.f32.mrb[26].mxu0  ;;  %v8369_v9 = vld [vmem:[#allocation19_spill] sm:$0xff] }
 0x2d9   : > { %3963 = vst.msk [vmem:[%s7353_s8 + $0xd0] sm:$0xff] %vm3936_vm15, %v5242_v22  ;;  %v5244_v49 = vadd.f32 %v5101_v3, %v8354_v8  ;;  %v3396_v26 = vpop.f32.mrb[27].mxu0  ;;  %v8370_v3 = vld [vmem:[#allocation22_spill] sm:$0xff] }
 0x2da   : > { %3961 = vst.msk [vmem:[%s7353_s8 + $0xc0] sm:$0xff] %vm3936_vm15, %v5243_v32  ;;  %v5245_v12 = vadd.f32 %v3396_v26, %v8355_v55  ;;  %v8373_v55 = vld [vmem:[#allocation24_spill] sm:$0xff] }
 0x2db   : > { %3964 = vst.msk [vmem:[%s7353_s8 + $0xd8] sm:$0xff] %vm3936_vm15, %v5244_v49 }
 0x2dc   : > { %3962 = vst.msk [vmem:[%s7353_s8 + $0xc8] sm:$0xff] %vm3936_vm15, %v5245_v12  ;;  %5027 = vmatmul.mubr.msk.bf16.gmra.mrb[96].mxu1 %vm6943_vm0, %v8278_v24  ;;  %vm8372_vm0 = vnez %v8286_v40 }
 0x2dd   : > { %5030 = vmatprep.mubr.msk.bf16.mxu1 %vm8323_vm5, %v8278_v24 }
 0x2de   : > { %v5104_v30 = vpop.f32.mrb[28].mxu0 }
 0x2df   : > { %v5246_v31 = vadd.f32 %v5104_v30, %v8356_v27  ;;  %v3409_v43 = vpop.f32.mrb[29].mxu0  ;;  %v8374_v27 = vld [vmem:[#allocation23_spill] sm:$0xff] }
 0x2e0   : > { %v5247_v58 = vadd.f32 %v3409_v43, %v8357_v62  ;;  %v5105_v56 = vpop.f32.mrb[30].mxu0  ;;  %v8375_v62 = vld [vmem:[#allocation26_spill] sm:$0xff] }
 0x2e1   : > { %3967 = vst.msk [vmem:[%s7353_s8 + $0xf0] sm:$0xff] %vm3936_vm15, %v5246_v31  ;;  %v5248_v35 = vadd.f32 %v5105_v56, %v8358_v29  ;;  %v3412_v51 = vpop.f32.mrb[31].mxu0 }
 0x2e2   : > { %3965 = vst.msk [vmem:[%s7353_s8 + $0xe0] sm:$0xff] %vm3936_vm15, %v5247_v58  ;;  %v5249_v44 = vadd.f32 %v3412_v51, %v8359_v16 }
 0x2e3   : > { %3968 = vst.msk [vmem:[%s7353_s8 + $0xf8] sm:$0xff] %vm3936_vm15, %v5248_v35  ;;  %v8378_v35 = vld [vmem:[#allocation28_spill] sm:$0xff] }
 0x2e4   : > { %3966 = vst.msk [vmem:[%s7353_s8 + $0xe8] sm:$0xff] %vm3936_vm15, %v5249_v44  ;;  %5031 = vmatmul.mubr.msk.bf16.gmra.mrb[100].mxu1 %vm8326_vm4, %v8278_v24  ;;  %v8379_v44 = vld [vmem:[#allocation27_spill] sm:$0xff] }
 0x2e5   : > { %5034 = vmatprep.mubr.msk.bf16.mxu1 %vm8327_vm12, %v8278_v24 }
 0x2e6   : > { %v5108_v6 = vpop.f32.mrb[32].mxu0 }
 0x2e7   : > { %v5250_v20 = vadd.f32 %v5108_v6, %v8360_v36  ;;  %v3425_v54 = vpop.f32.mrb[33].mxu0 }
 0x2e8   : > { %v5251_v23 = vadd.f32 %v3425_v54, %v8361_v25  ;;  %v5109_v59 = vpop.f32.mrb[34].mxu0 }
 0x2e9   : > { %3971 = vst.msk [vmem:[%s7353_s8 + $0x110] sm:$0xff] %vm3936_vm15, %v5250_v20  ;;  %v5252_v57 = vadd.f32 %v5109_v59, %v8362_v42  ;;  %v3428_v41 = vpop.f32.mrb[35].mxu0  ;;  %v8380_v20 = vld [vmem:[#allocation30_spill] sm:$0xff]  ;;  %v8382_v59 = vld [vmem:[#allocation32_spill] sm:$0xff] }
 0x2ea   : > { %3969 = vst.msk [vmem:[%s7353_s8 + $0x100] sm:$0xff] %vm3936_vm15, %v5251_v23  ;;  %v5253_v45 = vadd.f32 %v3428_v41, %v8363_v28 }
 0x2eb   : > { %3972 = vst.msk [vmem:[%s7353_s8 + $0x118] sm:$0xff] %vm3936_vm15, %v5252_v57 }
 0x2ec   : > { %3970 = vst.msk [vmem:[%s7353_s8 + $0x108] sm:$0xff] %vm3936_vm15, %v5253_v45  ;;  %5035 = vmatmul.mubr.msk.bf16.gmra.mrb[104].mxu1 %vm7043_vm6, %v8278_v24  ;;  %vm8377_vm6 = vnez %v8302_v0 }
 0x2ed   : > { %5038 = vmatprep.mubr.msk.bf16.mxu1 %vm7068_vm13, %v8278_v24 }
 0x2ee   : > { %v5112_v52 = vpop.f32.mrb[36].mxu0 }
 0x2ef   : > { %v5254_v47 = vadd.f32 %v5112_v52, %v8364_v34  ;;  %v3441_v11 = vpop.f32.mrb[37].mxu0 }
 0x2f0   : > { %v5255_v53 = vadd.f32 %v3441_v11, %v8365_v61  ;;  %v5113_v13 = vpop.f32.mrb[38].mxu0 }
 0x2f1   : > { %3975 = vst.msk [vmem:[%s7353_s8 + $0x130] sm:$0xff] %vm3936_vm15, %v5254_v47  ;;  %v5256_v4 = vadd.f32 %v5113_v13, %v8366_v39  ;;  %v3444_v60 = vpop.f32.mrb[39].mxu0  ;;  %v8386_v39 = vld [vmem:[#allocation36_spill] sm:$0xff] }
 0x2f2   : > { %3973 = vst.msk [vmem:[%s7353_s8 + $0x120] sm:$0xff] %vm3936_vm15, %v5255_v53  ;;  %v5257_v38 = vadd.f32 %v3444_v60, %v8367_v18  ;;  %v8385_v53 = vld [vmem:[#allocation33_spill] sm:$0xff]  ;;  %v8387_v18 = vld [vmem:[#allocation35_spill] sm:$0xff] }
 0x2f3   : > { %3976 = vst.msk [vmem:[%s7353_s8 + $0x138] sm:$0xff] %vm3936_vm15, %v5256_v4 }
 0x2f4   : > { %3974 = vst.msk [vmem:[%s7353_s8 + $0x128] sm:$0xff] %vm3936_vm15, %v5257_v38  ;;  %5039 = vmatmul.mubr.msk.bf16.gmra.mrb[108].mxu1 %vm8333_vm11, %v8278_v24 }
 0x2f5   : > { %5042 = vmatprep.mubr.msk.bf16.mxu1 %vm8335_vm10, %v8278_v24 }
 0x2f6   : > { %v5116_v14 = vpop.f32.mrb[40].mxu0 }
 0x2f7   : > { %v5258_v63 = vadd.f32 %v5116_v14, %v8368_v7  ;;  %v3457_v22 = vpop.f32.mrb[41].mxu0  ;;  %v8388_v7 = vld [vmem:[#allocation38_spill] sm:$0xff] }
 0x2f8   : > { %v5259_v2 = vadd.f32 %v3457_v22, %v8369_v9  ;;  %v5117_v32 = vpop.f32.mrb[42].mxu0 }
 0x2f9   : > { %3979 = vst.msk [vmem:[%s7353_s8 + $0x150] sm:$0xff] %vm3936_vm15, %v5258_v63  ;;  %v5260_v8 = vadd.f32 %v5117_v32, %v8370_v3  ;;  %v3460_v49 = vpop.f32.mrb[43].mxu0 }
 0x2fa   : > { %3977 = vst.msk [vmem:[%s7353_s8 + $0x140] sm:$0xff] %vm3936_vm15, %v5259_v2  ;;  %v5261_v1 = vadd.f32 %v3460_v49, %v8371_v10 }
 0x2fb   : > { %3980 = vst.msk [vmem:[%s7353_s8 + $0x158] sm:$0xff] %vm3936_vm15, %v5260_v8 }
 0x2fc   : > { %3978 = vst.msk [vmem:[%s7353_s8 + $0x148] sm:$0xff] %vm3936_vm15, %v5261_v1  ;;  %5043 = vmatmul.mubr.msk.bf16.gmra.mrb[112].mxu1 %vm8337_vm1, %v8278_v24 }
 0x2fd   : > { %5046 = vmatprep.mubr.msk.bf16.mxu1 %vm8372_vm0, %v8278_v24 }
 0x2fe   : > { %v5120_v26 = vpop.f32.mrb[44].mxu0 }
 0x2ff   : > { %v5262_v12 = vadd.f32 %v5120_v26, %v8373_v55  ;;  %v3473_v30 = vpop.f32.mrb[45].mxu0 }
 0x300   : > { %v5263_v31 = vadd.f32 %v3473_v30, %v8374_v27  ;;  %v5121_v43 = vpop.f32.mrb[46].mxu0 }
 0x301   : > { %3983 = vst.msk [vmem:[%s7353_s8 + $0x170] sm:$0xff] %vm3936_vm15, %v5262_v12  ;;  %v5264_v58 = vadd.f32 %v5121_v43, %v8375_v62  ;;  %v3476_v56 = vpop.f32.mrb[47].mxu0 }
 0x302   : > { %3981 = vst.msk [vmem:[%s7353_s8 + $0x160] sm:$0xff] %vm3936_vm15, %v5263_v31  ;;  %v5265_v40 = vadd.f32 %v3476_v56, %v8376_v5 }
 0x303   : > { %3984 = vst.msk [vmem:[%s7353_s8 + $0x178] sm:$0xff] %vm3936_vm15, %v5264_v58 }
 0x304   : > { %3982 = vst.msk [vmem:[%s7353_s8 + $0x168] sm:$0xff] %vm3936_vm15, %v5265_v40  ;;  %5047 = vmatmul.mubr.msk.bf16.gmra.mrb[116].mxu1 %vm7193_vm14, %v8278_v24 }
 0x305   : > { %5050 = vmatprep.mubr.msk.bf16.mxu1 %vm8377_vm6, %v8278_v24 }
 0x306   : > { %v5124_v29 = vpop.f32.mrb[48].mxu0 }
 0x307   : > { %v5266_v51 = vadd.f32 %v5124_v29, %v8378_v35  ;;  %v3489_v16 = vpop.f32.mrb[49].mxu0 }
 0x308   : > { %v5267_v6 = vadd.f32 %v3489_v16, %v8379_v44  ;;  %v5125_v36 = vpop.f32.mrb[50].mxu0 }
 0x309   : > { %3987 = vst.msk [vmem:[%s7353_s8 + $0x190] sm:$0xff] %vm3936_vm15, %v5266_v51  ;;  %v5268_v54 = vadd.f32 %v5125_v36, %v8380_v20  ;;  %v3492_v25 = vpop.f32.mrb[51].mxu0 }
 0x30a   : > { %3985 = vst.msk [vmem:[%s7353_s8 + $0x180] sm:$0xff] %vm3936_vm15, %v5267_v6  ;;  %v5269_v0 = vadd.f32 %v3492_v25, %v8381_v33 }
 0x30b   : > { %3988 = vst.msk [vmem:[%s7353_s8 + $0x198] sm:$0xff] %vm3936_vm15, %v5268_v54 }
 0x30c   : > { %3986 = vst.msk [vmem:[%s7353_s8 + $0x188] sm:$0xff] %vm3936_vm15, %v5269_v0  ;;  %5051 = vmatmul.mubr.msk.bf16.gmra.mrb[120].mxu1 %vm8344_vm3, %v8278_v24 }
 0x30d   : > { %5054 = vmatprep.mubr.msk.bf16.mxu1 %vm7268_vm7, %v8278_v24 }
 0x30e   : > { %v5128_v23 = vpop.f32.mrb[52].mxu0 }
 0x30f   : > { %v5270_v42 = vadd.f32 %v5128_v23, %v8382_v59  ;;  %v3505_v57 = vpop.f32.mrb[53].mxu0 }
 0x310   : > { %v5271_v41 = vadd.f32 %v3505_v57, %v7283_v19  ;;  %v5129_v28 = vpop.f32.mrb[54].mxu0 }
 0x311   : > { %3991 = vst.msk [vmem:[%s7353_s8 + $0x1b0] sm:$0xff] %vm3936_vm15, %v5270_v42  ;;  %v5272_v45 = vadd.f32 %v5129_v28, %v7287_v15  ;;  %v3508_v52 = vpop.f32.mrb[55].mxu0 }
 0x312   : > { %3989 = vst.msk [vmem:[%s7353_s8 + $0x1a0] sm:$0xff] %vm3936_vm15, %v5271_v41  ;;  %v5273_v50 = vadd.f32 %v3508_v52, %v7291_v37  ;;  %v8383_v37 = vld [vmem:[#allocation31_spill] sm:$0xff] }
 0x313   : > { %3992 = vst.msk [vmem:[%s7353_s8 + $0x1b8] sm:$0xff] %vm3936_vm15, %v5272_v45 }
 0x314   : > { %3990 = vst.msk [vmem:[%s7353_s8 + $0x1a8] sm:$0xff] %vm3936_vm15, %v5273_v50  ;;  %5055 = vmatmul.mubr.msk.bf16.gmra.mrb[124].mxu1 %vm7293_vm8, %v8278_v24 }
 0x316   : > { %v5132_v46 = vpop.f32.mrb[56].mxu0 }
 0x317   : > { %v5274_v19 = vadd.f32 %v5132_v46, %v7309_v17  ;;  %v3521_v15 = vpop.f32.mrb[57].mxu0 }
 0x318   : > { %v5275_v34 = vadd.f32 %v3521_v15, %v7311_v48  ;;  %v5133_v47 = vpop.f32.mrb[58].mxu0 }
 0x319   : > { %3995 = vst.msk [vmem:[%s7353_s8 + $0x1d0] sm:$0xff] %vm3936_vm15, %v5274_v19  ;;  %v5276_v11 = vadd.f32 %v5133_v47, %v8383_v37  ;;  %v3524_v61 = vpop.f32.mrb[59].mxu0 }
 0x31a   : > { %3993 = vst.msk [vmem:[%s7353_s8 + $0x1c0] sm:$0xff] %vm3936_vm15, %v5275_v34  ;;  %v5277_v24 = vadd.f32 %v3524_v61, %v8384_v21 }
 0x31b   : > { %3996 = vst.msk [vmem:[%s7353_s8 + $0x1d8] sm:$0xff] %vm3936_vm15, %v5276_v11 }
 0x31c   : > { %3994 = vst.msk [vmem:[%s7353_s8 + $0x1c8] sm:$0xff] %vm3936_vm15, %v5277_v24 }
 0x31e   : > { %v5136_v17 = vpop.f32.mrb[60].mxu0 }
 0x31f   : > { %v5278_v48 = vadd.f32 %v5136_v17, %v8385_v53  ;;  %v3537_v13 = vpop.f32.mrb[61].mxu0 }
 0x320   : > { %v5279_v4 = vadd.f32 %v3537_v13, %v8386_v39  ;;  %v5137_v60 = vpop.f32.mrb[62].mxu0 }
 0x321   : > { %3999 = vst.msk [vmem:[%s7353_s8 + $0x1f0] sm:$0xff] %vm3936_vm15, %v5278_v48  ;;  %v5280_v38 = vadd.f32 %v5137_v60, %v8387_v18  ;;  %v3540_v14 = vpop.f32.mrb[63].mxu0 }
 0x322   : > { %3997 = vst.msk [vmem:[%s7353_s8 + $0x1e0] sm:$0xff] %vm3936_vm15, %v5279_v4  ;;  %v5281_v63 = vadd.f32 %v3540_v14, %v8388_v7 }
 0x323   : > { %4000 = vst.msk [vmem:[%s7353_s8 + $0x1f8] sm:$0xff] %vm3936_vm15, %v5280_v38 }
 0x324   : > { %3998 = vst.msk [vmem:[%s7353_s8 + $0x1e8] sm:$0xff] %vm3936_vm15, %v5281_v63 }
 0x326   : > { %v5140_v22 = vpop.f32.mrb[64].mxu0 }
 0x327   : > { %v3553_v9 = vpop.f32.mrb[65].mxu0 }
 0x328   : > { %v5141_v2 = vpop.f32.mrb[66].mxu0 }
 0x329   : > { %v3556_v32 = vpop.f32.mrb[67].mxu0 }
 0x32e   : > { %v5144_v3 = vpop.f32.mrb[68].mxu0 }
 0x32f   : > { %v3569_v8 = vpop.f32.mrb[69].mxu0 }
 0x330   : > { %v5145_v49 = vpop.f32.mrb[70].mxu0 }
 0x331   : > { %v3572_v10 = vpop.f32.mrb[71].mxu0 }
 0x336   : > { %v7655_v1 = vpop.f32.mrb[72].mxu0 }
 0x337   : > { %v7657_v26 = vpop.f32.mrb[73].mxu0 }
 0x338   : > { %v7659_v55 = vpop.f32.mrb[74].mxu0 }
 0x339   : > { %v7661_v12 = vpop.f32.mrb[75].mxu0 }
 0x33e   : > { %v7663_v30 = vpop.f32.mrb[76].mxu0 }
 0x33f   : > { %v7665_v27 = vpop.f32.mrb[77].mxu0 }
 0x340   : > { %v7667_v31 = vpop.f32.mrb[78].mxu0 }
 0x341   : > { %v7669_v43 = vpop.f32.mrb[79].mxu0 }
 0x346   : > { %v7671_v62 = vpop.f32.mrb[80].mxu0 }
 0x347   : > { %v7673_v58 = vpop.f32.mrb[81].mxu0 }
 0x348   : > { %v7675_v56 = vpop.f32.mrb[82].mxu0 }
 0x349   : > { %v7677_v5 = vpop.f32.mrb[83].mxu0 }
 0x34e   : > { %v7679_v40 = vpop.f32.mrb[84].mxu0 }
 0x34f   : > { %v7681_v29 = vpop.f32.mrb[85].mxu0 }
 0x350   : > { %v7683_v35 = vpop.f32.mrb[86].mxu0 }
 0x351   : > { %v7685_v51 = vpop.f32.mrb[87].mxu0 }
 0x356   : > { %v7687_v16 = vpop.f32.mrb[88].mxu0 }
 0x357   : > { %v7689_v44 = vpop.f32.mrb[89].mxu0 }
 0x358   : > { %v7691_v6 = vpop.f32.mrb[90].mxu0 }
 0x359   : > { %v7693_v36 = vpop.f32.mrb[91].mxu0 }
 0x35e   : > { %v7695_v20 = vpop.f32.mrb[92].mxu0 }
 0x35f   : > { %v7697_v54 = vpop.f32.mrb[93].mxu0 }
 0x360   : > { %v7699_v25 = vpop.f32.mrb[94].mxu0 }
 0x361   : > { %v7701_v33 = vpop.f32.mrb[95].mxu0 }
 0x366   : > { %v7703_v0 = vpop.f32.mrb[96].mxu0 }
 0x367   : > { %v7705_v23 = vpop.f32.mrb[97].mxu0 }
 0x368   : > { %v7707_v59 = vpop.f32.mrb[98].mxu0 }
 0x369   : > { %v7709_v42 = vpop.f32.mrb[99].mxu0 }
 0x36e   : > { %v7711_v57 = vpop.f32.mrb[100].mxu0 }
 0x36f   : > { %v4996_v41 = vpop.f32.mrb[64].mxu1  ;;  %v7713_v28 = vpop.f32.mrb[101].mxu0 }
 0x370   : > { %v5282_v45 = vadd.f32 %v5140_v22, %v4996_v41  ;;  %v2944_v52 = vpop.f32.mrb[65].mxu1  ;;  %v7715_v50 = vpop.f32.mrb[102].mxu0 }
 0x371   : > { %v5283_v46 = vadd.f32 %v3553_v9, %v2944_v52  ;;  %v4997_v19 = vpop.f32.mrb[66].mxu1  ;;  %v7717_v15 = vpop.f32.mrb[103].mxu0 }
 0x372   : > { %4003 = vst.msk [vmem:[%s7353_s8 + $0x210] sm:$0xff] %vm3936_vm15, %v5282_v45  ;;  %v5284_v34 = vadd.f32 %v5141_v2, %v4997_v19  ;;  %v2947_v47 = vpop.f32.mrb[67].mxu1 }
 0x373   : > { %4001 = vst.msk [vmem:[%s7353_s8 + $0x200] sm:$0xff] %vm3936_vm15, %v5283_v46  ;;  %v5285_v37 = vadd.f32 %v3556_v32, %v2947_v47 }
 0x374   : > { %4004 = vst.msk [vmem:[%s7353_s8 + $0x218] sm:$0xff] %vm3936_vm15, %v5284_v34 }
 0x375   : > { %4002 = vst.msk [vmem:[%s7353_s8 + $0x208] sm:$0xff] %vm3936_vm15, %v5285_v37 }
 0x376   : > { %v7727_v11 = vpop.f32.mrb[104].mxu0 }
 0x377   : > { %v5000_v61 = vpop.f32.mrb[68].mxu1  ;;  %v7729_v21 = vpop.f32.mrb[105].mxu0 }
 0x378   : > { %v5286_v24 = vadd.f32 %v5144_v3, %v5000_v61  ;;  %v2960_v17 = vpop.f32.mrb[69].mxu1  ;;  %v7731_v53 = vpop.f32.mrb[106].mxu0 }
 0x379   : > { %v5287_v48 = vadd.f32 %v3569_v8, %v2960_v17  ;;  %v5001_v13 = vpop.f32.mrb[70].mxu1  ;;  %v7733_v39 = vpop.f32.mrb[107].mxu0 }
 0x37a   : > { %4007 = vst.msk [vmem:[%s7353_s8 + $0x230] sm:$0xff] %vm3936_vm15, %v5286_v24  ;;  %v5288_v4 = vadd.f32 %v5145_v49, %v5001_v13  ;;  %v2963_v60 = vpop.f32.mrb[71].mxu1 }
 0x37b   : > { %4005 = vst.msk [vmem:[%s7353_s8 + $0x220] sm:$0xff] %vm3936_vm15, %v5287_v48  ;;  %v5289_v18 = vadd.f32 %v3572_v10, %v2963_v60 }
 0x37c   : > { %4008 = vst.msk [vmem:[%s7353_s8 + $0x238] sm:$0xff] %vm3936_vm15, %v5288_v4 }
 0x37d   : > { %4006 = vst.msk [vmem:[%s7353_s8 + $0x228] sm:$0xff] %vm3936_vm15, %v5289_v18 }
 0x37e   : > { %v7743_v38 = vpop.f32.mrb[108].mxu0 }
 0x37f   : > { %v5004_v14 = vpop.f32.mrb[72].mxu1  ;;  %v7745_v7 = vpop.f32.mrb[109].mxu0 }
 0x380   : > { %v5290_v63 = vadd.f32 %v7655_v1, %v5004_v14  ;;  %v2976_v22 = vpop.f32.mrb[73].mxu1  ;;  %v7748_v9 = vpop.f32.mrb[110].mxu0 }
 0x381   : > { %v5291_v2 = vadd.f32 %v7657_v26, %v2976_v22  ;;  %v5005_v32 = vpop.f32.mrb[74].mxu1  ;;  %v7751_v3 = vpop.f32.mrb[111].mxu0 }
 0x382   : > { %4011 = vst.msk [vmem:[%s7353_s8 + $0x250] sm:$0xff] %vm3936_vm15, %v5290_v63  ;;  %v5292_v8 = vadd.f32 %v7659_v55, %v5005_v32  ;;  %v2979_v49 = vpop.f32.mrb[75].mxu1 }
 0x383   : > { %4009 = vst.msk [vmem:[%s7353_s8 + $0x240] sm:$0xff] %vm3936_vm15, %v5291_v2  ;;  %v5293_v10 = vadd.f32 %v7661_v12, %v2979_v49 }
 0x384   : > { %4012 = vst.msk [vmem:[%s7353_s8 + $0x258] sm:$0xff] %vm3936_vm15, %v5292_v8 }
 0x385   : > { %4010 = vst.msk [vmem:[%s7353_s8 + $0x248] sm:$0xff] %vm3936_vm15, %v5293_v10 }
 0x386   : > { %v7763_v1 = vpop.f32.mrb[112].mxu0 }
 0x387   : > { %v5008_v26 = vpop.f32.mrb[76].mxu1  ;;  %v7765_v41 = vpop.f32.mrb[113].mxu0 }
 0x388   : > { %v5294_v45 = vadd.f32 %v7663_v30, %v5008_v26  ;;  %v2992_v55 = vpop.f32.mrb[77].mxu1  ;;  %v7768_v52 = vpop.f32.mrb[114].mxu0 }
 0x389   : > { %v5295_v46 = vadd.f32 %v7665_v27, %v2992_v55  ;;  %v5009_v19 = vpop.f32.mrb[78].mxu1  ;;  %v7771_v12 = vpop.f32.mrb[115].mxu0 }
 0x38a   : > { %4015 = vst.msk [vmem:[%s7353_s8 + $0x270] sm:$0xff] %vm3936_vm15, %v5294_v45  ;;  %v5296_v34 = vadd.f32 %v7667_v31, %v5009_v19  ;;  %v2995_v47 = vpop.f32.mrb[79].mxu1 }
 0x38b   : > { %4013 = vst.msk [vmem:[%s7353_s8 + $0x260] sm:$0xff] %vm3936_vm15, %v5295_v46  ;;  %v5297_v37 = vadd.f32 %v7669_v43, %v2995_v47 }
 0x38c   : > { %4016 = vst.msk [vmem:[%s7353_s8 + $0x278] sm:$0xff] %vm3936_vm15, %v5296_v34 }
 0x38d   : > { %4014 = vst.msk [vmem:[%s7353_s8 + $0x268] sm:$0xff] %vm3936_vm15, %v5297_v37 }
 0x38e   : > { %v7783_v30 = vpop.f32.mrb[116].mxu0 }
 0x38f   : > { %v5012_v27 = vpop.f32.mrb[80].mxu1  ;;  %v7785_v61 = vpop.f32.mrb[117].mxu0 }
 0x390   : > { %v5298_v24 = vadd.f32 %v7671_v62, %v5012_v27  ;;  %v3008_v31 = vpop.f32.mrb[81].mxu1  ;;  %v7788_v17 = vpop.f32.mrb[118].mxu0 }
 0x391   : > { %v5299_v48 = vadd.f32 %v7673_v58, %v3008_v31  ;;  %v5013_v13 = vpop.f32.mrb[82].mxu1  ;;  %v7791_v43 = vpop.f32.mrb[119].mxu0 }
 0x392   : > { %4019 = vst.msk [vmem:[%s7353_s8 + $0x290] sm:$0xff] %vm3936_vm15, %v5298_v24  ;;  %v5300_v4 = vadd.f32 %v7675_v56, %v5013_v13  ;;  %v3011_v60 = vpop.f32.mrb[83].mxu1 }
 0x393   : > { %4017 = vst.msk [vmem:[%s7353_s8 + $0x280] sm:$0xff] %vm3936_vm15, %v5299_v48  ;;  %v5301_v18 = vadd.f32 %v7677_v5, %v3011_v60 }
 0x394   : > { %4020 = vst.msk [vmem:[%s7353_s8 + $0x298] sm:$0xff] %vm3936_vm15, %v5300_v4 }
 0x395   : > { %4018 = vst.msk [vmem:[%s7353_s8 + $0x288] sm:$0xff] %vm3936_vm15, %v5301_v18 }
 0x396   : > { %v7803_v62 = vpop.f32.mrb[120].mxu0 }
 0x397   : > { %v5016_v58 = vpop.f32.mrb[84].mxu1  ;;  %v7805_v14 = vpop.f32.mrb[121].mxu0 }
 0x398   : > { %v5302_v63 = vadd.f32 %v7679_v40, %v5016_v58  ;;  %v3024_v56 = vpop.f32.mrb[85].mxu1  ;;  %v7808_v22 = vpop.f32.mrb[122].mxu0 }
 0x399   : > { %v5303_v2 = vadd.f32 %v7681_v29, %v3024_v56  ;;  %v5017_v32 = vpop.f32.mrb[86].mxu1  ;;  %v7811_v5 = vpop.f32.mrb[123].mxu0 }
 0x39a   : > { %4023 = vst.msk [vmem:[%s7353_s8 + $0x2b0] sm:$0xff] %vm3936_vm15, %v5302_v63  ;;  %v5304_v8 = vadd.f32 %v7683_v35, %v5017_v32  ;;  %v3027_v49 = vpop.f32.mrb[87].mxu1 }
 0x39b   : > { %4021 = vst.msk [vmem:[%s7353_s8 + $0x2a0] sm:$0xff] %vm3936_vm15, %v5303_v2  ;;  %v5305_v10 = vadd.f32 %v7685_v51, %v3027_v49 }
 0x39c   : > { %4024 = vst.msk [vmem:[%s7353_s8 + $0x2b8] sm:$0xff] %vm3936_vm15, %v5304_v8 }
 0x39d   : > { %4022 = vst.msk [vmem:[%s7353_s8 + $0x2a8] sm:$0xff] %vm3936_vm15, %v5305_v10 }
 0x39e   : > { %v7823_v40 = vpop.f32.mrb[124].mxu0 }
 0x39f   : > { %v5020_v29 = vpop.f32.mrb[88].mxu1  ;;  %v7825_v26 = vpop.f32.mrb[125].mxu0 }
 0x3a0   : > { %v5306_v45 = vadd.f32 %v7687_v16, %v5020_v29  ;;  %v3040_v35 = vpop.f32.mrb[89].mxu1  ;;  %v7828_v55 = vpop.f32.mrb[126].mxu0 }
 0x3a1   : > { %v5307_v46 = vadd.f32 %v7689_v44, %v3040_v35  ;;  %v5021_v51 = vpop.f32.mrb[90].mxu1  ;;  %v7831_v19 = vpop.f32.mrb[127].mxu0 }
 0x3a2   : > { %4027 = vst.msk [vmem:[%s7353_s8 + $0x2d0] sm:$0xff] %vm3936_vm15, %v5306_v45  ;;  %v5308_v34 = vadd.f32 %v7691_v6, %v5021_v51  ;;  %v3043_v47 = vpop.f32.mrb[91].mxu1 }
 0x3a3   : > { %4025 = vst.msk [vmem:[%s7353_s8 + $0x2c0] sm:$0xff] %vm3936_vm15, %v5307_v46  ;;  %v5309_v16 = vadd.f32 %v7693_v36, %v3043_v47 }
 0x3a4   : > { %4028 = vst.msk [vmem:[%s7353_s8 + $0x2d8] sm:$0xff] %vm3936_vm15, %v5308_v34 }
 0x3a5   : > { %4026 = vst.msk [vmem:[%s7353_s8 + $0x2c8] sm:$0xff] %vm3936_vm15, %v5309_v16 }
 0x3a7   : > { %v5024_v44 = vpop.f32.mrb[92].mxu1 }
 0x3a8   : > { %v5310_v37 = vadd.f32 %v7695_v20, %v5024_v44  ;;  %v3056_v27 = vpop.f32.mrb[93].mxu1 }
 0x3a9   : > { %v5311_v24 = vadd.f32 %v7697_v54, %v3056_v27  ;;  %v5025_v31 = vpop.f32.mrb[94].mxu1 }
 0x3aa   : > { %4031 = vst.msk [vmem:[%s7353_s8 + $0x2f0] sm:$0xff] %vm3936_vm15, %v5310_v37  ;;  %v5312_v6 = vadd.f32 %v7699_v25, %v5025_v31  ;;  %v3059_v48 = vpop.f32.mrb[95].mxu1 }
 0x3ab   : > { %4029 = vst.msk [vmem:[%s7353_s8 + $0x2e0] sm:$0xff] %vm3936_vm15, %v5311_v24  ;;  %v5313_v36 = vadd.f32 %v7701_v33, %v3059_v48 }
 0x3ac   : > { %4032 = vst.msk [vmem:[%s7353_s8 + $0x2f8] sm:$0xff] %vm3936_vm15, %v5312_v6 }
 0x3ad   : > { %4030 = vst.msk [vmem:[%s7353_s8 + $0x2e8] sm:$0xff] %vm3936_vm15, %v5313_v36 }
 0x3af   : > { %v5028_v20 = vpop.f32.mrb[96].mxu1 }
 0x3b0   : > { %v5314_v54 = vadd.f32 %v7703_v0, %v5028_v20  ;;  %v3072_v13 = vpop.f32.mrb[97].mxu1 }
 0x3b1   : > { %v5315_v4 = vadd.f32 %v7705_v23, %v3072_v13  ;;  %v5029_v60 = vpop.f32.mrb[98].mxu1 }
 0x3b2   : > { %4035 = vst.msk [vmem:[%s7353_s8 + $0x310] sm:$0xff] %vm3936_vm15, %v5314_v54  ;;  %v5316_v25 = vadd.f32 %v7707_v59, %v5029_v60  ;;  %v3075_v18 = vpop.f32.mrb[99].mxu1 }
 0x3b3   : > { %4033 = vst.msk [vmem:[%s7353_s8 + $0x300] sm:$0xff] %vm3936_vm15, %v5315_v4  ;;  %v5317_v33 = vadd.f32 %v7709_v42, %v3075_v18 }
 0x3b4   : > { %4036 = vst.msk [vmem:[%s7353_s8 + $0x318] sm:$0xff] %vm3936_vm15, %v5316_v25 }
 0x3b5   : > { %4034 = vst.msk [vmem:[%s7353_s8 + $0x308] sm:$0xff] %vm3936_vm15, %v5317_v33 }
 0x3b7   : > { %v5032_v0 = vpop.f32.mrb[100].mxu1 }
 0x3b8   : > { %v5318_v23 = vadd.f32 %v7711_v57, %v5032_v0  ;;  %v3088_v58 = vpop.f32.mrb[101].mxu1 }
 0x3b9   : > { %v5319_v63 = vadd.f32 %v7713_v28, %v3088_v58  ;;  %v5033_v56 = vpop.f32.mrb[102].mxu1 }
 0x3ba   : > { %4039 = vst.msk [vmem:[%s7353_s8 + $0x330] sm:$0xff] %vm3936_vm15, %v5318_v23  ;;  %v5320_v59 = vadd.f32 %v7715_v50, %v5033_v56  ;;  %v3091_v2 = vpop.f32.mrb[103].mxu1 }
 0x3bb   : > { %4037 = vst.msk [vmem:[%s7353_s8 + $0x320] sm:$0xff] %vm3936_vm15, %v5319_v63  ;;  %v5321_v42 = vadd.f32 %v7717_v15, %v3091_v2 }
 0x3bc   : > { %4040 = vst.msk [vmem:[%s7353_s8 + $0x338] sm:$0xff] %vm3936_vm15, %v5320_v59 }
 0x3bd   : > { %4038 = vst.msk [vmem:[%s7353_s8 + $0x328] sm:$0xff] %vm3936_vm15, %v5321_v42 }
 0x3bf   : > { %v5036_v57 = vpop.f32.mrb[104].mxu1 }
 0x3c0   : > { %v5322_v28 = vadd.f32 %v7727_v11, %v5036_v57  ;;  %v3104_v32 = vpop.f32.mrb[105].mxu1 }
 0x3c1   : > { %v5323_v8 = vadd.f32 %v7729_v21, %v3104_v32  ;;  %v5037_v49 = vpop.f32.mrb[106].mxu1 }
 0x3c2   : > { %4043 = vst.msk [vmem:[%s7353_s8 + $0x350] sm:$0xff] %vm3936_vm15, %v5322_v28  ;;  %v5324_v50 = vadd.f32 %v7731_v53, %v5037_v49  ;;  %v3107_v10 = vpop.f32.mrb[107].mxu1 }
 0x3c3   : > { %4041 = vst.msk [vmem:[%s7353_s8 + $0x340] sm:$0xff] %vm3936_vm15, %v5323_v8  ;;  %v5325_v15 = vadd.f32 %v7733_v39, %v3107_v10 }
 0x3c4   : > { %4044 = vst.msk [vmem:[%s7353_s8 + $0x358] sm:$0xff] %vm3936_vm15, %v5324_v50 }
 0x3c5   : > { %4042 = vst.msk [vmem:[%s7353_s8 + $0x348] sm:$0xff] %vm3936_vm15, %v5325_v15 }
 0x3c7   : > { %v5040_v11 = vpop.f32.mrb[108].mxu1 }
 0x3c8   : > { %v5326_v21 = vadd.f32 %v7743_v38, %v5040_v11  ;;  %v3120_v29 = vpop.f32.mrb[109].mxu1 }
 0x3c9   : > { %v5327_v45 = vadd.f32 %v7745_v7, %v3120_v29  ;;  %v5041_v35 = vpop.f32.mrb[110].mxu1 }
 0x3ca   : > { %4047 = vst.msk [vmem:[%s7353_s8 + $0x370] sm:$0xff] %vm3936_vm15, %v5326_v21  ;;  %v5328_v53 = vadd.f32 %v7748_v9, %v5041_v35  ;;  %v3123_v46 = vpop.f32.mrb[111].mxu1 }
 0x3cb   : > { %4045 = vst.msk [vmem:[%s7353_s8 + $0x360] sm:$0xff] %vm3936_vm15, %v5327_v45  ;;  %v5329_v39 = vadd.f32 %v7751_v3, %v3123_v46 }
 0x3cc   : > { %4048 = vst.msk [vmem:[%s7353_s8 + $0x378] sm:$0xff] %vm3936_vm15, %v5328_v53 }
 0x3cd   : > { %4046 = vst.msk [vmem:[%s7353_s8 + $0x368] sm:$0xff] %vm3936_vm15, %v5329_v39 }
 0x3cf   : > { %v5044_v38 = vpop.f32.mrb[112].mxu1 }
 0x3d0   : > { %v5330_v7 = vadd.f32 %v7763_v1, %v5044_v38  ;;  %v3136_v51 = vpop.f32.mrb[113].mxu1 }
 0x3d1   : > { %v5331_v34 = vadd.f32 %v7765_v41, %v3136_v51  ;;  %v5045_v47 = vpop.f32.mrb[114].mxu1 }
 0x3d2   : > { %4051 = vst.msk [vmem:[%s7353_s8 + $0x390] sm:$0xff] %vm3936_vm15, %v5330_v7  ;;  %v5332_v9 = vadd.f32 %v7768_v52, %v5045_v47  ;;  %v3139_v16 = vpop.f32.mrb[115].mxu1 }
 0x3d3   : > { %4049 = vst.msk [vmem:[%s7353_s8 + $0x380] sm:$0xff] %vm3936_vm15, %v5331_v34  ;;  %v5333_v3 = vadd.f32 %v7771_v12, %v3139_v16 }
 0x3d4   : > { %4052 = vst.msk [vmem:[%s7353_s8 + $0x398] sm:$0xff] %vm3936_vm15, %v5332_v9 }
 0x3d5   : > { %4050 = vst.msk [vmem:[%s7353_s8 + $0x388] sm:$0xff] %vm3936_vm15, %v5333_v3 }
 0x3d7   : > { %v5048_v1 = vpop.f32.mrb[116].mxu1 }
 0x3d8   : > { %v5334_v41 = vadd.f32 %v7783_v30, %v5048_v1  ;;  %v3152_v44 = vpop.f32.mrb[117].mxu1 }
 0x3d9   : > { %v5335_v37 = vadd.f32 %v7785_v61, %v3152_v44  ;;  %v5049_v27 = vpop.f32.mrb[118].mxu1 }
 0x3da   : > { %4055 = vst.msk [vmem:[%s7353_s8 + $0x3b0] sm:$0xff] %vm3936_vm15, %v5334_v41  ;;  %v5336_v52 = vadd.f32 %v7788_v17, %v5049_v27  ;;  %v3155_v24 = vpop.f32.mrb[119].mxu1 }
 0x3db   : > { %4053 = vst.msk [vmem:[%s7353_s8 + $0x3a0] sm:$0xff] %vm3936_vm15, %v5335_v37  ;;  %v5337_v12 = vadd.f32 %v7791_v43, %v3155_v24 }
 0x3dc   : > { %4056 = vst.msk [vmem:[%s7353_s8 + $0x3b8] sm:$0xff] %vm3936_vm15, %v5336_v52 }
 0x3dd   : > { %4054 = vst.msk [vmem:[%s7353_s8 + $0x3a8] sm:$0xff] %vm3936_vm15, %v5337_v12 }
 0x3df   : > { %v5052_v30 = vpop.f32.mrb[120].mxu1 }
 0x3e0   : > { %v5338_v61 = vadd.f32 %v7803_v62, %v5052_v30  ;;  %v3168_v31 = vpop.f32.mrb[121].mxu1 }
 0x3e1   : > { %v5339_v6 = vadd.f32 %v7805_v14, %v3168_v31  ;;  %v5053_v48 = vpop.f32.mrb[122].mxu1 }
 0x3e2   : > { %4059 = vst.msk [vmem:[%s7353_s8 + $0x3d0] sm:$0xff] %vm3936_vm15, %v5338_v61  ;;  %v5340_v17 = vadd.f32 %v7808_v22, %v5053_v48  ;;  %v3171_v36 = vpop.f32.mrb[123].mxu1 }
 0x3e3   : > { %4057 = vst.msk [vmem:[%s7353_s8 + $0x3c0] sm:$0xff] %vm3936_vm15, %v5339_v6  ;;  %v5341_v43 = vadd.f32 %v7811_v5, %v3171_v36 }
 0x3e4   : > { %4060 = vst.msk [vmem:[%s7353_s8 + $0x3d8] sm:$0xff] %vm3936_vm15, %v5340_v17 }
 0x3e5   : > { %4058 = vst.msk [vmem:[%s7353_s8 + $0x3c8] sm:$0xff] %vm3936_vm15, %v5341_v43 }
 0x3e7   : > { %v5056_v62 = vpop.f32.mrb[124].mxu1 }
 0x3e8   : > { %v5342_v14 = vadd.f32 %v7823_v40, %v5056_v62  ;;  %v3184_v20 = vpop.f32.mrb[125].mxu1 }
 0x3e9   : > { %v5343_v54 = vadd.f32 %v7825_v26, %v3184_v20  ;;  %v5057_v13 = vpop.f32.mrb[126].mxu1 }
 0x3ea   : > { %4063 = vst.msk [vmem:[%s7353_s8 + $0x3f0] sm:$0xff] %vm3936_vm15, %v5342_v14  ;;  %v5344_v22 = vadd.f32 %v7828_v55, %v5057_v13  ;;  %v3187_v4 = vpop.f32.mrb[127].mxu1 }
 0x3eb   : > { %4061 = vst.msk [vmem:[%s7353_s8 + $0x3e0] sm:$0xff] %vm3936_vm15, %v5343_v54  ;;  %v5345_v5 = vadd.f32 %v7831_v19, %v3187_v4 }
 0x3ec   : > { %4064 = vst.msk [vmem:[%s7353_s8 + $0x3f8] sm:$0xff] %vm3936_vm15, %v5344_v22 }
 0x3ed   : > { %4062 = vst.msk [vmem:[%s7353_s8 + $0x3e8] sm:$0xff] %vm3936_vm15, %v5345_v5 }
 0x3ee PF: > { %s15_s18 = sadd.s32 1, %s5516_s18  }
 0x3ef   : > { %p12_p4 = scmp.ge.s32.totalorder %s15_s18, 6  }
 0x3f1   :  { %14 = sbr.rel (!%p12_p4) target bundleno = 1 (0x1), region = 73 }

</bundles_post_ra>
